<compile_context>
chip_gen: v6e
topology: v6e:2x2x1
jax: 0.10.0
libtpu: 0.0.40
codegen_flags: <defaults>
</compile_context>

<pallas_src>
import jax
import jax.numpy as jnp
from jax import lax
from jax.experimental import pallas as pl
from jax.experimental.pallas import tpu as pltpu

# ----------------------------- config ---------------------------------------
IMG = 16          # img_size
PATCH = 4         # patch_size
D = 32            # d_model
FFN = 64          # ffn_hidden
HEADS = 4         # n_head
LAYERS = 2        # n_layers
CLASSES = 10      # num_classes
BATCH = 2
EPS = 1e-5        # nn.LayerNorm default

N_PATCH = (IMG // PATCH) ** 2     # 16 patches
SEQ = N_PATCH + 1                 # 17 tokens (CLS + patches)
PVEC = 3 * PATCH * PATCH          # 48 = flattened patch vector (c, kh, kw)
DH = D // HEADS                   # 8 = per-head dim
BSEQ = BATCH * SEQ                # 34 = batch-folded sequence length
LANES = 128                       # slab width / padded logits width
NEG_INF = -1e30                   # cross-batch attention mask value


# ----------------------------- slab layout (static) --------------------------
def _round8(n):
    return ((n + 7) // 8) * 8


def _build_layout():
    """Row offsets for every tensor inside the single 128-lane weight slab."""
    layout = {}
    off = 0

    def add(name, r, c):
        nonlocal off
        layout[name] = (off, r, c)
        off += _round8(r)          # keep every tensor 8-sublane aligned

    add("patch_w", PVEC, D)        # Conv2d as matmul: [3*P*P, D]
    add("row_bias", BSEQ, D)       # cls/pos/patch-bias rows, tiled over batch
    add("mask", BSEQ, BSEQ)        # block-diagonal 0 / -1e30 attention mask
    for l in range(LAYERS):
        add(f"l{l}_wqkv", D, 3 * D)
        add(f"l{l}_bqkv", 1, 3 * D)
        add(f"l{l}_wo", D, D)
        add(f"l{l}_bo", 1, D)
        add(f"l{l}_ln1g", 1, D)
        add(f"l{l}_ln1b", 1, D)
        add(f"l{l}_w1", D, FFN)
        add(f"l{l}_b1", 1, FFN)
        add(f"l{l}_w2", FFN, D)
        add(f"l{l}_b2", 1, D)
        add(f"l{l}_ln2g", 1, D)
        add(f"l{l}_ln2b", 1, D)
    add("hlng", 1, D)
    add("hlnb", 1, D)
    add("hw1", D, FFN)
    add("hb1", 1, FFN)
    add("hw2", FFN, LANES)         # pre-padded to 128 lanes -> lane-dense logits
    add("hb2", 1, LANES)
    return layout, off


LAYOUT, SLAB_ROWS = _build_layout()


# ----------------------------- fused Pallas kernel --------------------------
def _vit_kernel(patches_ref, slab_ref, out_ref):
    """Entire ViT forward for the whole (folded) batch; everything VMEM-resident."""

    def sl(name):
        off, r, c = LAYOUT[name]
        return slab_ref[off:off + r, 0:c]      # static slice -> cheap VMEM load

    def layer_norm(x, g, b):
        mean = jnp.mean(x, axis=-1, keepdims=True)
        var = jnp.mean(jnp.square(x - mean), axis=-1, keepdims=True)
        return (x - mean) * lax.rsqrt(var + EPS) * g + b

    def gelu(x):
        # Exact erf form to match PyTorch nn.GELU default.
        return 0.5 * x * (1.0 + lax.erf(x * (2.0 ** -0.5)))

    def mm(a, b):
        return jnp.dot(a, b, preferred_element_type=jnp.float32)

    scale = 1.0 / (DH ** 0.5)
    mask = sl("mask")                                               # [BSEQ, BSEQ]

    # ---- patch embedding + CLS + positional embedding (whole batch at once) --
    # CLS rows of `patches` are all-zero; row_bias carries cls+pos[0] there and
    # patch_bias+pos[i] elsewhere (pre-tiled over the batch at pack time).
    x = mm(patches_ref[...], sl("patch_w")) + sl("row_bias")        # [BSEQ, D]

    # ---- encoder layers (unrolled) ----
    for l in range(LAYERS):
        # Fused QKV projection: one [BSEQ,D] @ [D,3D] MXU matmul.
        qkv = mm(x, sl(f"l{l}_wqkv")) + sl(f"l{l}_bqkv")            # [BSEQ, 3D]

        # 1) All heads' score matmuls issued back-to-back (no softmax between).
        s_heads = []
        for h in range(HEADS):
            q = qkv[:, h * DH:(h + 1) * DH]                         # [BSEQ, DH]
            k = qkv[:, D + h * DH:D + (h + 1) * DH]
            s = lax.dot_general(q, k, (((1,), (1,)), ((), ())),     # q @ k^T
                                preferred_element_type=jnp.float32)
            # Block-diagonal mask keeps batch elements independent.
            s_heads.append(s * scale + mask)                        # [BSEQ, BSEQ]

        # 2) Softmax for all heads (VPU/EUP/XLU work, exact divide for parity).
        p_heads = []
        for s in s_heads:
            s = s - jnp.max(s, axis=-1, keepdims=True)
            e = jnp.exp(s)
            p_heads.append(e / jnp.sum(e, axis=-1, keepdims=True))

        # 3) All heads' P@V matmuls, then ONE output projection (K=32, not 4xK=8).
        ctx_heads = []
        for h in range(HEADS):
            v = qkv[:, 2 * D + h * DH:2 * D + (h + 1) * DH]
            ctx_heads.append(mm(p_heads[h], v))                     # [BSEQ, DH]
        ctx = jnp.concatenate(ctx_heads, axis=-1)                   # [BSEQ, D]
        attn = mm(ctx, sl(f"l{l}_wo")) + sl(f"l{l}_bo")

        # post-norm residual blocks (dropout = identity in eval)
        x = layer_norm(x + attn, sl(f"l{l}_ln1g"), sl(f"l{l}_ln1b"))
        hid = gelu(mm(x, sl(f"l{l}_w1")) + sl(f"l{l}_b1"))
        hid = mm(hid, sl(f"l{l}_w2")) + sl(f"l{l}_b2")
        x = layer_norm(x + hid, sl(f"l{l}_ln2g"), sl(f"l{l}_ln2b"))

    # ---- MLP head on the CLS tokens (row b*SEQ of each batch element) ----
    cls = jnp.concatenate([x[b * SEQ:b * SEQ + 1, :] for b in range(BATCH)],
                          axis=0)                                   # [B, D]
    hc = layer_norm(cls, sl("hlng"), sl("hlnb"))
    hc = gelu(mm(hc, sl("hw1")) + sl("hb1"))
    # hw2/hb2 are zero-padded to 128 lanes -> lane-dense [B, 128] store.
    out_ref[...] = mm(hc, sl("hw2")) + sl("hb2")


# ----------------------------- parameters -----------------------------------
def init_params(key):
    keys = iter(jax.random.split(key, 16 + LAYERS * 16))

    def nrm(shape, scale=0.02):
        return scale * jax.random.normal(next(keys), shape, dtype=jnp.float32)

    params = {
        # Conv2d(3, D, PATCH, PATCH) expressed as matmul: [3*P*P, D]
        "patch_w": nrm((PVEC, D)),
        "patch_b": nrm((D,)),
        "cls": nrm((1, 1, D)),
        "pos": nrm((1, SEQ, D)),
        "head_ln_g": jnp.ones((D,), jnp.float32),
        "head_ln_b": jnp.zeros((D,), jnp.float32),
        "head_w1": nrm((D, FFN)),
        "head_b1": nrm((FFN,)),
        "head_w2": nrm((FFN, CLASSES)),
        "head_b2": nrm((CLASSES,)),
        "layers": [],
    }
    for _ in range(LAYERS):
        params["layers"].append({
            "wq": nrm((D, D)), "bq": nrm((D,)),
            "wk": nrm((D, D)), "bk": nrm((D,)),
            "wv": nrm((D, D)), "bv": nrm((D,)),
            "wo": nrm((D, D)), "bo": nrm((D,)),
            "ln1_g": jnp.ones((D,), jnp.float32),
            "ln1_b": jnp.zeros((D,), jnp.float32),
            "w1": nrm((D, FFN)), "b1": nrm((FFN,)),
            "w2": nrm((FFN, D)), "b2": nrm((D,)),
            "ln2_g": jnp.ones((D,), jnp.float32),
            "ln2_b": jnp.zeros((D,), jnp.float32),
        })
    return params


def pack_params(params):
    """Pack ALL weights into one (SLAB_ROWS, 128) f32 slab.  Runs ONCE at init."""
    vals = {}
    vals["patch_w"] = params["patch_w"]

    pos = params["pos"].reshape(SEQ, D)
    row_bias = pos + jnp.concatenate(
        [params["cls"].reshape(1, D),
         jnp.broadcast_to(params["patch_b"].reshape(1, D), (SEQ - 1, D))], axis=0)
    vals["row_bias"] = jnp.tile(row_bias, (BATCH, 1))               # [BSEQ, D]

    batch_id = jnp.repeat(jnp.arange(BATCH), SEQ)
    vals["mask"] = jnp.where(batch_id[:, None] == batch_id[None, :],
                             0.0, NEG_INF).astype(jnp.float32)      # [BSEQ, BSEQ]

    for l, lp in enumerate(params["layers"]):
        vals[f"l{l}_wqkv"] = jnp.concatenate([lp["wq"], lp["wk"], lp["wv"]], axis=1)
        vals[f"l{l}_bqkv"] = jnp.concatenate([lp["bq"], lp["bk"], lp["bv"]])
        vals[f"l{l}_wo"] = lp["wo"]
        vals[f"l{l}_bo"] = lp["bo"]
        vals[f"l{l}_ln1g"] = lp["ln1_g"]
        vals[f"l{l}_ln1b"] = lp["ln1_b"]
        vals[f"l{l}_w1"] = lp["w1"]
        vals[f"l{l}_b1"] = lp["b1"]
        vals[f"l{l}_w2"] = lp["w2"]
        vals[f"l{l}_b2"] = lp["b2"]
        vals[f"l{l}_ln2g"] = lp["ln2_g"]
        vals[f"l{l}_ln2b"] = lp["ln2_b"]

    vals["hlng"] = params["head_ln_g"]
    vals["hlnb"] = params["head_ln_b"]
    vals["hw1"] = params["head_w1"]
    vals["hb1"] = params["head_b1"]
    vals["hw2"] = jnp.zeros((FFN, LANES), jnp.float32).at[:, :CLASSES].set(
        params["head_w2"])
    vals["hb2"] = jnp.zeros((LANES,), jnp.float32).at[:CLASSES].set(
        params["head_b2"])

    slab = jnp.zeros((SLAB_ROWS, LANES), jnp.float32)
    for name, (off, r, c) in LAYOUT.items():
        slab = slab.at[off:off + r, 0:c].set(
            jnp.asarray(vals[name], jnp.float32).reshape(r, c))
    return slab


# ----------------------------- forward --------------------------------------
def vit_forward(x_nchw, slab):
    B = x_nchw.shape[0]
    assert B == BATCH, "kernel is specialized to the packed batch size"
    n = IMG // PATCH
    p = PATCH

    # XLA glue (per-call, unavoidable): unfold patches channel-major (c, kh, kw)
    # to match Conv2d weight flattening, prepend an all-zero row per batch
    # element for the CLS slot, and flatten the batch into the sublane axis.
    patches = (x_nchw.astype(jnp.float32)
               .reshape(B, 3, n, p, n, p)
               .transpose(0, 2, 4, 1, 3, 5)
               .reshape(B, n * n, PVEC))
    patches = jnp.concatenate(
        [jnp.zeros((B, 1, PVEC), jnp.float32), patches], axis=1)    # [B, SEQ, PVEC]
    patches = patches.reshape(B * SEQ, PVEC)                        # [BSEQ, PVEC]

    # Single grid-less invocation: whole batch + all weights VMEM-resident.
    logits_padded = pl.pallas_call(
        _vit_kernel,
        out_shape=jax.ShapeDtypeStruct((B, LANES), jnp.float32),
        in_specs=[pl.BlockSpec(memory_space=pltpu.MemorySpace.VMEM),
                  pl.BlockSpec(memory_space=pltpu.MemorySpace.VMEM)],
        out_specs=pl.BlockSpec(memory_space=pltpu.MemorySpace.VMEM),
    )(patches, slab)

    return logits_padded[:, :CLASSES]


# ----------------------------- main -----------------------------------------
if __name__ == "__main__":
    key = jax.random.PRNGKey(0)
    k_x, k_p = jax.random.split(key)
    x = jax.random.normal(k_x, (BATCH, 3, IMG, IMG), dtype=jnp.float32)
    params = init_params(k_p)

    # Weight packing happens ONCE here, outside the jitted per-call path.
    slab = jax.block_until_ready(pack_params(params))

    # TODO(synk): dropout layers are treated as identity (inference mode).
    fwd = jax.jit(vit_forward)
    logits = jax.block_until_ready(fwd(x, slab))
    assert logits.shape == (BATCH, CLASSES)
    assert bool(jnp.all(jnp.isfinite(logits)))
    print("KERNEL_OK")
</pallas_src>

<mosaic_0001>
module attributes {stable_mosaic.version = 11 : i64} {
  func.func @_vit_kernel(%arg0: memref<34x48xf32, #tpu.memory_space<vmem>>, %arg1: memref<704x128xf32, #tpu.memory_space<vmem>>, %arg2: memref<2x128xf32, #tpu.memory_space<vmem>>) attributes {dimension_semantics = [], scalar_prefetch = 0 : i64, scratch_operands = 0 : i64, tpu.core_type = #tpu.core_type<tc>} {
    %c88 = arith.constant 88 : index
    %c0 = arith.constant 0 : index
    %0 = vector.load %arg1[%c88, %c0] : memref<704x128xf32, #tpu.memory_space<vmem>>, vector<34x34xf32>
    %c0_0 = arith.constant 0 : index
    %c0_1 = arith.constant 0 : index
    %1 = vector.load %arg0[%c0_0, %c0_1] : memref<34x48xf32, #tpu.memory_space<vmem>>, vector<34x48xf32>
    %c0_2 = arith.constant 0 : index
    %c0_3 = arith.constant 0 : index
    %2 = vector.load %arg1[%c0_2, %c0_3] : memref<704x128xf32, #tpu.memory_space<vmem>>, vector<48x32xf32>
    %cst = arith.constant dense<0.000000e+00> : vector<34x32xf32>
    %3 = tpu.matmul %1, %2, %cst {dimension_numbers = #tpu.dot_dimension_numbers<[1], [0], [0], [1], [0, 0, 1, 1], [], []>} : vector<34x48xf32>, vector<48x32xf32>, vector<34x32xf32> -> vector<34x32xf32>
    %c48 = arith.constant 48 : index
    %c0_4 = arith.constant 0 : index
    %4 = vector.load %arg1[%c48, %c0_4] : memref<704x128xf32, #tpu.memory_space<vmem>>, vector<34x32xf32>
    %5 = arith.addf %3, %4 : vector<34x32xf32>
    %c128 = arith.constant 128 : index
    %c0_5 = arith.constant 0 : index
    %6 = vector.load %arg1[%c128, %c0_5] : memref<704x128xf32, #tpu.memory_space<vmem>>, vector<32x96xf32>
    %cst_6 = arith.constant dense<0.000000e+00> : vector<34x96xf32>
    %7 = tpu.matmul %5, %6, %cst_6 {dimension_numbers = #tpu.dot_dimension_numbers<[1], [0], [0], [1], [0, 0, 1, 1], [], []>} : vector<34x32xf32>, vector<32x96xf32>, vector<34x96xf32> -> vector<34x96xf32>
    %c160 = arith.constant 160 : index
    %c0_7 = arith.constant 0 : index
    %8 = vector.load %arg1[%c160, %c0_7] : memref<704x128xf32, #tpu.memory_space<vmem>>, vector<1x96xf32>
    %9 = vector.broadcast %8 : vector<1x96xf32> to vector<34x96xf32>
    %10 = arith.addf %7, %9 : vector<34x96xf32>
    %11 = vector.extract_strided_slice %10 {offsets = [0, 0], sizes = [34, 8], strides = [1, 1]} : vector<34x96xf32> to vector<34x8xf32>
    %12 = vector.extract_strided_slice %10 {offsets = [0, 32], sizes = [34, 8], strides = [1, 1]} : vector<34x96xf32> to vector<34x8xf32>
    %cst_8 = arith.constant dense<0.000000e+00> : vector<34x34xf32>
    %13 = tpu.matmul %11, %12, %cst_8 {dimension_numbers = #tpu.dot_dimension_numbers<[1], [1], [0], [0], [0, 0, 1, 0], [], []>} : vector<34x8xf32>, vector<34x8xf32>, vector<34x34xf32> -> vector<34x34xf32>
    %cst_9 = arith.constant 0.353553385 : f32
    %14 = vector.broadcast %cst_9 : f32 to vector<34x34xf32>
    %15 = arith.mulf %13, %14 : vector<34x34xf32>
    %16 = arith.addf %15, %0 : vector<34x34xf32>
    %17 = vector.extract_strided_slice %10 {offsets = [0, 8], sizes = [34, 8], strides = [1, 1]} : vector<34x96xf32> to vector<34x8xf32>
    %18 = vector.extract_strided_slice %10 {offsets = [0, 40], sizes = [34, 8], strides = [1, 1]} : vector<34x96xf32> to vector<34x8xf32>
    %cst_10 = arith.constant dense<0.000000e+00> : vector<34x34xf32>
    %19 = tpu.matmul %17, %18, %cst_10 {dimension_numbers = #tpu.dot_dimension_numbers<[1], [1], [0], [0], [0, 0, 1, 0], [], []>} : vector<34x8xf32>, vector<34x8xf32>, vector<34x34xf32> -> vector<34x34xf32>
    %cst_11 = arith.constant 0.353553385 : f32
    %20 = vector.broadcast %cst_11 : f32 to vector<34x34xf32>
    %21 = arith.mulf %19, %20 : vector<34x34xf32>
    %22 = arith.addf %21, %0 : vector<34x34xf32>
    %23 = vector.extract_strided_slice %10 {offsets = [0, 16], sizes = [34, 8], strides = [1, 1]} : vector<34x96xf32> to vector<34x8xf32>
    %24 = vector.extract_strided_slice %10 {offsets = [0, 48], sizes = [34, 8], strides = [1, 1]} : vector<34x96xf32> to vector<34x8xf32>
    %cst_12 = arith.constant dense<0.000000e+00> : vector<34x34xf32>
    %25 = tpu.matmul %23, %24, %cst_12 {dimension_numbers = #tpu.dot_dimension_numbers<[1], [1], [0], [0], [0, 0, 1, 0], [], []>} : vector<34x8xf32>, vector<34x8xf32>, vector<34x34xf32> -> vector<34x34xf32>
    %cst_13 = arith.constant 0.353553385 : f32
    %26 = vector.broadcast %cst_13 : f32 to vector<34x34xf32>
    %27 = arith.mulf %25, %26 : vector<34x34xf32>
    %28 = arith.addf %27, %0 : vector<34x34xf32>
    %29 = vector.extract_strided_slice %10 {offsets = [0, 24], sizes = [34, 8], strides = [1, 1]} : vector<34x96xf32> to vector<34x8xf32>
    %30 = vector.extract_strided_slice %10 {offsets = [0, 56], sizes = [34, 8], strides = [1, 1]} : vector<34x96xf32> to vector<34x8xf32>
    %cst_14 = arith.constant dense<0.000000e+00> : vector<34x34xf32>
    %31 = tpu.matmul %29, %30, %cst_14 {dimension_numbers = #tpu.dot_dimension_numbers<[1], [1], [0], [0], [0, 0, 1, 0], [], []>} : vector<34x8xf32>, vector<34x8xf32>, vector<34x34xf32> -> vector<34x34xf32>
    %cst_15 = arith.constant 0.353553385 : f32
    %32 = vector.broadcast %cst_15 : f32 to vector<34x34xf32>
    %33 = arith.mulf %31, %32 : vector<34x34xf32>
    %34 = arith.addf %33, %0 : vector<34x34xf32>
    %cst_16 = arith.constant dense<0xFF800000> : vector<34xf32>
    %35 = vector.multi_reduction <maximumf>, %16, %cst_16 [1] : vector<34x34xf32> to vector<34xf32>
    %36 = vector.shape_cast %35 : vector<34xf32> to vector<34x1xf32>
    %37 = vector.broadcast %36 : vector<34x1xf32> to vector<34x34xf32>
    %38 = arith.subf %16, %37 : vector<34x34xf32>
    %39 = math.exp %38 : vector<34x34xf32>
    %cst_17 = arith.constant dense<0.000000e+00> : vector<34xf32>
    %40 = vector.multi_reduction <add>, %39, %cst_17 [1] : vector<34x34xf32> to vector<34xf32>
    %41 = vector.shape_cast %40 : vector<34xf32> to vector<34x1xf32>
    %42 = vector.broadcast %41 : vector<34x1xf32> to vector<34x34xf32>
    %43 = arith.divf %39, %42 : vector<34x34xf32>
    %cst_18 = arith.constant dense<0xFF800000> : vector<34xf32>
    %44 = vector.multi_reduction <maximumf>, %22, %cst_18 [1] : vector<34x34xf32> to vector<34xf32>
    %45 = vector.shape_cast %44 : vector<34xf32> to vector<34x1xf32>
    %46 = vector.broadcast %45 : vector<34x1xf32> to vector<34x34xf32>
    %47 = arith.subf %22, %46 : vector<34x34xf32>
    %48 = math.exp %47 : vector<34x34xf32>
    %cst_19 = arith.constant dense<0.000000e+00> : vector<34xf32>
    %49 = vector.multi_reduction <add>, %48, %cst_19 [1] : vector<34x34xf32> to vector<34xf32>
    %50 = vector.shape_cast %49 : vector<34xf32> to vector<34x1xf32>
    %51 = vector.broadcast %50 : vector<34x1xf32> to vector<34x34xf32>
    %52 = arith.divf %48, %51 : vector<34x34xf32>
    %cst_20 = arith.constant dense<0xFF800000> : vector<34xf32>
    %53 = vector.multi_reduction <maximumf>, %28, %cst_20 [1] : vector<34x34xf32> to vector<34xf32>
    %54 = vector.shape_cast %53 : vector<34xf32> to vector<34x1xf32>
    %55 = vector.broadcast %54 : vector<34x1xf32> to vector<34x34xf32>
    %56 = arith.subf %28, %55 : vector<34x34xf32>
    %57 = math.exp %56 : vector<34x34xf32>
    %cst_21 = arith.constant dense<0.000000e+00> : vector<34xf32>
    %58 = vector.multi_reduction <add>, %57, %cst_21 [1] : vector<34x34xf32> to vector<34xf32>
    %59 = vector.shape_cast %58 : vector<34xf32> to vector<34x1xf32>
    %60 = vector.broadcast %59 : vector<34x1xf32> to vector<34x34xf32>
    %61 = arith.divf %57, %60 : vector<34x34xf32>
    %cst_22 = arith.constant dense<0xFF800000> : vector<34xf32>
    %62 = vector.multi_reduction <maximumf>, %34, %cst_22 [1] : vector<34x34xf32> to vector<34xf32>
    %63 = vector.shape_cast %62 : vector<34xf32> to vector<34x1xf32>
    %64 = vector.broadcast %63 : vector<34x1xf32> to vector<34x34xf32>
    %65 = arith.subf %34, %64 : vector<34x34xf32>
    %66 = math.exp %65 : vector<34x34xf32>
    %cst_23 = arith.constant dense<0.000000e+00> : vector<34xf32>
    %67 = vector.multi_reduction <add>, %66, %cst_23 [1] : vector<34x34xf32> to vector<34xf32>
    %68 = vector.shape_cast %67 : vector<34xf32> to vector<34x1xf32>
    %69 = vector.broadcast %68 : vector<34x1xf32> to vector<34x34xf32>
    %70 = arith.divf %66, %69 : vector<34x34xf32>
    %71 = vector.extract_strided_slice %10 {offsets = [0, 64], sizes = [34, 8], strides = [1, 1]} : vector<34x96xf32> to vector<34x8xf32>
    %cst_24 = arith.constant dense<0.000000e+00> : vector<34x8xf32>
    %72 = tpu.matmul %43, %71, %cst_24 {dimension_numbers = #tpu.dot_dimension_numbers<[1], [0], [0], [1], [0, 0, 1, 1], [], []>} : vector<34x34xf32>, vector<34x8xf32>, vector<34x8xf32> -> vector<34x8xf32>
    %73 = vector.extract_strided_slice %10 {offsets = [0, 72], sizes = [34, 8], strides = [1, 1]} : vector<34x96xf32> to vector<34x8xf32>
    %cst_25 = arith.constant dense<0.000000e+00> : vector<34x8xf32>
    %74 = tpu.matmul %52, %73, %cst_25 {dimension_numbers = #tpu.dot_dimension_numbers<[1], [0], [0], [1], [0, 0, 1, 1], [], []>} : vector<34x34xf32>, vector<34x8xf32>, vector<34x8xf32> -> vector<34x8xf32>
    %75 = vector.extract_strided_slice %10 {offsets = [0, 80], sizes = [34, 8], strides = [1, 1]} : vector<34x96xf32> to vector<34x8xf32>
    %cst_26 = arith.constant dense<0.000000e+00> : vector<34x8xf32>
    %76 = tpu.matmul %61, %75, %cst_26 {dimension_numbers = #tpu.dot_dimension_numbers<[1], [0], [0], [1], [0, 0, 1, 1], [], []>} : vector<34x34xf32>, vector<34x8xf32>, vector<34x8xf32> -> vector<34x8xf32>
    %77 = vector.extract_strided_slice %10 {offsets = [0, 88], sizes = [34, 8], strides = [1, 1]} : vector<34x96xf32> to vector<34x8xf32>
    %cst_27 = arith.constant dense<0.000000e+00> : vector<34x8xf32>
    %78 = tpu.matmul %70, %77, %cst_27 {dimension_numbers = #tpu.dot_dimension_numbers<[1], [0], [0], [1], [0, 0, 1, 1], [], []>} : vector<34x34xf32>, vector<34x8xf32>, vector<34x8xf32> -> vector<34x8xf32>
    %79 = tpu.concatenate %72, %74, %76, %78 in 1 : vector<34x8xf32>, vector<34x8xf32>, vector<34x8xf32>, vector<34x8xf32> -> vector<34x32xf32>
    %c168 = arith.constant 168 : index
    %c0_28 = arith.constant 0 : index
    %80 = vector.load %arg1[%c168, %c0_28] : memref<704x128xf32, #tpu.memory_space<vmem>>, vector<32x32xf32>
    %cst_29 = arith.constant dense<0.000000e+00> : vector<34x32xf32>
    %81 = tpu.matmul %79, %80, %cst_29 {dimension_numbers = #tpu.dot_dimension_numbers<[1], [0], [0], [1], [0, 0, 1, 1], [], []>} : vector<34x32xf32>, vector<32x32xf32>, vector<34x32xf32> -> vector<34x32xf32>
    %c200 = arith.constant 200 : index
    %c0_30 = arith.constant 0 : index
    %82 = vector.load %arg1[%c200, %c0_30] : memref<704x128xf32, #tpu.memory_space<vmem>>, vector<1x32xf32>
    %83 = vector.broadcast %82 : vector<1x32xf32> to vector<34x32xf32>
    %84 = arith.addf %81, %83 : vector<34x32xf32>
    %85 = arith.addf %5, %84 : vector<34x32xf32>
    %c208 = arith.constant 208 : index
    %c0_31 = arith.constant 0 : index
    %86 = vector.load %arg1[%c208, %c0_31] : memref<704x128xf32, #tpu.memory_space<vmem>>, vector<1x32xf32>
    %c216 = arith.constant 216 : index
    %c0_32 = arith.constant 0 : index
    %87 = vector.load %arg1[%c216, %c0_32] : memref<704x128xf32, #tpu.memory_space<vmem>>, vector<1x32xf32>
    %cst_33 = arith.constant dense<0.000000e+00> : vector<34xf32>
    %88 = vector.multi_reduction <add>, %85, %cst_33 [1] : vector<34x32xf32> to vector<34xf32>
    %89 = vector.shape_cast %88 : vector<34xf32> to vector<34x1xf32>
    %cst_34 = arith.constant 3.200000e+01 : f32
    %90 = vector.broadcast %cst_34 : f32 to vector<34x1xf32>
    %91 = arith.divf %89, %90 : vector<34x1xf32>
    %92 = vector.broadcast %91 : vector<34x1xf32> to vector<34x32xf32>
    %93 = arith.subf %85, %92 : vector<34x32xf32>
    %94 = arith.mulf %93, %93 : vector<34x32xf32>
    %cst_35 = arith.constant dense<0.000000e+00> : vector<34xf32>
    %95 = vector.multi_reduction <add>, %94, %cst_35 [1] : vector<34x32xf32> to vector<34xf32>
    %96 = vector.shape_cast %95 : vector<34xf32> to vector<34x1xf32>
    %cst_36 = arith.constant 3.200000e+01 : f32
    %97 = vector.broadcast %cst_36 : f32 to vector<34x1xf32>
    %98 = arith.divf %96, %97 : vector<34x1xf32>
    %99 = vector.broadcast %91 : vector<34x1xf32> to vector<34x32xf32>
    %100 = arith.subf %85, %99 : vector<34x32xf32>
    %cst_37 = arith.constant 9.99999974E-6 : f32
    %101 = vector.broadcast %cst_37 : f32 to vector<34x1xf32>
    %102 = arith.addf %98, %101 : vector<34x1xf32>
    %103 = math.rsqrt %102 : vector<34x1xf32>
    %104 = vector.broadcast %103 : vector<34x1xf32> to vector<34x32xf32>
    %105 = arith.mulf %100, %104 : vector<34x32xf32>
    %106 = vector.broadcast %86 : vector<1x32xf32> to vector<34x32xf32>
    %107 = arith.mulf %105, %106 : vector<34x32xf32>
    %108 = vector.broadcast %87 : vector<1x32xf32> to vector<34x32xf32>
    %109 = arith.addf %107, %108 : vector<34x32xf32>
    %c224 = arith.constant 224 : index
    %c0_38 = arith.constant 0 : index
    %110 = vector.load %arg1[%c224, %c0_38] : memref<704x128xf32, #tpu.memory_space<vmem>>, vector<32x64xf32>
    %cst_39 = arith.constant dense<0.000000e+00> : vector<34x64xf32>
    %111 = tpu.matmul %109, %110, %cst_39 {dimension_numbers = #tpu.dot_dimension_numbers<[1], [0], [0], [1], [0, 0, 1, 1], [], []>} : vector<34x32xf32>, vector<32x64xf32>, vector<34x64xf32> -> vector<34x64xf32>
    %c256 = arith.constant 256 : index
    %c0_40 = arith.constant 0 : index
    %112 = vector.load %arg1[%c256, %c0_40] : memref<704x128xf32, #tpu.memory_space<vmem>>, vector<1x64xf32>
    %113 = vector.broadcast %112 : vector<1x64xf32> to vector<34x64xf32>
    %114 = arith.addf %111, %113 : vector<34x64xf32>
    %cst_41 = arith.constant 5.000000e-01 : f32
    %115 = vector.broadcast %cst_41 : f32 to vector<34x64xf32>
    %116 = arith.mulf %115, %114 : vector<34x64xf32>
    %cst_42 = arith.constant 0.707106769 : f32
    %117 = vector.broadcast %cst_42 : f32 to vector<34x64xf32>
    %118 = arith.mulf %114, %117 : vector<34x64xf32>
    %119 = math.erf %118 : vector<34x64xf32>
    %cst_43 = arith.constant 1.000000e+00 : f32
    %120 = vector.broadcast %cst_43 : f32 to vector<34x64xf32>
    %121 = arith.addf %120, %119 : vector<34x64xf32>
    %122 = arith.mulf %116, %121 : vector<34x64xf32>
    %c264 = arith.constant 264 : index
    %c0_44 = arith.constant 0 : index
    %123 = vector.load %arg1[%c264, %c0_44] : memref<704x128xf32, #tpu.memory_space<vmem>>, vector<64x32xf32>
    %cst_45 = arith.constant dense<0.000000e+00> : vector<34x32xf32>
    %124 = tpu.matmul %122, %123, %cst_45 {dimension_numbers = #tpu.dot_dimension_numbers<[1], [0], [0], [1], [0, 0, 1, 1], [], []>} : vector<34x64xf32>, vector<64x32xf32>, vector<34x32xf32> -> vector<34x32xf32>
    %c328 = arith.constant 328 : index
    %c0_46 = arith.constant 0 : index
    %125 = vector.load %arg1[%c328, %c0_46] : memref<704x128xf32, #tpu.memory_space<vmem>>, vector<1x32xf32>
    %126 = vector.broadcast %125 : vector<1x32xf32> to vector<34x32xf32>
    %127 = arith.addf %124, %126 : vector<34x32xf32>
    %128 = arith.addf %109, %127 : vector<34x32xf32>
    %c336 = arith.constant 336 : index
    %c0_47 = arith.constant 0 : index
    %129 = vector.load %arg1[%c336, %c0_47] : memref<704x128xf32, #tpu.memory_space<vmem>>, vector<1x32xf32>
    %c344 = arith.constant 344 : index
    %c0_48 = arith.constant 0 : index
    %130 = vector.load %arg1[%c344, %c0_48] : memref<704x128xf32, #tpu.memory_space<vmem>>, vector<1x32xf32>
    %cst_49 = arith.constant dense<0.000000e+00> : vector<34xf32>
    %131 = vector.multi_reduction <add>, %128, %cst_49 [1] : vector<34x32xf32> to vector<34xf32>
    %132 = vector.shape_cast %131 : vector<34xf32> to vector<34x1xf32>
    %cst_50 = arith.constant 3.200000e+01 : f32
    %133 = vector.broadcast %cst_50 : f32 to vector<34x1xf32>
    %134 = arith.divf %132, %133 : vector<34x1xf32>
    %135 = vector.broadcast %134 : vector<34x1xf32> to vector<34x32xf32>
    %136 = arith.subf %128, %135 : vector<34x32xf32>
    %137 = arith.mulf %136, %136 : vector<34x32xf32>
    %cst_51 = arith.constant dense<0.000000e+00> : vector<34xf32>
    %138 = vector.multi_reduction <add>, %137, %cst_51 [1] : vector<34x32xf32> to vector<34xf32>
    %139 = vector.shape_cast %138 : vector<34xf32> to vector<34x1xf32>
    %cst_52 = arith.constant 3.200000e+01 : f32
    %140 = vector.broadcast %cst_52 : f32 to vector<34x1xf32>
    %141 = arith.divf %139, %140 : vector<34x1xf32>
    %142 = vector.broadcast %134 : vector<34x1xf32> to vector<34x32xf32>
    %143 = arith.subf %128, %142 : vector<34x32xf32>
    %cst_53 = arith.constant 9.99999974E-6 : f32
    %144 = vector.broadcast %cst_53 : f32 to vector<34x1xf32>
    %145 = arith.addf %141, %144 : vector<34x1xf32>
    %146 = math.rsqrt %145 : vector<34x1xf32>
    %147 = vector.broadcast %146 : vector<34x1xf32> to vector<34x32xf32>
    %148 = arith.mulf %143, %147 : vector<34x32xf32>
    %149 = vector.broadcast %129 : vector<1x32xf32> to vector<34x32xf32>
    %150 = arith.mulf %148, %149 : vector<34x32xf32>
    %151 = vector.broadcast %130 : vector<1x32xf32> to vector<34x32xf32>
    %152 = arith.addf %150, %151 : vector<34x32xf32>
    %c352 = arith.constant 352 : index
    %c0_54 = arith.constant 0 : index
    %153 = vector.load %arg1[%c352, %c0_54] : memref<704x128xf32, #tpu.memory_space<vmem>>, vector<32x96xf32>
    %cst_55 = arith.constant dense<0.000000e+00> : vector<34x96xf32>
    %154 = tpu.matmul %152, %153, %cst_55 {dimension_numbers = #tpu.dot_dimension_numbers<[1], [0], [0], [1], [0, 0, 1, 1], [], []>} : vector<34x32xf32>, vector<32x96xf32>, vector<34x96xf32> -> vector<34x96xf32>
    %c384 = arith.constant 384 : index
    %c0_56 = arith.constant 0 : index
    %155 = vector.load %arg1[%c384, %c0_56] : memref<704x128xf32, #tpu.memory_space<vmem>>, vector<1x96xf32>
    %156 = vector.broadcast %155 : vector<1x96xf32> to vector<34x96xf32>
    %157 = arith.addf %154, %156 : vector<34x96xf32>
    %158 = vector.extract_strided_slice %157 {offsets = [0, 0], sizes = [34, 8], strides = [1, 1]} : vector<34x96xf32> to vector<34x8xf32>
    %159 = vector.extract_strided_slice %157 {offsets = [0, 32], sizes = [34, 8], strides = [1, 1]} : vector<34x96xf32> to vector<34x8xf32>
    %cst_57 = arith.constant dense<0.000000e+00> : vector<34x34xf32>
    %160 = tpu.matmul %158, %159, %cst_57 {dimension_numbers = #tpu.dot_dimension_numbers<[1], [1], [0], [0], [0, 0, 1, 0], [], []>} : vector<34x8xf32>, vector<34x8xf32>, vector<34x34xf32> -> vector<34x34xf32>
    %cst_58 = arith.constant 0.353553385 : f32
    %161 = vector.broadcast %cst_58 : f32 to vector<34x34xf32>
    %162 = arith.mulf %160, %161 : vector<34x34xf32>
    %163 = arith.addf %162, %0 : vector<34x34xf32>
    %164 = vector.extract_strided_slice %157 {offsets = [0, 8], sizes = [34, 8], strides = [1, 1]} : vector<34x96xf32> to vector<34x8xf32>
    %165 = vector.extract_strided_slice %157 {offsets = [0, 40], sizes = [34, 8], strides = [1, 1]} : vector<34x96xf32> to vector<34x8xf32>
    %cst_59 = arith.constant dense<0.000000e+00> : vector<34x34xf32>
    %166 = tpu.matmul %164, %165, %cst_59 {dimension_numbers = #tpu.dot_dimension_numbers<[1], [1], [0], [0], [0, 0, 1, 0], [], []>} : vector<34x8xf32>, vector<34x8xf32>, vector<34x34xf32> -> vector<34x34xf32>
    %cst_60 = arith.constant 0.353553385 : f32
    %167 = vector.broadcast %cst_60 : f32 to vector<34x34xf32>
    %168 = arith.mulf %166, %167 : vector<34x34xf32>
    %169 = arith.addf %168, %0 : vector<34x34xf32>
    %170 = vector.extract_strided_slice %157 {offsets = [0, 16], sizes = [34, 8], strides = [1, 1]} : vector<34x96xf32> to vector<34x8xf32>
    %171 = vector.extract_strided_slice %157 {offsets = [0, 48], sizes = [34, 8], strides = [1, 1]} : vector<34x96xf32> to vector<34x8xf32>
    %cst_61 = arith.constant dense<0.000000e+00> : vector<34x34xf32>
    %172 = tpu.matmul %170, %171, %cst_61 {dimension_numbers = #tpu.dot_dimension_numbers<[1], [1], [0], [0], [0, 0, 1, 0], [], []>} : vector<34x8xf32>, vector<34x8xf32>, vector<34x34xf32> -> vector<34x34xf32>
    %cst_62 = arith.constant 0.353553385 : f32
    %173 = vector.broadcast %cst_62 : f32 to vector<34x34xf32>
    %174 = arith.mulf %172, %173 : vector<34x34xf32>
    %175 = arith.addf %174, %0 : vector<34x34xf32>
    %176 = vector.extract_strided_slice %157 {offsets = [0, 24], sizes = [34, 8], strides = [1, 1]} : vector<34x96xf32> to vector<34x8xf32>
    %177 = vector.extract_strided_slice %157 {offsets = [0, 56], sizes = [34, 8], strides = [1, 1]} : vector<34x96xf32> to vector<34x8xf32>
    %cst_63 = arith.constant dense<0.000000e+00> : vector<34x34xf32>
    %178 = tpu.matmul %176, %177, %cst_63 {dimension_numbers = #tpu.dot_dimension_numbers<[1], [1], [0], [0], [0, 0, 1, 0], [], []>} : vector<34x8xf32>, vector<34x8xf32>, vector<34x34xf32> -> vector<34x34xf32>
    %cst_64 = arith.constant 0.353553385 : f32
    %179 = vector.broadcast %cst_64 : f32 to vector<34x34xf32>
    %180 = arith.mulf %178, %179 : vector<34x34xf32>
    %181 = arith.addf %180, %0 : vector<34x34xf32>
    %cst_65 = arith.constant dense<0xFF800000> : vector<34xf32>
    %182 = vector.multi_reduction <maximumf>, %163, %cst_65 [1] : vector<34x34xf32> to vector<34xf32>
    %183 = vector.shape_cast %182 : vector<34xf32> to vector<34x1xf32>
    %184 = vector.broadcast %183 : vector<34x1xf32> to vector<34x34xf32>
    %185 = arith.subf %163, %184 : vector<34x34xf32>
    %186 = math.exp %185 : vector<34x34xf32>
    %cst_66 = arith.constant dense<0.000000e+00> : vector<34xf32>
    %187 = vector.multi_reduction <add>, %186, %cst_66 [1] : vector<34x34xf32> to vector<34xf32>
    %188 = vector.shape_cast %187 : vector<34xf32> to vector<34x1xf32>
    %189 = vector.broadcast %188 : vector<34x1xf32> to vector<34x34xf32>
    %190 = arith.divf %186, %189 : vector<34x34xf32>
    %cst_67 = arith.constant dense<0xFF800000> : vector<34xf32>
    %191 = vector.multi_reduction <maximumf>, %169, %cst_67 [1] : vector<34x34xf32> to vector<34xf32>
    %192 = vector.shape_cast %191 : vector<34xf32> to vector<34x1xf32>
    %193 = vector.broadcast %192 : vector<34x1xf32> to vector<34x34xf32>
    %194 = arith.subf %169, %193 : vector<34x34xf32>
    %195 = math.exp %194 : vector<34x34xf32>
    %cst_68 = arith.constant dense<0.000000e+00> : vector<34xf32>
    %196 = vector.multi_reduction <add>, %195, %cst_68 [1] : vector<34x34xf32> to vector<34xf32>
    %197 = vector.shape_cast %196 : vector<34xf32> to vector<34x1xf32>
    %198 = vector.broadcast %197 : vector<34x1xf32> to vector<34x34xf32>
    %199 = arith.divf %195, %198 : vector<34x34xf32>
    %cst_69 = arith.constant dense<0xFF800000> : vector<34xf32>
    %200 = vector.multi_reduction <maximumf>, %175, %cst_69 [1] : vector<34x34xf32> to vector<34xf32>
    %201 = vector.shape_cast %200 : vector<34xf32> to vector<34x1xf32>
    %202 = vector.broadcast %201 : vector<34x1xf32> to vector<34x34xf32>
    %203 = arith.subf %175, %202 : vector<34x34xf32>
    %204 = math.exp %203 : vector<34x34xf32>
    %cst_70 = arith.constant dense<0.000000e+00> : vector<34xf32>
    %205 = vector.multi_reduction <add>, %204, %cst_70 [1] : vector<34x34xf32> to vector<34xf32>
    %206 = vector.shape_cast %205 : vector<34xf32> to vector<34x1xf32>
    %207 = vector.broadcast %206 : vector<34x1xf32> to vector<34x34xf32>
    %208 = arith.divf %204, %207 : vector<34x34xf32>
    %cst_71 = arith.constant dense<0xFF800000> : vector<34xf32>
    %209 = vector.multi_reduction <maximumf>, %181, %cst_71 [1] : vector<34x34xf32> to vector<34xf32>
    %210 = vector.shape_cast %209 : vector<34xf32> to vector<34x1xf32>
    %211 = vector.broadcast %210 : vector<34x1xf32> to vector<34x34xf32>
    %212 = arith.subf %181, %211 : vector<34x34xf32>
    %213 = math.exp %212 : vector<34x34xf32>
    %cst_72 = arith.constant dense<0.000000e+00> : vector<34xf32>
    %214 = vector.multi_reduction <add>, %213, %cst_72 [1] : vector<34x34xf32> to vector<34xf32>
    %215 = vector.shape_cast %214 : vector<34xf32> to vector<34x1xf32>
    %216 = vector.broadcast %215 : vector<34x1xf32> to vector<34x34xf32>
    %217 = arith.divf %213, %216 : vector<34x34xf32>
    %218 = vector.extract_strided_slice %157 {offsets = [0, 64], sizes = [34, 8], strides = [1, 1]} : vector<34x96xf32> to vector<34x8xf32>
    %cst_73 = arith.constant dense<0.000000e+00> : vector<34x8xf32>
    %219 = tpu.matmul %190, %218, %cst_73 {dimension_numbers = #tpu.dot_dimension_numbers<[1], [0], [0], [1], [0, 0, 1, 1], [], []>} : vector<34x34xf32>, vector<34x8xf32>, vector<34x8xf32> -> vector<34x8xf32>
    %220 = vector.extract_strided_slice %157 {offsets = [0, 72], sizes = [34, 8], strides = [1, 1]} : vector<34x96xf32> to vector<34x8xf32>
    %cst_74 = arith.constant dense<0.000000e+00> : vector<34x8xf32>
    %221 = tpu.matmul %199, %220, %cst_74 {dimension_numbers = #tpu.dot_dimension_numbers<[1], [0], [0], [1], [0, 0, 1, 1], [], []>} : vector<34x34xf32>, vector<34x8xf32>, vector<34x8xf32> -> vector<34x8xf32>
    %222 = vector.extract_strided_slice %157 {offsets = [0, 80], sizes = [34, 8], strides = [1, 1]} : vector<34x96xf32> to vector<34x8xf32>
    %cst_75 = arith.constant dense<0.000000e+00> : vector<34x8xf32>
    %223 = tpu.matmul %208, %222, %cst_75 {dimension_numbers = #tpu.dot_dimension_numbers<[1], [0], [0], [1], [0, 0, 1, 1], [], []>} : vector<34x34xf32>, vector<34x8xf32>, vector<34x8xf32> -> vector<34x8xf32>
    %224 = vector.extract_strided_slice %157 {offsets = [0, 88], sizes = [34, 8], strides = [1, 1]} : vector<34x96xf32> to vector<34x8xf32>
    %cst_76 = arith.constant dense<0.000000e+00> : vector<34x8xf32>
    %225 = tpu.matmul %217, %224, %cst_76 {dimension_numbers = #tpu.dot_dimension_numbers<[1], [0], [0], [1], [0, 0, 1, 1], [], []>} : vector<34x34xf32>, vector<34x8xf32>, vector<34x8xf32> -> vector<34x8xf32>
    %226 = tpu.concatenate %219, %221, %223, %225 in 1 : vector<34x8xf32>, vector<34x8xf32>, vector<34x8xf32>, vector<34x8xf32> -> vector<34x32xf32>
    %c392 = arith.constant 392 : index
    %c0_77 = arith.constant 0 : index
    %227 = vector.load %arg1[%c392, %c0_77] : memref<704x128xf32, #tpu.memory_space<vmem>>, vector<32x32xf32>
    %cst_78 = arith.constant dense<0.000000e+00> : vector<34x32xf32>
    %228 = tpu.matmul %226, %227, %cst_78 {dimension_numbers = #tpu.dot_dimension_numbers<[1], [0], [0], [1], [0, 0, 1, 1], [], []>} : vector<34x32xf32>, vector<32x32xf32>, vector<34x32xf32> -> vector<34x32xf32>
    %c424 = arith.constant 424 : index
    %c0_79 = arith.constant 0 : index
    %229 = vector.load %arg1[%c424, %c0_79] : memref<704x128xf32, #tpu.memory_space<vmem>>, vector<1x32xf32>
    %230 = vector.broadcast %229 : vector<1x32xf32> to vector<34x32xf32>
    %231 = arith.addf %228, %230 : vector<34x32xf32>
    %232 = arith.addf %152, %231 : vector<34x32xf32>
    %c432 = arith.constant 432 : index
    %c0_80 = arith.constant 0 : index
    %233 = vector.load %arg1[%c432, %c0_80] : memref<704x128xf32, #tpu.memory_space<vmem>>, vector<1x32xf32>
    %c440 = arith.constant 440 : index
    %c0_81 = arith.constant 0 : index
    %234 = vector.load %arg1[%c440, %c0_81] : memref<704x128xf32, #tpu.memory_space<vmem>>, vector<1x32xf32>
    %cst_82 = arith.constant dense<0.000000e+00> : vector<34xf32>
    %235 = vector.multi_reduction <add>, %232, %cst_82 [1] : vector<34x32xf32> to vector<34xf32>
    %236 = vector.shape_cast %235 : vector<34xf32> to vector<34x1xf32>
    %cst_83 = arith.constant 3.200000e+01 : f32
    %237 = vector.broadcast %cst_83 : f32 to vector<34x1xf32>
    %238 = arith.divf %236, %237 : vector<34x1xf32>
    %239 = vector.broadcast %238 : vector<34x1xf32> to vector<34x32xf32>
    %240 = arith.subf %232, %239 : vector<34x32xf32>
    %241 = arith.mulf %240, %240 : vector<34x32xf32>
    %cst_84 = arith.constant dense<0.000000e+00> : vector<34xf32>
    %242 = vector.multi_reduction <add>, %241, %cst_84 [1] : vector<34x32xf32> to vector<34xf32>
    %243 = vector.shape_cast %242 : vector<34xf32> to vector<34x1xf32>
    %cst_85 = arith.constant 3.200000e+01 : f32
    %244 = vector.broadcast %cst_85 : f32 to vector<34x1xf32>
    %245 = arith.divf %243, %244 : vector<34x1xf32>
    %246 = vector.broadcast %238 : vector<34x1xf32> to vector<34x32xf32>
    %247 = arith.subf %232, %246 : vector<34x32xf32>
    %cst_86 = arith.constant 9.99999974E-6 : f32
    %248 = vector.broadcast %cst_86 : f32 to vector<34x1xf32>
    %249 = arith.addf %245, %248 : vector<34x1xf32>
    %250 = math.rsqrt %249 : vector<34x1xf32>
    %251 = vector.broadcast %250 : vector<34x1xf32> to vector<34x32xf32>
    %252 = arith.mulf %247, %251 : vector<34x32xf32>
    %253 = vector.broadcast %233 : vector<1x32xf32> to vector<34x32xf32>
    %254 = arith.mulf %252, %253 : vector<34x32xf32>
    %255 = vector.broadcast %234 : vector<1x32xf32> to vector<34x32xf32>
    %256 = arith.addf %254, %255 : vector<34x32xf32>
    %c448 = arith.constant 448 : index
    %c0_87 = arith.constant 0 : index
    %257 = vector.load %arg1[%c448, %c0_87] : memref<704x128xf32, #tpu.memory_space<vmem>>, vector<32x64xf32>
    %cst_88 = arith.constant dense<0.000000e+00> : vector<34x64xf32>
    %258 = tpu.matmul %256, %257, %cst_88 {dimension_numbers = #tpu.dot_dimension_numbers<[1], [0], [0], [1], [0, 0, 1, 1], [], []>} : vector<34x32xf32>, vector<32x64xf32>, vector<34x64xf32> -> vector<34x64xf32>
    %c480 = arith.constant 480 : index
    %c0_89 = arith.constant 0 : index
    %259 = vector.load %arg1[%c480, %c0_89] : memref<704x128xf32, #tpu.memory_space<vmem>>, vector<1x64xf32>
    %260 = vector.broadcast %259 : vector<1x64xf32> to vector<34x64xf32>
    %261 = arith.addf %258, %260 : vector<34x64xf32>
    %cst_90 = arith.constant 5.000000e-01 : f32
    %262 = vector.broadcast %cst_90 : f32 to vector<34x64xf32>
    %263 = arith.mulf %262, %261 : vector<34x64xf32>
    %cst_91 = arith.constant 0.707106769 : f32
    %264 = vector.broadcast %cst_91 : f32 to vector<34x64xf32>
    %265 = arith.mulf %261, %264 : vector<34x64xf32>
    %266 = math.erf %265 : vector<34x64xf32>
    %cst_92 = arith.constant 1.000000e+00 : f32
    %267 = vector.broadcast %cst_92 : f32 to vector<34x64xf32>
    %268 = arith.addf %267, %266 : vector<34x64xf32>
    %269 = arith.mulf %263, %268 : vector<34x64xf32>
    %c488 = arith.constant 488 : index
    %c0_93 = arith.constant 0 : index
    %270 = vector.load %arg1[%c488, %c0_93] : memref<704x128xf32, #tpu.memory_space<vmem>>, vector<64x32xf32>
    %cst_94 = arith.constant dense<0.000000e+00> : vector<34x32xf32>
    %271 = tpu.matmul %269, %270, %cst_94 {dimension_numbers = #tpu.dot_dimension_numbers<[1], [0], [0], [1], [0, 0, 1, 1], [], []>} : vector<34x64xf32>, vector<64x32xf32>, vector<34x32xf32> -> vector<34x32xf32>
    %c552 = arith.constant 552 : index
    %c0_95 = arith.constant 0 : index
    %272 = vector.load %arg1[%c552, %c0_95] : memref<704x128xf32, #tpu.memory_space<vmem>>, vector<1x32xf32>
    %273 = vector.broadcast %272 : vector<1x32xf32> to vector<34x32xf32>
    %274 = arith.addf %271, %273 : vector<34x32xf32>
    %275 = arith.addf %256, %274 : vector<34x32xf32>
    %c560 = arith.constant 560 : index
    %c0_96 = arith.constant 0 : index
    %276 = vector.load %arg1[%c560, %c0_96] : memref<704x128xf32, #tpu.memory_space<vmem>>, vector<1x32xf32>
    %c568 = arith.constant 568 : index
    %c0_97 = arith.constant 0 : index
    %277 = vector.load %arg1[%c568, %c0_97] : memref<704x128xf32, #tpu.memory_space<vmem>>, vector<1x32xf32>
    %cst_98 = arith.constant dense<0.000000e+00> : vector<34xf32>
    %278 = vector.multi_reduction <add>, %275, %cst_98 [1] : vector<34x32xf32> to vector<34xf32>
    %279 = vector.shape_cast %278 : vector<34xf32> to vector<34x1xf32>
    %cst_99 = arith.constant 3.200000e+01 : f32
    %280 = vector.broadcast %cst_99 : f32 to vector<34x1xf32>
    %281 = arith.divf %279, %280 : vector<34x1xf32>
    %282 = vector.broadcast %281 : vector<34x1xf32> to vector<34x32xf32>
    %283 = arith.subf %275, %282 : vector<34x32xf32>
    %284 = arith.mulf %283, %283 : vector<34x32xf32>
    %cst_100 = arith.constant dense<0.000000e+00> : vector<34xf32>
    %285 = vector.multi_reduction <add>, %284, %cst_100 [1] : vector<34x32xf32> to vector<34xf32>
    %286 = vector.shape_cast %285 : vector<34xf32> to vector<34x1xf32>
    %cst_101 = arith.constant 3.200000e+01 : f32
    %287 = vector.broadcast %cst_101 : f32 to vector<34x1xf32>
    %288 = arith.divf %286, %287 : vector<34x1xf32>
    %289 = vector.broadcast %281 : vector<34x1xf32> to vector<34x32xf32>
    %290 = arith.subf %275, %289 : vector<34x32xf32>
    %cst_102 = arith.constant 9.99999974E-6 : f32
    %291 = vector.broadcast %cst_102 : f32 to vector<34x1xf32>
    %292 = arith.addf %288, %291 : vector<34x1xf32>
    %293 = math.rsqrt %292 : vector<34x1xf32>
    %294 = vector.broadcast %293 : vector<34x1xf32> to vector<34x32xf32>
    %295 = arith.mulf %290, %294 : vector<34x32xf32>
    %296 = vector.broadcast %276 : vector<1x32xf32> to vector<34x32xf32>
    %297 = arith.mulf %295, %296 : vector<34x32xf32>
    %298 = vector.broadcast %277 : vector<1x32xf32> to vector<34x32xf32>
    %299 = arith.addf %297, %298 : vector<34x32xf32>
    %300 = vector.extract_strided_slice %299 {offsets = [0, 0], sizes = [1, 32], strides = [1, 1]} : vector<34x32xf32> to vector<1x32xf32>
    %301 = vector.extract_strided_slice %299 {offsets = [17, 0], sizes = [1, 32], strides = [1, 1]} : vector<34x32xf32> to vector<1x32xf32>
    %302 = tpu.concatenate %300, %301 in 0 : vector<1x32xf32>, vector<1x32xf32> -> vector<2x32xf32>
    %c576 = arith.constant 576 : index
    %c0_103 = arith.constant 0 : index
    %303 = vector.load %arg1[%c576, %c0_103] : memref<704x128xf32, #tpu.memory_space<vmem>>, vector<1x32xf32>
    %c584 = arith.constant 584 : index
    %c0_104 = arith.constant 0 : index
    %304 = vector.load %arg1[%c584, %c0_104] : memref<704x128xf32, #tpu.memory_space<vmem>>, vector<1x32xf32>
    %cst_105 = arith.constant dense<0.000000e+00> : vector<2xf32>
    %305 = vector.multi_reduction <add>, %302, %cst_105 [1] : vector<2x32xf32> to vector<2xf32>
    %306 = vector.shape_cast %305 : vector<2xf32> to vector<2x1xf32>
    %cst_106 = arith.constant 3.200000e+01 : f32
    %307 = vector.broadcast %cst_106 : f32 to vector<2x1xf32>
    %308 = arith.divf %306, %307 : vector<2x1xf32>
    %309 = vector.broadcast %308 : vector<2x1xf32> to vector<2x32xf32>
    %310 = arith.subf %302, %309 : vector<2x32xf32>
    %311 = arith.mulf %310, %310 : vector<2x32xf32>
    %cst_107 = arith.constant dense<0.000000e+00> : vector<2xf32>
    %312 = vector.multi_reduction <add>, %311, %cst_107 [1] : vector<2x32xf32> to vector<2xf32>
    %313 = vector.shape_cast %312 : vector<2xf32> to vector<2x1xf32>
    %cst_108 = arith.constant 3.200000e+01 : f32
    %314 = vector.broadcast %cst_108 : f32 to vector<2x1xf32>
    %315 = arith.divf %313, %314 : vector<2x1xf32>
    %316 = vector.broadcast %308 : vector<2x1xf32> to vector<2x32xf32>
    %317 = arith.subf %302, %316 : vector<2x32xf32>
    %cst_109 = arith.constant 9.99999974E-6 : f32
    %318 = vector.broadcast %cst_109 : f32 to vector<2x1xf32>
    %319 = arith.addf %315, %318 : vector<2x1xf32>
    %320 = math.rsqrt %319 : vector<2x1xf32>
    %321 = vector.broadcast %320 : vector<2x1xf32> to vector<2x32xf32>
    %322 = arith.mulf %317, %321 : vector<2x32xf32>
    %323 = vector.broadcast %303 : vector<1x32xf32> to vector<2x32xf32>
    %324 = arith.mulf %322, %323 : vector<2x32xf32>
    %325 = vector.broadcast %304 : vector<1x32xf32> to vector<2x32xf32>
    %326 = arith.addf %324, %325 : vector<2x32xf32>
    %c592 = arith.constant 592 : index
    %c0_110 = arith.constant 0 : index
    %327 = vector.load %arg1[%c592, %c0_110] : memref<704x128xf32, #tpu.memory_space<vmem>>, vector<32x64xf32>
    %cst_111 = arith.constant dense<0.000000e+00> : vector<2x64xf32>
    %328 = tpu.matmul %326, %327, %cst_111 {dimension_numbers = #tpu.dot_dimension_numbers<[1], [0], [0], [1], [0, 0, 1, 1], [], []>} : vector<2x32xf32>, vector<32x64xf32>, vector<2x64xf32> -> vector<2x64xf32>
    %c624 = arith.constant 624 : index
    %c0_112 = arith.constant 0 : index
    %329 = vector.load %arg1[%c624, %c0_112] : memref<704x128xf32, #tpu.memory_space<vmem>>, vector<1x64xf32>
    %330 = vector.broadcast %329 : vector<1x64xf32> to vector<2x64xf32>
    %331 = arith.addf %328, %330 : vector<2x64xf32>
    %cst_113 = arith.constant 5.000000e-01 : f32
    %332 = vector.broadcast %cst_113 : f32 to vector<2x64xf32>
    %333 = arith.mulf %332, %331 : vector<2x64xf32>
    %cst_114 = arith.constant 0.707106769 : f32
    %334 = vector.broadcast %cst_114 : f32 to vector<2x64xf32>
    %335 = arith.mulf %331, %334 : vector<2x64xf32>
    %336 = math.erf %335 : vector<2x64xf32>
    %cst_115 = arith.constant 1.000000e+00 : f32
    %337 = vector.broadcast %cst_115 : f32 to vector<2x64xf32>
    %338 = arith.addf %337, %336 : vector<2x64xf32>
    %339 = arith.mulf %333, %338 : vector<2x64xf32>
    %c632 = arith.constant 632 : index
    %c0_116 = arith.constant 0 : index
    %340 = vector.load %arg1[%c632, %c0_116] : memref<704x128xf32, #tpu.memory_space<vmem>>, vector<64x128xf32>
    %cst_117 = arith.constant dense<0.000000e+00> : vector<2x128xf32>
    %341 = tpu.matmul %339, %340, %cst_117 {dimension_numbers = #tpu.dot_dimension_numbers<[1], [0], [0], [1], [0, 0, 1, 1], [], []>} : vector<2x64xf32>, vector<64x128xf32>, vector<2x128xf32> -> vector<2x128xf32>
    %c696 = arith.constant 696 : index
    %c0_118 = arith.constant 0 : index
    %342 = vector.load %arg1[%c696, %c0_118] : memref<704x128xf32, #tpu.memory_space<vmem>>, vector<1x128xf32>
    %343 = vector.broadcast %342 : vector<1x128xf32> to vector<2x128xf32>
    %344 = arith.addf %341, %343 : vector<2x128xf32>
    %c0_119 = arith.constant 0 : index
    %c0_120 = arith.constant 0 : index
    %345 = vector.load %arg2[%c0_119, %c0_120] : memref<2x128xf32, #tpu.memory_space<vmem>>, vector<2x128xf32>
    tpu.vector_store %arg2[%c0_119, %c0_120], %344 {strides = array<i32>} : memref<2x128xf32, #tpu.memory_space<vmem>>, vector<2x128xf32>,
    return
  }
}

</mosaic_0001>

<bundles_post_ra>
// kernel: vit_forward.1
= control target key start
LH: loop header
LB: loop body
LE: loop exit
PB: predicated region body
PF: predicated region fallthrough
CT: control target
= control target key end

     0   :  { %v5690_v1 = vmov 0.0   ;;  %vm5691_vm0 = vmmov 0   ;;  %s7586_s0 = inlined_call_operand.vmem [shape: f32[34,48], index: 0, kind: input, shape index: {}]   ;;  %s7587_s1 = inlined_call_operand.vmem [shape: f32[704,128], index: 1, kind: input, shape index: {}]   ;;  %s7588_s2 = inlined_call_operand.hbm [shape: f32[2,128], index: 2, kind: output, shape index: {}]  }
   0x1   :  { %v27_v0 = vld [vmem:[%s7587_s1 + $0x28] sm:$0xff]  ;;  %4771 = vmatprep.subr.mxu0 %v5690_v1  ;;  %v26_v2 = vld [vmem:[%s7587_s1 + $0x20] sm:$0xff]  ;;  %4783 = vmatprep.mubr.msk.f32.mxu0 %vm5691_vm0, %v5690_v1  ;;  %v25_v3 = vld [vmem:[%s7587_s1 + $0x18] sm:$0xff] }
   0x2   :  { %4772 = vmatpush3.msra.mxu0 %v27_v0  ;;  %4798 = vmatprep.subr.mxu1 %v5690_v1  ;;  %v142_v4 = vld [vmem:[%s7587_s1 + $0x98] sm:$0xff]  ;;  %v141_v5 = vld [vmem:[%s7587_s1 + $0x90] sm:$0xff] }
   0x3   :  { %4773 = vmatprep.subr.mxu0 %v5690_v1  ;;  %4806 = vmatprep.mubr.msk.f32.mxu1 %vm5691_vm0, %v5690_v1 }
   0x4   :  { %4774 = vmatpush3.msra.mxu0 %v26_v2  ;;  %4799 = vmatpush3.msra.mxu1 %v142_v4 }
   0x5   :  { %7 = vsyncpa [#allocation3], 0  ;;  %4775 = vmatprep.subr.mxu0 %v5690_v1  ;;  %v24_v6 = vld [vmem:[%s7587_s1 + $0x10] sm:$0xff]  ;;  %4800 = vmatprep.subr.mxu1 %v5690_v1  ;;  %v23_v7 = vld [vmem:[%s7587_s1 + $0x8] sm:$0xff]  ;;  %vm33_vm1 = vcmask 392192   ;;  %vm148_vm2 = vcmask 261120  }
   0x6   :  { %4776 = vmatpush3.msra.mxu0 %v25_v3  ;;  %4801 = vmatpush3.msra.mxu1 %v141_v5  ;;  %v22_v8 = vld [vmem:[%s7587_s1] sm:$0xff]  ;;  %v18_v10 = vld [vmem:[%s7586_s0 + $0x8] sm:$0xff]  ;;  %v19_v11 = vld [vmem:[%s7586_s0 + $0x10] sm:$0xff]  ;;  %s5692_s22 = smov 88   ;;  %s5693_s23 = smov 96   ;;  %vm269_vm3 = vcmask 64512  }
   0x7   :  { %4777 = vmatprep.subr.mxu0 %v5690_v1  ;;  %4802 = vmatprep.subr.mxu1 %v5690_v1  ;;  %v17_v9 = vld [vmem:[%s7586_s0] sm:$0xff]  ;;  %v20_v12 = vld [vmem:[%s7586_s0 + $0x18] sm:$0xff]  ;;  %v140_v14 = vld [vmem:[%s7587_s1 + $0x88] sm:$0xff]  ;;  %s5694_s24 = smov 120   ;;  %s5695_s25 = smov 72   ;;  %vm1061_vm4 = vcmask 1041408  }
   0x8   :  { %4778 = vmatpush3.msra.mxu0 %v24_v6  ;;  %v21_v13 = vld [vmem:[%s7586_s0 + $0x20] sm:$0x3]  ;;  %4803 = vmatpush3.msra.mxu1 %v140_v14  ;;  %v28_v16 = vld [vmem:[%s7587_s1 + $0x30] sm:$0xff]  ;;  %v29_v20 = vld [vmem:[%s7587_s1 + $0x38] sm:$0xff]  ;;  %s5696_s26 = smov 80   ;;  %s5697_s27 = smov 112  }
   0x9   :  { %4779 = vmatprep.subr.mxu0 %v5690_v1  ;;  %4804 = vmatprep.subr.mxu1 %v5690_v1  ;;  %v139_v15 = vld [vmem:[%s7587_s1 + $0x80] sm:$0xff]  ;;  %v31_v28 = vld [vmem:[%s7587_s1 + $0x48] sm:$0xff]  ;;  %v32_v32 = vld [vmem:[%s7587_s1 + $0x50] sm:$0x3]  ;;  %s5698_s28 = smov 104   ;;  %s5699_s29 = smov 64  }
   0xa   :  { %4780 = vmatpush3.msra.mxu0 %v23_v7  ;;  %4805 = vmatpush3.msra.mxu1 %v139_v15  ;;  %v30_v24 = vld [vmem:[%s7587_s1 + $0x40] sm:$0xff]  ;;  %s5700_s30 = smov 56   ;;  %s5701_s3 = smov 48   ;;  %vm810_vm5 = vcmask 277504   ;;  %vm823_vm6 = vcmask 271360   ;;  %vm1582_vm7 = vcmask 130048  }
   0xb   :  { %4781 = vmatprep.subr.mxu0 %v5690_v1  ;;  %4821 = vmatprep.subr.mxu1 %v5690_v1  ;;  %v4316_v38 = vld [vmem:[%s7587_s1 + $0xa0] ss:$0 sm:$0xff]  ;;  %s5702_s4 = smov 40   ;;  %s5703_s14 = smov 8   ;;  %vm1588_vm8 = vcmask 195584   ;;  %vm1727_vm9 = vcmask 254976  }
   0xc   :  { %4782 = vmatpush3.msra.mxu0 %v22_v8  ;;  %s5704_s6 = smov 16   ;;  %s5705_s7 = smov 24   ;;  %vm1952_vm10 = vcmask 523264   ;;  %vm4096_vm11 = vcmask 1040384  }
   0xd   :  { %4784 = vmatmul.mubr.msk.f32.vlgmr.msra.gmra.mxu0 %vm33_vm1, %v17_v9  ;;  %4846 = vmatprep.subr.mxu0 %v5690_v1 }
   0xe   :  { %4786 = vmatprep.mubr.msk.f32.mxu0 %vm5691_vm0, %v5690_v1 }
  0x11   :  { %4787 = vmatmul.mubr.msk.f32.gmra.mxu0 %vm33_vm1, %v18_v10 }
  0x12   :  { %4789 = vmatprep.mubr.msk.f32.mxu0 %vm5691_vm0, %v5690_v1 }
  0x15   :  { %4790 = vmatmul.mubr.msk.f32.gmra.mxu0 %vm33_vm1, %v19_v11 }
  0x16   :  { %4792 = vmatprep.mubr.msk.f32.mxu0 %vm5691_vm0, %v5690_v1 }
  0x19   :  { %4793 = vmatmul.mubr.msk.f32.gmra.mxu0 %vm33_vm1, %v20_v12 }
  0x1a   :  { %4795 = vmatprep.mubr.msk.f32.mxu0 %vm5691_vm0, %v5690_v1 }
  0x1d   :  { %4796 = vmatmul.mubr.msk.f32.gmra.mxu0 %vm33_vm1, %v21_v13 }
  0x1e   :  { %4856 = vmatprep.mubr.msk.f32.mxu0 %vm5691_vm0, %v5690_v1 }
  0xcd   :  { %v115_v17 = vpop.f32.mrf.mxu0 }
  0xce   :  { %v5801_v18 = vadd.f32 %v115_v17, %v28_v16 }
  0xcf   :  { %v4785_v19 = vpop.f32.mrf.mxu0 }
  0xd0   :  { %4807 = vmatmul.mubr.msk.f32.vlgmr.msra.gmra.mxu1 %vm148_vm2, %v5801_v18 }
  0xd1   :  { %v120_v21 = vpop.f32.mrf.mxu0  ;;  %4809 = vmatprep.mubr.msk.f32.mxu1 %vm5691_vm0, %v5690_v1 }
  0xd2   :  { %v5810_v22 = vadd.f32 %v120_v21, %v29_v20 }
  0xd3   :  { %v4788_v23 = vpop.f32.mrf.mxu0 }
  0xd4   :  { %4810 = vmatmul.mubr.msk.f32.gmra.mxu1 %vm148_vm2, %v5810_v22 }
  0xd5   :  { %v125_v25 = vpop.f32.mrf.mxu0  ;;  %4812 = vmatprep.mubr.msk.f32.mxu1 %vm5691_vm0, %v5690_v1 }
  0xd6   :  { %v5819_v26 = vadd.f32 %v125_v25, %v30_v24 }
  0xd7   :  { %v4791_v27 = vpop.f32.mrf.mxu0 }
  0xd8   :  { %4813 = vmatmul.mubr.msk.f32.gmra.mxu1 %vm148_vm2, %v5819_v26 }
  0xd9   :  { %v130_v29 = vpop.f32.mrf.mxu0  ;;  %4815 = vmatprep.mubr.msk.f32.mxu1 %vm5691_vm0, %v5690_v1 }
  0xda   :  { %v5828_v30 = vadd.f32 %v130_v29, %v31_v28 }
  0xdb   :  { %v4794_v31 = vpop.f32.mrf.mxu0 }
  0xdc   :  { %4816 = vmatmul.mubr.msk.f32.gmra.mxu1 %vm148_vm2, %v5828_v30 }
  0xdd   :  { %v135_v33 = vpop.f32.mrf.mxu0  ;;  %4818 = vmatprep.mubr.msk.f32.mxu1 %vm5691_vm0, %v5690_v1 }
  0xde   :  { %v5837_v34 = vadd.f32 %v135_v33, %v32_v32 }
  0xdf   :  { %v4797_v35 = vpop.f32.mrf.mxu0 }
  0xe0   :  { %4819 = vmatmul.mubr.msk.f32.gmra.mxu1 %vm148_vm2, %v5837_v34 }
  0xe1   :  { %4831 = vmatprep.mubr.msk.f32.mxu1 %vm5691_vm0, %v5690_v1 }
 0x190   :  { %v230_v36 = vpop.f32.mrf.mxu1 }
 0x191   :  { %v5868_v51 = vadd.f32 %v4316_v38, %v230_v36 }
 0x192   :  { %v4808_v37 = vpop.f32.mrf.mxu1 }
 0x194   :  { %v235_v39 = vpop.f32.mrf.mxu1 }
 0x195   :  { %v5846_v40 = vadd.f32 %v4316_v38, %v235_v39 }
 0x196   :  { %v4811_v41 = vpop.f32.mrf.mxu1 }
 0x197   :  { %402 = vrot.lane.b32.xlu1 %v5846_v40, %s5692_s22  ;;  %261 = vrot.lane.b32.xlu0 %v5846_v40, %s5693_s23 }
 0x198   :  { %v240_v42 = vpop.f32.mrf.mxu1 }
 0x199   :  { %v5852_v43 = vadd.f32 %v4316_v38, %v240_v42 }
 0x19a   :  { %v4814_v44 = vpop.f32.mrf.mxu1 }
 0x19b   :  { %404 = vrot.lane.b32.xlu1 %v5852_v43, %s5692_s22  ;;  %263 = vrot.lane.b32.xlu0 %v5852_v43, %s5693_s23 }
 0x19c   :  { %v245_v45 = vpop.f32.mrf.mxu1 }
 0x19d   :  { %v5858_v46 = vadd.f32 %v4316_v38, %v245_v45  ;;  %v6086_v45 = vld [vmem:[%s7587_s1 + $0x58] sm:$0xff] }
 0x19e   :  { %v4817_v47 = vpop.f32.mrf.mxu1 }
 0x19f   :  { %265 = vrot.lane.b32.xlu1 %v5858_v46, %s5693_s23 }
 0x1a0   :  { %v250_v48 = vpop.f32.mrf.mxu1 }
 0x1a1   :  { %v5862_v49 = vadd.f32 %v4316_v38, %v250_v48 }
 0x1a2   :  { %v4820_v50 = vpop.f32.mrf.mxu1 }
 0x1a3   :  { %406 = vrot.lane.b32.xlu1 %v5858_v46, %s5692_s22  ;;  %267 = vrot.lane.b32.xlu0 %v5862_v49, %s5693_s23 }
 0x1a7   :  { %400 = vrot.lane.b32.xlu1 %v5868_v51, %s5692_s22  ;;  %408 = vrot.lane.b32.xlu0 %v5862_v49, %s5692_s22 }
 0x1ab   :  { %392 = vrot.lane.b32.xlu1 %v5846_v40, %s5694_s24  ;;  %259 = vrot.lane.b32.xlu0 %v5868_v51, %s5693_s23 }
 0x1af   :  { %686 = vrot.lane.b32.xlu1 %v5858_v46, %s5695_s25  ;;  %390 = vrot.lane.b32.xlu0 %v5868_v51, %s5694_s24 }
 0x1b3   :  { %548 = vrot.lane.b32.xlu1 %v5862_v49, %s5696_s26  ;;  %546 = vrot.lane.b32.xlu0 %v5858_v46, %s5696_s26 }
 0x1b7   :  { %544 = vrot.lane.b32.xlu1 %v5852_v43, %s5696_s26  ;;  %394 = vrot.lane.b32.xlu0 %v5852_v43, %s5694_s24 }
 0x1bb   :  { %396 = vrot.lane.b32.xlu1 %v5858_v46, %s5694_s24  ;;  %688 = vrot.lane.b32.xlu0 %v5862_v49, %s5695_s25 }
 0x1bf   :  { %682 = vrot.lane.b32.xlu1 %v5846_v40, %s5695_s25  ;;  %684 = vrot.lane.b32.xlu0 %v5852_v43, %s5695_s25 }
 0x1c3   :  { %540 = vrot.lane.b32.xlu1 %v5868_v51, %s5696_s26  ;;  %542 = vrot.lane.b32.xlu0 %v5846_v40, %s5696_s26 }
 0x1c7   :  { %530 = vrot.lane.b32.xlu1 %v5868_v51, %s5697_s27  ;;  %680 = vrot.lane.b32.xlu0 %v5868_v51, %s5695_s25 }
 0x1cb   :  { %532 = vrot.lane.b32.xlu1 %v5846_v40, %s5697_s27  ;;  %398 = vrot.lane.b32.xlu0 %v5862_v49, %s5694_s24 }
 0x1cf   :  { %534 = vrot.lane.b32.xlu1 %v5852_v43, %s5697_s27  ;;  %670 = vrot.lane.b32.xlu0 %v5868_v51, %s5698_s28 }
 0x1d3   :  { %536 = vrot.lane.b32.xlu1 %v5858_v46, %s5697_s27  ;;  %672 = vrot.lane.b32.xlu0 %v5846_v40, %s5698_s28 }
 0x1d7   :  { %538 = vrot.lane.b32.xlu1 %v5862_v49, %s5697_s27  ;;  %674 = vrot.lane.b32.xlu0 %v5852_v43, %s5698_s28 }
 0x1db   :  { %1038 = vrot.lane.b32.xlu1 %v5858_v46, %s5699_s29  ;;  %676 = vrot.lane.b32.xlu0 %v5858_v46, %s5698_s28 }
 0x1df   :  { %1160 = vrot.lane.b32.xlu1 %v5858_v46, %s5700_s30  ;;  %678 = vrot.lane.b32.xlu0 %v5862_v49, %s5698_s28 }
 0x1e3   :  { %1036 = vrot.lane.b32.xlu1 %v5852_v43, %s5699_s29  ;;  %1158 = vrot.lane.b32.xlu0 %v5852_v43, %s5700_s30 }
 0x1e7   :  { %1034 = vrot.lane.b32.xlu1 %v5846_v40, %s5699_s29  ;;  %1156 = vrot.lane.b32.xlu0 %v5846_v40, %s5700_s30 }
 0x1eb   :  { %1154 = vrot.lane.b32.xlu1 %v5868_v51, %s5700_s30  ;;  %1032 = vrot.lane.b32.xlu0 %v5868_v51, %s5699_s29 }
 0x1ef   :  { %1281 = vrot.lane.b32.xlu1 %v5858_v46, %s5701_s3  ;;  %1402 = vrot.lane.b32.xlu0 %v5858_v46, %s5702_s4 }
 0x1f3   :  { %1279 = vrot.lane.b32.xlu1 %v5852_v43, %s5701_s3  ;;  %1400 = vrot.lane.b32.xlu0 %v5852_v43, %s5702_s4 }
 0x1f7   :  { %1162 = vrot.lane.b32.xlu1 %v5862_v49, %s5700_s30  ;;  %1040 = vrot.lane.b32.xlu0 %v5862_v49, %s5699_s29 }
 0x1fb   :  { %1404 = vrot.lane.b32.xlu1 %v5862_v49, %s5702_s4  ;;  %1283 = vrot.lane.b32.xlu0 %v5862_v49, %s5701_s3 }
 0x209   :  { %v403_v52 = vpop.permute.xlu1 %402  ;;  %v262_v53 = vpop.permute.xlu0 %261 }
 0x20d   :  { %v405_v54 = vpop.permute.xlu1 %404  ;;  %v264_v55 = vpop.permute.xlu0 %263 }
 0x211   :  { %v266_v56 = vpop.permute.xlu1 %265 }
 0x215   :  { %v407_v57 = vpop.permute.xlu1 %406  ;;  %v268_v58 = vpop.permute.xlu0 %267 }
 0x216   :  { %4822 = vmatpush3.xpose.msk.msra.mxu1 %vm269_vm3, %v268_v58 }
 0x217   :  { %4823 = vmatprep.subr.mxu1 %v5690_v1 }
 0x219   :  { %v401_v59 = vpop.permute.xlu1 %400  ;;  %v409_v60 = vpop.permute.xlu0 %408 }
 0x21a   :  { %4824 = vmatpush3.xpose.msk.msra.mxu1 %vm269_vm3, %v266_v56  ;;  %4847 = vmatpush3.xpose.msk.msra.mxu0 %vm269_vm3, %v409_v60 }
 0x21b   :  { %4825 = vmatprep.subr.mxu1 %v5690_v1  ;;  %4848 = vmatprep.subr.mxu0 %v5690_v1 }
 0x21d   :  { %v393_v61 = vpop.permute.xlu1 %392  ;;  %v260_v62 = vpop.permute.xlu0 %259 }
 0x21e   :  { %4826 = vmatpush3.xpose.msk.msra.mxu1 %vm269_vm3, %v264_v55  ;;  %4849 = vmatpush3.xpose.msk.msra.mxu0 %vm269_vm3, %v407_v57  ;;  %v6096_v57 = vld [vmem:[%s7587_s1 + $0x60] sm:$0xff] }
 0x21f   :  { %4827 = vmatprep.subr.mxu1 %v5690_v1  ;;  %4850 = vmatprep.subr.mxu0 %v5690_v1 }
 0x221   :  { %v687_v63 = vpop.permute.xlu1 %686  ;;  %v391_v0 = vpop.permute.xlu0 %390 }
 0x222   :  { %4828 = vmatpush3.xpose.msk.msra.mxu1 %vm269_vm3, %v262_v53  ;;  %4851 = vmatpush3.xpose.msk.msra.mxu0 %vm269_vm3, %v405_v54 }
 0x223   :  { %4829 = vmatprep.subr.mxu1 %v5690_v1  ;;  %4852 = vmatprep.subr.mxu0 %v5690_v1 }
 0x225   :  { %v549_v2 = vpop.permute.xlu1 %548  ;;  %v547_v3 = vpop.permute.xlu0 %546 }
 0x226   :  { %4830 = vmatpush3.xpose.msk.msra.mxu1 %vm269_vm3, %v260_v62  ;;  %4853 = vmatpush3.xpose.msk.msra.mxu0 %vm269_vm3, %v403_v52 }
 0x227   :  { %4854 = vmatprep.subr.mxu0 %v5690_v1  ;;  %4871 = vmatprep.subr.mxu1 %v5690_v1 }
 0x229   :  { %v545_v4 = vpop.permute.xlu1 %544  ;;  %4832 = vmatmul.mubr.msk.f32.vlgmr.msra.gmra.mxu1 %vm269_vm3, %v5868_v51  ;;  %v395_v5 = vpop.permute.xlu0 %394 }
 0x22a   :  { %4855 = vmatpush3.xpose.msk.msra.mxu0 %vm269_vm3, %v401_v59  ;;  %4872 = vmatpush3.xpose.msk.msra.mxu1 %vm269_vm3, %v549_v2  ;;  %v6109_v2 = vld [vmem:[%s7587_s1 + $0x68] sm:$0xff] }
 0x22b   :  { %4834 = vmatprep.mubr.msk.f32.mxu1 %vm5691_vm0, %v5690_v1  ;;  %4873 = vmatprep.subr.mxu1 %v5690_v1 }
 0x22c   :  { %4896 = vmatprep.subr.mxu0 %v5690_v1 }
 0x22d   :  { %v397_v6 = vpop.permute.xlu1 %396  ;;  %4835 = vmatmul.mubr.msk.f32.gmra.mxu1 %vm269_vm3, %v5846_v40  ;;  %4857 = vmatmul.mubr.msk.f32.vlgmr.msra.gmra.mxu0 %vm269_vm3, %v391_v0  ;;  %v689_v7 = vpop.permute.xlu0 %688 }
 0x22e   :  { %4874 = vmatpush3.xpose.msk.msra.mxu1 %vm269_vm3, %v547_v3  ;;  %4897 = vmatpush3.xpose.msk.msra.mxu0 %vm269_vm3, %v689_v7 }
 0x22f   :  { %4837 = vmatprep.mubr.msk.f32.mxu1 %vm5691_vm0, %v5690_v1  ;;  %4859 = vmatprep.mubr.msk.f32.mxu0 %vm5691_vm0, %v5690_v1 }
 0x230   :  { %4875 = vmatprep.subr.mxu1 %v5690_v1  ;;  %4898 = vmatprep.subr.mxu0 %v5690_v1 }
 0x231   :  { %v683_v8 = vpop.permute.xlu1 %682  ;;  %4838 = vmatmul.mubr.msk.f32.gmra.mxu1 %vm269_vm3, %v5852_v43  ;;  %4860 = vmatmul.mubr.msk.f32.gmra.mxu0 %vm269_vm3, %v393_v61  ;;  %v685_v9 = vpop.permute.xlu0 %684 }
 0x232   :  { %4876 = vmatpush3.xpose.msk.msra.mxu1 %vm269_vm3, %v545_v4  ;;  %4899 = vmatpush3.xpose.msk.msra.mxu0 %vm269_vm3, %v687_v63 }
 0x233   :  { %4840 = vmatprep.mubr.msk.f32.mxu1 %vm5691_vm0, %v5690_v1  ;;  %4862 = vmatprep.mubr.msk.f32.mxu0 %vm5691_vm0, %v5690_v1 }
 0x234   :  { %4877 = vmatprep.subr.mxu1 %v5690_v1  ;;  %4900 = vmatprep.subr.mxu0 %v5690_v1 }
 0x235   :  { %v541_v10 = vpop.permute.xlu1 %540  ;;  %4841 = vmatmul.mubr.msk.f32.gmra.mxu1 %vm269_vm3, %v5858_v46  ;;  %4863 = vmatmul.mubr.msk.f32.gmra.mxu0 %vm269_vm3, %v395_v5  ;;  %v543_v11 = vpop.permute.xlu0 %542 }
 0x236   :  { %4878 = vmatpush3.xpose.msk.msra.mxu1 %vm269_vm3, %v543_v11  ;;  %4901 = vmatpush3.xpose.msk.msra.mxu0 %vm269_vm3, %v685_v9 }
 0x237   :  { %4843 = vmatprep.mubr.msk.f32.mxu1 %vm5691_vm0, %v5690_v1  ;;  %4865 = vmatprep.mubr.msk.f32.mxu0 %vm5691_vm0, %v5690_v1 }
 0x238   :  { %4879 = vmatprep.subr.mxu1 %v5690_v1  ;;  %4902 = vmatprep.subr.mxu0 %v5690_v1 }
 0x239   :  { %v531_v12 = vpop.permute.xlu1 %530  ;;  %4844 = vmatmul.mubr.msk.f32.gmra.mxu1 %vm269_vm3, %v5862_v49  ;;  %4866 = vmatmul.mubr.msk.f32.gmra.mxu0 %vm269_vm3, %v397_v6  ;;  %v681_v13 = vpop.permute.xlu0 %680 }
 0x23a   :  { %4880 = vmatpush3.xpose.msk.msra.mxu1 %vm269_vm3, %v541_v10  ;;  %4903 = vmatpush3.xpose.msk.msra.mxu0 %vm269_vm3, %v683_v8 }
 0x23b   :  { %4881 = vmatprep.mubr.msk.f32.mxu1 %vm5691_vm0, %v5690_v1  ;;  %4868 = vmatprep.mubr.msk.f32.mxu0 %vm5691_vm0, %v5690_v1 }
 0x23c   :  { %4904 = vmatprep.subr.mxu0 %v5690_v1  ;;  %4921 = vmatprep.subr.mxu1 %v5690_v1 }
 0x23d   :  { %v533_v14 = vpop.permute.xlu1 %532  ;;  %4882 = vmatmul.mubr.msk.f32.vlgmr.msra.gmra.mxu1 %vm269_vm3, %v531_v12  ;;  %v399_v15 = vpop.permute.xlu0 %398 }
 0x23e   :  { %4869 = vmatmul.mubr.msk.f32.gmra.mxu0 %vm269_vm3, %v399_v15  ;;  %4884 = vmatprep.mubr.msk.f32.mxu1 %vm5691_vm0, %v5690_v1  ;;  %v6124_v15 = vld [vmem:[%s7587_s1 + $0x70] sm:$0xff] }
 0x23f   :  { %4905 = vmatpush3.xpose.msk.msra.mxu0 %vm269_vm3, %v681_v13  ;;  %4906 = vmatprep.mubr.msk.f32.mxu0 %vm5691_vm0, %v5690_v1 }
 0x240   :  { %4946 = vmatprep.subr.mxu0 %v5690_v1 }
 0x241   :  { %v535_v16 = vpop.permute.xlu1 %534  ;;  %4885 = vmatmul.mubr.msk.f32.gmra.mxu1 %vm269_vm3, %v533_v14  ;;  %v671_v17 = vpop.permute.xlu0 %670 }
 0x242   :  { %4907 = vmatmul.mubr.msk.f32.vlgmr.msra.gmra.mxu0 %vm269_vm3, %v671_v17  ;;  %4887 = vmatprep.mubr.msk.f32.mxu1 %vm5691_vm0, %v5690_v1 }
 0x243   :  { %4909 = vmatprep.mubr.msk.f32.mxu0 %vm5691_vm0, %v5690_v1 }
 0x245   :  { %v537_v19 = vpop.permute.xlu1 %536  ;;  %4888 = vmatmul.mubr.msk.f32.gmra.mxu1 %vm269_vm3, %v535_v16  ;;  %v673_v20 = vpop.permute.xlu0 %672 }
 0x246   :  { %4910 = vmatmul.mubr.msk.f32.gmra.mxu0 %vm269_vm3, %v673_v20  ;;  %4890 = vmatprep.mubr.msk.f32.mxu1 %vm5691_vm0, %v5690_v1 }
 0x247   :  { %4912 = vmatprep.mubr.msk.f32.mxu0 %vm5691_vm0, %v5690_v1 }
 0x249   :  { %v539_v21 = vpop.permute.xlu1 %538  ;;  %4891 = vmatmul.mubr.msk.f32.gmra.mxu1 %vm269_vm3, %v537_v19  ;;  %v675_v23 = vpop.permute.xlu0 %674 }
 0x24a   :  { %4913 = vmatmul.mubr.msk.f32.gmra.mxu0 %vm269_vm3, %v675_v23  ;;  %4893 = vmatprep.mubr.msk.f32.mxu1 %vm5691_vm0, %v5690_v1 }
 0x24b   :  { %4915 = vmatprep.mubr.msk.f32.mxu0 %vm5691_vm0, %v5690_v1 }
 0x24d   :  { %v1039_v24 = vpop.permute.xlu1 %1038  ;;  %4894 = vmatmul.mubr.msk.f32.gmra.mxu1 %vm269_vm3, %v539_v21  ;;  %v677_v25 = vpop.permute.xlu0 %676 }
 0x24e   :  { %4916 = vmatmul.mubr.msk.f32.gmra.mxu0 %vm269_vm3, %v677_v25  ;;  %4931 = vmatprep.mubr.msk.f32.mxu1 %vm5691_vm0, %v5690_v1 }
 0x24f   :  { %4918 = vmatprep.mubr.msk.f32.mxu0 %vm5691_vm0, %v5690_v1 }
 0x251   :  { %v1161_v27 = vpop.permute.xlu1 %1160  ;;  %v679_v28 = vpop.permute.xlu0 %678 }
 0x252   :  { %4919 = vmatmul.mubr.msk.f32.gmra.mxu0 %vm269_vm3, %v679_v28 }
 0x253   :  { %4956 = vmatprep.mubr.msk.f32.mxu0 %vm5691_vm0, %v5690_v1 }
 0x255   :  { %v1037_v29 = vpop.permute.xlu1 %1036  ;;  %v1159_v31 = vpop.permute.xlu0 %1158 }
 0x259   :  { %v1035_v32 = vpop.permute.xlu1 %1034  ;;  %v1157_v33 = vpop.permute.xlu0 %1156 }
 0x25d   :  { %v1155_v35 = vpop.permute.xlu1 %1154  ;;  %v1033_v36 = vpop.permute.xlu0 %1032 }
 0x261   :  { %v6063_v37 = vpop.permute.xlu1 %1281  ;;  %v6065_v38 = vpop.permute.xlu0 %1402 }
 0x265   :  { %v6067_v39 = vpop.permute.xlu1 %1279  ;;  %v6069_v41 = vpop.permute.xlu0 %1400 }
 0x269   :  { %v1163_v42 = vpop.permute.xlu1 %1162  ;;  %v1041_v43 = vpop.permute.xlu0 %1040 }
 0x26a   :  { %4922 = vmatpush3.msk.msra.mxu1 %vm1061_vm4, %v1041_v43  ;;  %4947 = vmatpush3.msk.msra.mxu0 %vm1061_vm4, %v1163_v42 }
 0x26b   :  { %4923 = vmatprep.subr.mxu1 %v5690_v1  ;;  %4948 = vmatprep.subr.mxu0 %v5690_v1 }
 0x26c   :  { %4924 = vmatpush3.msra.mxu1 %v1039_v24  ;;  %4949 = vmatpush3.msra.mxu0 %v1161_v27 }
 0x26d   :  { %4925 = vmatprep.subr.mxu1 %v5690_v1  ;;  %4950 = vmatprep.subr.mxu0 %v5690_v1 }
 0x26e   :  { %4926 = vmatpush3.msra.mxu1 %v1037_v29  ;;  %4951 = vmatpush3.msra.mxu0 %v1159_v31  ;;  %v6139_v29 = vld [vmem:[%s7587_s1 + $0x78] sm:$0x3] }
 0x26f   :  { %4927 = vmatprep.subr.mxu1 %v5690_v1  ;;  %4952 = vmatprep.subr.mxu0 %v5690_v1 }
 0x270   :  { %4928 = vmatpush3.msra.mxu1 %v1035_v32  ;;  %4953 = vmatpush3.msra.mxu0 %v1157_v33 }
 0x271   :  { %4929 = vmatprep.subr.mxu1 %v5690_v1  ;;  %4954 = vmatprep.subr.mxu0 %v5690_v1 }
 0x272   :  { %4930 = vmatpush3.msra.mxu1 %v1033_v36  ;;  %4955 = vmatpush3.msra.mxu0 %v1155_v35 }
 0x273   :  { %4971 = vmatprep.subr.mxu1 %v5690_v1  ;;  %4996 = vmatprep.subr.mxu0 %v5690_v1 }
 0x2e9   :  { %v356_v44 = vpop.f32.mrf.mxu1 }
 0x2ea   :  { %v380_v46 = vmul.f32 0.35355338, %v356_v44 }
 0x2eb   :  { %v4833_v47 = vpop.f32.mrf.mxu1 }
 0x2ec   :  { %v6089_v48 = vadd.f32 %v380_v46, %v6086_v45 }
 0x2ed   :  { %v361_v49 = vpop.f32.mrf.mxu1  ;;  %v496_v50 = vpop.f32.mrf.mxu0 }
 0x2ee   :  { %v381_v52 = vmul.f32 0.35355338, %v361_v49  ;;  %v520_v53 = vmul.f32 0.35355338, %v496_v50  ;;  %v811_v54 = vsel %vm810_vm5, %v6089_v48, -inf }
 0x2ef   :  { %v4836_v55 = vpop.f32.mrf.mxu1  ;;  %v4858_v56 = vpop.f32.mrf.mxu0  ;;  %812 = vmax.xlane.f32.xlu1 %v811_v54 }
 0x2f0   :  { %v6099_v58 = vadd.f32 %v520_v53, %v6086_v45  ;;  %v6104_v0 = vadd.f32 %v381_v52, %v6096_v57 }
 0x2f1   :  { %v366_v59 = vpop.f32.mrf.mxu1  ;;  %v501_v60 = vpop.f32.mrf.mxu0 }
 0x2f2   :  { %v382_v61 = vmul.f32 0.35355338, %v366_v59  ;;  %v521_v62 = vmul.f32 0.35355338, %v501_v60  ;;  %v867_v63 = vsel %vm810_vm5, %v6099_v58, -inf  ;;  %v814_v11 = vsel %vm810_vm5, %v6104_v0, -inf }
 0x2f3   :  { %v4839_v3 = vpop.f32.mrf.mxu1  ;;  %v4861_v4 = vpop.f32.mrf.mxu0  ;;  %868 = vmax.xlane.f32.xlu0 %v867_v63 }
 0x2f4   :  { %v6112_v5 = vadd.f32 %v521_v62, %v6096_v57  ;;  %v6115_v8 = vadd.f32 %v382_v61, %v6109_v2 }
 0x2f5   :  { %v371_v6 = vpop.f32.mrf.mxu1  ;;  %v506_v7 = vpop.f32.mrf.mxu0 }
 0x2f6   :  { %v383_v9 = vmul.f32 0.35355338, %v371_v6  ;;  %v522_v10 = vmul.f32 0.35355338, %v506_v7  ;;  %v870_v12 = vsel %vm810_vm5, %v6112_v5, -inf  ;;  %v817_v20 = vsel %vm810_vm5, %v6115_v8, -inf }
 0x2f7   :  { %v4842_v13 = vpop.f32.mrf.mxu1  ;;  %v4864_v14 = vpop.f32.mrf.mxu0  ;;  %815 = vmax.xlane.f32.xlu0 %v814_v11  ;;  %871 = vmax.xlane.f32.xlu1 %v870_v12 }
 0x2f8   :  { %v6127_v16 = vadd.f32 %v522_v10, %v6109_v2  ;;  %v6134_v25 = vadd.f32 %v383_v9, %v6124_v15 }
 0x2f9   :  { %v376_v17 = vpop.f32.mrf.mxu1  ;;  %v511_v19 = vpop.f32.mrf.mxu0 }
 0x2fa   :  { %v384_v21 = vmul.f32 0.35355338, %v376_v17  ;;  %v523_v23 = vmul.f32 0.35355338, %v511_v19  ;;  %v873_v24 = vsel %vm810_vm5, %v6127_v16, -inf  ;;  %v820_v36 = vsel %vm810_vm5, %v6134_v25, -inf }
 0x2fb   :  { %v4845_v27 = vpop.f32.mrf.mxu1  ;;  %v4867_v28 = vpop.f32.mrf.mxu0  ;;  %818 = vmax.xlane.f32.xlu0 %v817_v20  ;;  %874 = vmax.xlane.f32.xlu1 %v873_v24 }
 0x2fc   :  { %v6142_v31 = vadd.f32 %v523_v23, %v6124_v15  ;;  %v6149_v43 = vadd.f32 %v384_v21, %v6139_v29 }
 0x2fd   :  { %v636_v32 = vpop.f32.mrf.mxu1 }
 0x2fe   :  { %v660_v33 = vmul.f32 0.35355338, %v636_v32  ;;  %v516_v35 = vpop.f32.mrf.mxu0  ;;  %v876_v42 = vsel %vm810_vm5, %v6142_v31, -inf  ;;  %v824_v54 = vsel %vm823_vm6, %v6149_v43, -inf }
 0x2ff   :  { %v524_v44 = vmul.f32 0.35355338, %v516_v35  ;;  %v4883_v46 = vpop.f32.mrf.mxu1  ;;  %821 = vmax.xlane.f32.xlu0 %v820_v36  ;;  %877 = vmax.xlane.f32.xlu1 %v876_v42 }
 0x300   :  { %v4870_v47 = vpop.f32.mrf.mxu0  ;;  %v6157_v55 = vadd.f32 %v660_v33, %v6086_v45 }
 0x301   :  { %v641_v49 = vpop.f32.mrf.mxu1  ;;  %v6152_v50 = vadd.f32 %v524_v44, %v6139_v29 }
 0x302   :  { %v661_v52 = vmul.f32 0.35355338, %v641_v49  ;;  %v776_v53 = vpop.f32.mrf.mxu0  ;;  %v922_v6 = vsel %vm810_vm5, %v6157_v55, -inf }
 0x303   :  { %v800_v56 = vmul.f32 0.35355338, %v776_v53  ;;  %v4886_v59 = vpop.f32.mrf.mxu1  ;;  %825 = vmax.xlane.f32.xlu0 %v824_v54  ;;  %v879_v60 = vsel %vm823_vm6, %v6152_v50, -inf }
 0x304   :  { %v4908_v61 = vpop.f32.mrf.mxu0  ;;  %880 = vmax.xlane.f32.xlu1 %v879_v60  ;;  %v6167_v7 = vadd.f32 %v661_v52, %v6096_v57 }
 0x305   :  { %v646_v62 = vpop.f32.mrf.mxu1  ;;  %v6162_v63 = vadd.f32 %v800_v56, %v6086_v45 }
 0x306   :  { %v662_v3 = vmul.f32 0.35355338, %v646_v62  ;;  %v781_v4 = vpop.f32.mrf.mxu0  ;;  %v925_v19 = vsel %vm810_vm5, %v6167_v7, -inf  ;;  %v6212_v62 = vpop.permute.xlu1 %1404 }
 0x307   :  { %v801_v9 = vmul.f32 0.35355338, %v781_v4  ;;  %v4889_v10 = vpop.f32.mrf.mxu1  ;;  %923 = vmax.xlane.f32.xlu0 %v922_v6  ;;  %v977_v11 = vsel %vm810_vm5, %v6162_v63, -inf }
 0x308   :  { %v4911_v12 = vpop.f32.mrf.mxu0  ;;  %978 = vmax.xlane.f32.xlu1 %v977_v11  ;;  %v6177_v20 = vadd.f32 %v662_v3, %v6109_v2  ;;  %v6214_v3 = vpop.permute.xlu0 %1283 }
 0x309   :  { %v651_v13 = vpop.f32.mrf.mxu1  ;;  %v6172_v45 = vadd.f32 %v801_v9, %v6096_v57 }
 0x30a   :  { %v663_v14 = vmul.f32 0.35355338, %v651_v13  ;;  %v786_v17 = vpop.f32.mrf.mxu0  ;;  %v928_v35 = vsel %vm810_vm5, %v6177_v20, -inf }
 0x30b   :  { %v802_v21 = vmul.f32 0.35355338, %v786_v17  ;;  %v4892_v23 = vpop.f32.mrf.mxu1  ;;  %926 = vmax.xlane.f32.xlu0 %v925_v19  ;;  %v980_v24 = vsel %vm810_vm5, %v6172_v45, -inf }
 0x30c   :  { %v4914_v27 = vpop.f32.mrf.mxu0  ;;  %981 = vmax.xlane.f32.xlu1 %v980_v24  ;;  %v6187_v36 = vadd.f32 %v663_v14, %v6124_v15 }
 0x30d   :  { %v656_v28 = vpop.f32.mrf.mxu1  ;;  %v6182_v57 = vadd.f32 %v802_v21, %v6109_v2 }
 0x30e   :  { %v664_v32 = vmul.f32 0.35355338, %v656_v28  ;;  %v791_v33 = vpop.f32.mrf.mxu0  ;;  %v931_v52 = vsel %vm810_vm5, %v6187_v36, -inf }
 0x30f   :  { %v803_v42 = vmul.f32 0.35355338, %v791_v33  ;;  %v4895_v44 = vpop.f32.mrf.mxu1  ;;  %929 = vmax.xlane.f32.xlu0 %v928_v35  ;;  %v983_v46 = vsel %vm810_vm5, %v6182_v57, -inf }
 0x310   :  { %v4917_v47 = vpop.f32.mrf.mxu0  ;;  %984 = vmax.xlane.f32.xlu1 %v983_v46  ;;  %v6197_v53 = vadd.f32 %v664_v32, %v6139_v29 }
 0x311   :  { %v6192_v49 = vadd.f32 %v803_v42, %v6124_v15 }
 0x312   :  { %v796_v2 = vpop.f32.mrf.mxu0  ;;  %v934_v15 = vsel %vm823_vm6, %v6197_v53, -inf }
 0x313   :  { %v804_v54 = vmul.f32 0.35355338, %v796_v2  ;;  %932 = vmax.xlane.f32.xlu0 %v931_v52  ;;  %v986_v56 = vsel %vm810_vm5, %v6192_v49, -inf }
 0x314   :  { %v4920_v59 = vpop.f32.mrf.mxu0  ;;  %987 = vmax.xlane.f32.xlu1 %v986_v56 }
 0x315   :  { %v6202_v60 = vadd.f32 %v804_v54, %v6139_v29 }
 0x317   :  { %935 = vmax.xlane.f32.xlu0 %v934_v15  ;;  %v989_v61 = vsel %vm823_vm6, %v6202_v60, -inf }
 0x318   :  { %990 = vmax.xlane.f32.xlu1 %v989_v61 }
 0x329   :  { %1277 = vrot.lane.b32.xlu1 %v5846_v40, %s5701_s3 }
 0x32d   :  { %1398 = vrot.lane.b32.xlu0 %v5846_v40, %s5702_s4 }
 0x378   :  { %v813_v29 = vpop.xlane.xlu1 %812 }
 0x379   :  { %v827_v4 = vsub.f32 %v6089_v48, %v813_v29 }
 0x37b   :  { %v832_v6 = vmul.f32 1.442695, %v827_v4 }
 0x37c   :  { %v869_v9 = vpop.xlane.xlu0 %868 }
 0x37d   :  { %5445 = vpow2.f32 %v832_v6  ;;  %v882_v10 = vsub.f32 %v6099_v58, %v869_v9 }
 0x37f   :  { %v887_v11 = vmul.f32 1.442695, %v882_v10 }
 0x380   :  { %v816_v12 = vpop.xlane.xlu0 %815  ;;  %v872_v13 = vpop.xlane.xlu1 %871 }
 0x381   :  { %5447 = vpow2.f32 %v887_v11  ;;  %v828_v14 = vsub.f32 %v6104_v0, %v816_v12  ;;  %v883_v40 = vsub.f32 %v6112_v5, %v872_v13 }
 0x383   :  { %v834_v17 = vmul.f32 1.442695, %v828_v14  ;;  %v889_v19 = vmul.f32 1.442695, %v883_v40 }
 0x384   :  { %v819_v21 = vpop.xlane.xlu0 %818  ;;  %v875_v23 = vpop.xlane.xlu1 %874 }
 0x385   :  { %5449 = vpow2.f32 %v834_v17  ;;  %v829_v48 = vsub.f32 %v6115_v8, %v819_v21  ;;  %v884_v24 = vsub.f32 %v6127_v16, %v875_v23 }
 0x386   :  { %5451 = vpow2.f32 %v889_v19 }
 0x387   :  { %v836_v27 = vmul.f32 1.442695, %v829_v48  ;;  %v891_v58 = vmul.f32 1.442695, %v884_v24 }
 0x388   :  { %v822_v28 = vpop.xlane.xlu0 %821  ;;  %v878_v32 = vpop.xlane.xlu1 %877 }
 0x389   :  { %5453 = vpow2.f32 %v836_v27  ;;  %v830_v33 = vsub.f32 %v6134_v25, %v822_v28  ;;  %v885_v0 = vsub.f32 %v6142_v31, %v878_v32 }
 0x38a   :  { %v6224_v5 = vpop.eup %5445  ;;  %5455 = vpow2.f32 %v891_v58 }
 0x38b   :  { %v838_v35 = vmul.f32 1.442695, %v830_v33  ;;  %v893_v42 = vmul.f32 1.442695, %v885_v0  ;;  %v842_v8 = vsel %vm810_vm5, %v6224_v5, 0.0 }
 0x38c   :  { %v826_v44 = vpop.xlane.xlu0 %825  ;;  %843 = vadd.xlane.f32.xlu0 %v842_v8 }
 0x38d   :  { %5457 = vpow2.f32 %v838_v35  ;;  %v831_v16 = vsub.f32 %v6149_v43, %v826_v44  ;;  %v881_v46 = vpop.xlane.xlu1 %880 }
 0x38e   :  { %v6229_v47 = vpop.eup %5447  ;;  %5459 = vpow2.f32 %v893_v42  ;;  %v886_v25 = vsub.f32 %v6152_v50, %v881_v46 }
 0x38f   :  { %v840_v31 = vmul.f32 1.442695, %v831_v16  ;;  %v897_v2 = vsel %vm810_vm5, %v6229_v47, 0.0 }
 0x390   :  { %v895_v52 = vmul.f32 1.442695, %v886_v25  ;;  %v924_v54 = vpop.xlane.xlu0 %923  ;;  %898 = vadd.xlane.f32.xlu1 %v897_v2 }
 0x391   :  { %5461 = vpow2.f32 %v840_v31  ;;  %v937_v56 = vsub.f32 %v6157_v55, %v924_v54  ;;  %v979_v59 = vpop.xlane.xlu1 %978 }
 0x392   :  { %v6235_v15 = vpop.eup %5449  ;;  %5463 = vpow2.f32 %v895_v52  ;;  %v992_v43 = vsub.f32 %v6162_v63, %v979_v59 }
 0x393   :  { %v6238_v61 = vpop.eup %5451  ;;  %v942_v29 = vmul.f32 1.442695, %v937_v56  ;;  %v845_v50 = vsel %vm810_vm5, %v6235_v15, 0.0 }
 0x394   :  { %v997_v4 = vmul.f32 1.442695, %v992_v43  ;;  %v927_v6 = vpop.xlane.xlu0 %926  ;;  %846 = vadd.xlane.f32.xlu0 %v845_v50  ;;  %v900_v9 = vsel %vm810_vm5, %v6238_v61, 0.0 }
 0x395   :  { %5465 = vpow2.f32 %v942_v29  ;;  %v938_v55 = vsub.f32 %v6167_v7, %v927_v6  ;;  %901 = vadd.xlane.f32.xlu1 %v900_v9  ;;  %v982_v10 = vpop.xlane.xlu1 %981 }
 0x396   :  { %v6245_v11 = vpop.eup %5453  ;;  %5467 = vpow2.f32 %v997_v4  ;;  %v993_v63 = vsub.f32 %v6172_v45, %v982_v10 }
 0x397   :  { %v6248_v12 = vpop.eup %5455  ;;  %v944_v13 = vmul.f32 1.442695, %v938_v55  ;;  %v848_v14 = vsel %vm810_vm5, %v6245_v11, 0.0 }
 0x398   :  { %v999_v40 = vmul.f32 1.442695, %v993_v63  ;;  %v930_v17 = vpop.xlane.xlu0 %929  ;;  %849 = vadd.xlane.f32.xlu0 %v848_v14  ;;  %v903_v19 = vsel %vm810_vm5, %v6248_v12, 0.0 }
 0x399   :  { %5469 = vpow2.f32 %v944_v13  ;;  %v939_v7 = vsub.f32 %v6177_v20, %v930_v17  ;;  %904 = vadd.xlane.f32.xlu1 %v903_v19  ;;  %v985_v21 = vpop.xlane.xlu1 %984 }
 0x39a   :  { %v6255_v23 = vpop.eup %5457  ;;  %v994_v45 = vsub.f32 %v6182_v57, %v985_v21  ;;  %5471 = vpow2.f32 %v999_v40 }
 0x39b   :  { %v6258_v48 = vpop.eup %5459  ;;  %v946_v24 = vmul.f32 1.442695, %v939_v7  ;;  %v851_v27 = vsel %vm810_vm5, %v6255_v23, 0.0 }
 0x39c   :  { %v1001_v58 = vmul.f32 1.442695, %v994_v45  ;;  %v933_v28 = vpop.xlane.xlu0 %932  ;;  %852 = vadd.xlane.f32.xlu0 %v851_v27  ;;  %v906_v32 = vsel %vm810_vm5, %v6258_v48, 0.0 }
 0x39d   :  { %5473 = vpow2.f32 %v946_v24  ;;  %v940_v20 = vsub.f32 %v6187_v36, %v933_v28  ;;  %907 = vadd.xlane.f32.xlu1 %v906_v32  ;;  %v988_v33 = vpop.xlane.xlu1 %987 }
 0x39e   :  { %v6265_v0 = vpop.eup %5461  ;;  %v995_v57 = vsub.f32 %v6192_v49, %v988_v33  ;;  %5475 = vpow2.f32 %v1001_v58 }
 0x39f   :  { %v6268_v35 = vpop.eup %5463  ;;  %v948_v42 = vmul.f32 1.442695, %v940_v20  ;;  %v854_v8 = vsel %vm823_vm6, %v6265_v0, 0.0 }
 0x3a0   :  { %v1003_v44 = vmul.f32 1.442695, %v995_v57  ;;  %v936_v16 = vpop.xlane.xlu0 %935  ;;  %855 = vadd.xlane.f32.xlu0 %v854_v8  ;;  %v909_v46 = vsel %vm823_vm6, %v6268_v35, 0.0 }
 0x3a1   :  { %5477 = vpow2.f32 %v948_v42  ;;  %v941_v36 = vsub.f32 %v6197_v53, %v936_v16  ;;  %910 = vadd.xlane.f32.xlu1 %v909_v46  ;;  %v991_v25 = vpop.xlane.xlu1 %990 }
 0x3a2   :  { %v6275_v31 = vpop.eup %5465  ;;  %5479 = vpow2.f32 %v1003_v44  ;;  %v996_v52 = vsub.f32 %v6202_v60, %v991_v25 }
 0x3a3   :  { %v6277_v49 = vpop.eup %5467  ;;  %v950_v2 = vmul.f32 1.442695, %v941_v36  ;;  %v952_v54 = vsel %vm810_vm5, %v6275_v31, 0.0 }
 0x3a4   :  { %v1007_v56 = vsel %vm810_vm5, %v6277_v49, 0.0  ;;  %v1005_v53 = vmul.f32 1.442695, %v996_v52  ;;  %v1399_v7 = vpop.permute.xlu0 %1398 }
 0x3a5   :  { %953 = vadd.xlane.f32.xlu1 %v952_v54  ;;  %1008 = vadd.xlane.f32.xlu0 %v1007_v56  ;;  %5481 = vpow2.f32 %v950_v2  ;;  %v1278_v21 = vpop.permute.xlu1 %1277 }
 0x3a6   :  { %v6284_v59 = vpop.eup %5469  ;;  %5483 = vpow2.f32 %v1005_v53 }
 0x3a7   :  { %v955_v43 = vsel %vm810_vm5, %v6284_v59, 0.0  ;;  %v6288_v29 = vpop.eup %5471 }
 0x3a8   :  { %v1010_v4 = vsel %vm810_vm5, %v6288_v29, 0.0 }
 0x3a9   :  { %956 = vadd.xlane.f32.xlu1 %v955_v43 }
 0x3aa   :  { %v6290_v50 = vpop.eup %5473 }
 0x3ab   :  { %v958_v60 = vsel %vm810_vm5, %v6290_v50, 0.0  ;;  %v6296_v6 = vpop.eup %5475 }
 0x3ac   :  { %959 = vadd.xlane.f32.xlu0 %v958_v60  ;;  %v1013_v63 = vsel %vm810_vm5, %v6296_v6, 0.0 }
 0x3ad   :  { %1011 = vadd.xlane.f32.xlu1 %v1010_v4 }
 0x3ae   :  { %v6298_v9 = vpop.eup %5477 }
 0x3af   :  { %v961_v55 = vsel %vm810_vm5, %v6298_v9, 0.0  ;;  %v6302_v10 = vpop.eup %5479 }
 0x3b0   :  { %962 = vadd.xlane.f32.xlu0 %v961_v55  ;;  %v1016_v13 = vsel %vm810_vm5, %v6302_v10, 0.0 }
 0x3b1   :  { %1014 = vadd.xlane.f32.xlu1 %v1013_v63 }
 0x3b2   :  { %v6308_v14 = vpop.eup %5481 }
 0x3b3   :  { %v964_v40 = vsel %vm823_vm6, %v6308_v14, 0.0  ;;  %v6312_v17 = vpop.eup %5483 }
 0x3b4   :  { %1017 = vadd.xlane.f32.xlu0 %v1016_v13  ;;  %v1019_v19 = vsel %vm823_vm6, %v6312_v17, 0.0 }
 0x3b8   :  { %965 = vadd.xlane.f32.xlu0 %v964_v40 }
 0x3bc   :  { %1020 = vadd.xlane.f32.xlu0 %v1019_v19 }
 0x3c2   :  { %1275 = vrot.lane.b32.xlu1 %v5868_v51, %s5701_s3 }
 0x3d2   :  { %1396 = vrot.lane.b32.xlu0 %v5868_v51, %s5702_s4 }
 0x415   :  { %v844_v45 = vpop.xlane.xlu0 %843 }
 0x416   :  { %5485 = vrcp.f32 %v844_v45 }
 0x419   :  { %v899_v24 = vpop.xlane.xlu1 %898 }
 0x41a   :  { %5487 = vrcp.f32 %v899_v24 }
 0x41d   :  { %v847_v27 = vpop.xlane.xlu0 %846 }
 0x41e   :  { %5489 = vrcp.f32 %v847_v27  ;;  %v902_v58 = vpop.xlane.xlu1 %901 }
 0x41f   :  { %5491 = vrcp.f32 %v902_v58 }
 0x421   :  { %v850_v28 = vpop.xlane.xlu0 %849 }
 0x422   :  { %5493 = vrcp.f32 %v850_v28  ;;  %v905_v32 = vpop.xlane.xlu1 %904 }
 0x423   :  { %v5486_v20 = vpop.eup %5485  ;;  %5495 = vrcp.f32 %v905_v32 }
 0x424   :  { %v858_v33 = vmul.f32 %v5486_v20, %v6224_v5 }
 0x425   :  { %v853_v57 = vpop.xlane.xlu0 %852 }
 0x426   :  { %5497 = vrcp.f32 %v853_v57  ;;  %v908_v51 = vpop.xlane.xlu1 %907  ;;  %4932 = vmatmul.mubr.msk.f32.vlgmr.msra.gmra.mxu1 %vm810_vm5, %v858_v33 }
 0x427   :  { %v5488_v42 = vpop.eup %5487  ;;  %5499 = vrcp.f32 %v908_v51  ;;  %4972 = vmatpush3.msk.msra.mxu1 %vm1061_vm4, %v6214_v3  ;;  %4934 = vmatprep.mubr.msk.f32.mxu1 %vm5691_vm0, %v5690_v1 }
 0x428   :  { %v913_v8 = vmul.f32 %v5488_v42, %v6229_v47  ;;  %4973 = vmatprep.subr.mxu1 %v5690_v1 }
 0x429   :  { %4974 = vmatpush3.msra.mxu1 %v6063_v37  ;;  %v856_v5 = vpop.xlane.xlu0 %855 }
 0x42a   :  { %4975 = vmatprep.subr.mxu1 %v5690_v1  ;;  %5501 = vrcp.f32 %v856_v5  ;;  %4957 = vmatmul.mubr.msk.f32.vlgmr.msra.gmra.mxu0 %vm810_vm5, %v913_v8  ;;  %v911_v44 = vpop.xlane.xlu1 %910 }
 0x42b   :  { %v5490_v16 = vpop.eup %5489  ;;  %4976 = vmatpush3.msra.mxu1 %v6067_v39  ;;  %4997 = vmatpush3.msk.msra.mxu0 %vm1061_vm4, %v6212_v62  ;;  %5503 = vrcp.f32 %v911_v44 }
 0x42c   :  { %v5492_v3 = vpop.eup %5491  ;;  %4977 = vmatprep.subr.mxu1 %v5690_v1  ;;  %4998 = vmatprep.subr.mxu0 %v5690_v1  ;;  %v860_v37 = vmul.f32 %v5490_v16, %v6235_v15 }
 0x42d   :  { %4978 = vmatpush3.msra.mxu1 %v1278_v21  ;;  %4999 = vmatpush3.msra.mxu0 %v6065_v38  ;;  %v915_v47 = vmul.f32 %v5492_v3, %v6238_v61  ;;  %v1596_v3 = vld [vmem:[%s7587_s1 + $0xb8] sm:$0xff] }
 0x42e   :  { %4959 = vmatprep.mubr.msk.f32.mxu0 %vm5691_vm0, %v5690_v1  ;;  %5000 = vmatprep.subr.mxu0 %v5690_v1  ;;  %v954_v39 = vpop.xlane.xlu1 %953  ;;  %v1009_v15 = vpop.xlane.xlu0 %1008 }
 0x42f   :  { %v5494_v62 = vpop.eup %5493  ;;  %4935 = vmatmul.mubr.msk.f32.gmra.mxu1 %vm810_vm5, %v860_v37  ;;  %4960 = vmatmul.mubr.msk.f32.gmra.mxu0 %vm810_vm5, %v915_v47  ;;  %5505 = vrcp.f32 %v954_v39  ;;  %v1595_v37 = vld [vmem:[%s7587_s1 + $0xb0] sm:$0xff] }
 0x430   :  { %v5496_v46 = vpop.eup %5495  ;;  %5001 = vmatpush3.msra.mxu0 %v6069_v41  ;;  %4937 = vmatprep.mubr.msk.f32.mxu1 %vm5691_vm0, %v5690_v1  ;;  %v862_v38 = vmul.f32 %v5494_v62, %v6245_v11 }
 0x431   :  { %5002 = vmatprep.subr.mxu0 %v5690_v1  ;;  %4962 = vmatprep.mubr.msk.f32.mxu0 %vm5691_vm0, %v5690_v1  ;;  %v917_v61 = vmul.f32 %v5496_v46, %v6248_v12 }
 0x432   :  { %5003 = vmatpush3.msra.mxu0 %v1399_v7  ;;  %v957_v36 = vpop.xlane.xlu1 %956  ;;  %4979 = vmatprep.subr.mxu1 %v5690_v1 }
 0x433   :  { %v5498_v25 = vpop.eup %5497  ;;  %4938 = vmatmul.mubr.msk.f32.gmra.mxu1 %vm810_vm5, %v862_v38  ;;  %4963 = vmatmul.mubr.msk.f32.gmra.mxu0 %vm810_vm5, %v917_v61  ;;  %5507 = vrcp.f32 %v957_v36 }
 0x434   :  { %v5500_v41 = vpop.eup %5499  ;;  %4940 = vmatprep.mubr.msk.f32.mxu1 %vm5691_vm0, %v5690_v1  ;;  %4965 = vmatprep.mubr.msk.f32.mxu0 %vm5691_vm0, %v5690_v1  ;;  %v864_v11 = vmul.f32 %v5498_v25, %v6255_v23 }
 0x435   :  { %v960_v12 = vpop.xlane.xlu0 %959  ;;  %v919_v2 = vmul.f32 %v5500_v41, %v6258_v48  ;;  %5004 = vmatprep.subr.mxu0 %v5690_v1 }
 0x436   :  { %5509 = vrcp.f32 %v960_v12  ;;  %v1012_v52 = vpop.xlane.xlu1 %1011 }
 0x437   :  { %v5502_v54 = vpop.eup %5501  ;;  %4941 = vmatmul.mubr.msk.f32.gmra.mxu1 %vm810_vm5, %v864_v11  ;;  %4966 = vmatmul.mubr.msk.f32.gmra.mxu0 %vm810_vm5, %v919_v2  ;;  %5511 = vrcp.f32 %v1009_v15  ;;  %v1594_v11 = vld [vmem:[%s7587_s1 + $0xa8] sm:$0xff] }
 0x438   :  { %v5504_v56 = vpop.eup %5503  ;;  %4943 = vmatprep.mubr.msk.f32.mxu1 %vm5691_vm0, %v5690_v1  ;;  %v866_v53 = vmul.f32 %v5502_v54, %v6265_v0  ;;  %4968 = vmatprep.mubr.msk.f32.mxu0 %vm5691_vm0, %v5690_v1 }
 0x439   :  { %v963_v23 = vpop.xlane.xlu0 %962  ;;  %v921_v48 = vmul.f32 %v5504_v56, %v6268_v35 }
 0x43a   :  { %5513 = vrcp.f32 %v963_v23  ;;  %v1015_v43 = vpop.xlane.xlu1 %1014 }
 0x43b   :  { %4944 = vmatmul.mubr.msk.f32.gmra.mxu1 %vm810_vm5, %v866_v53  ;;  %4969 = vmatmul.mubr.msk.f32.gmra.mxu0 %vm810_vm5, %v921_v48  ;;  %5515 = vrcp.f32 %v1012_v52 }
 0x43c   :  { %4981 = vmatprep.mubr.msk.f32.mxu1 %vm5691_vm0, %v5690_v1  ;;  %5006 = vmatprep.mubr.msk.f32.mxu0 %vm5691_vm0, %v5690_v1  ;;  %v5506_v0 = vpop.eup %5505  ;;  %5517 = vrcp.f32 %v1015_v43 }
 0x43d   :  { %v1018_v60 = vpop.xlane.xlu0 %1017  ;;  %v968_v4 = vmul.f32 %v5506_v0, %v6275_v31 }
 0x43e   :  { %v1276_v55 = vpop.permute.xlu1 %1275 }
 0x43f   :  { %4980 = vmatpush3.msra.mxu1 %v1276_v55 }
 0x440   :  { %v5508_v35 = vpop.eup %5507  ;;  %4982 = vmatmul.mubr.msk.f32.vlgmr.msra.gmra.mxu1 %vm810_vm5, %v968_v4  ;;  %5021 = vmatprep.subr.mxu1 %v5690_v1 }
 0x441   :  { %v966_v63 = vpop.xlane.xlu0 %965  ;;  %4984 = vmatprep.mubr.msk.f32.mxu1 %vm5691_vm0, %v5690_v1  ;;  %v970_v13 = vmul.f32 %v5508_v35, %v6284_v59 }
 0x442   :  { %5519 = vrcp.f32 %v966_v63 }
 0x443   :  { %v5510_v40 = vpop.eup %5509  ;;  %5521 = vrcp.f32 %v1018_v60 }
 0x444   :  { %4985 = vmatmul.mubr.msk.f32.gmra.mxu1 %vm810_vm5, %v970_v13  ;;  %v5512_v19 = vpop.eup %5511  ;;  %v972_v7 = vmul.f32 %v5510_v40, %v6290_v50 }
 0x445   :  { %v1021_v31 = vpop.xlane.xlu0 %1020  ;;  %4987 = vmatprep.mubr.msk.f32.mxu1 %vm5691_vm0, %v5690_v1  ;;  %v1023_v45 = vmul.f32 %v5512_v19, %v6277_v49 }
 0x446   :  { %5523 = vrcp.f32 %v1021_v31 }
 0x447   :  { %v5514_v21 = vpop.eup %5513 }
 0x448   :  { %4988 = vmatmul.mubr.msk.f32.gmra.mxu1 %vm810_vm5, %v972_v7  ;;  %v5516_v59 = vpop.eup %5515  ;;  %v974_v27 = vmul.f32 %v5514_v21, %v6298_v9 }
 0x449   :  { %v1397_v24 = vpop.permute.xlu0 %1396  ;;  %4990 = vmatprep.mubr.msk.f32.mxu1 %vm5691_vm0, %v5690_v1  ;;  %v1025_v49 = vmul.f32 %v5516_v59, %v6288_v29  ;;  %v5518_v50 = vpop.eup %5517 }
 0x44a   :  { %5005 = vmatpush3.msra.mxu0 %v1397_v24  ;;  %v1027_v28 = vmul.f32 %v5518_v50, %v6296_v6 }
 0x44b   :  { %5007 = vmatmul.mubr.msk.f32.vlgmr.msra.gmra.mxu0 %vm810_vm5, %v1023_v45  ;;  %5044 = vmatprep.subr.mxu0 %v5690_v1 }
 0x44c   :  { %4991 = vmatmul.mubr.msk.f32.gmra.mxu1 %vm810_vm5, %v974_v27  ;;  %5009 = vmatprep.mubr.msk.f32.mxu0 %vm5691_vm0, %v5690_v1 }
 0x44d   :  { %4993 = vmatprep.mubr.msk.f32.mxu1 %vm5691_vm0, %v5690_v1 }
 0x44f   :  { %v5520_v58 = vpop.eup %5519  ;;  %5010 = vmatmul.mubr.msk.f32.gmra.mxu0 %vm810_vm5, %v1025_v49 }
 0x450   :  { %v976_v9 = vmul.f32 %v5520_v58, %v6308_v14  ;;  %5012 = vmatprep.mubr.msk.f32.mxu0 %vm5691_vm0, %v5690_v1  ;;  %v5522_v32 = vpop.eup %5521 }
 0x451   :  { %v1029_v29 = vmul.f32 %v5522_v32, %v6302_v10  ;;  %v1597_v10 = vld [vmem:[%s7587_s1 + $0xc0] sm:$0xff] }
 0x452   :  { %4994 = vmatmul.mubr.msk.f32.gmra.mxu1 %vm810_vm5, %v976_v9 }
 0x453   :  { %5013 = vmatmul.mubr.msk.f32.gmra.mxu0 %vm810_vm5, %v1027_v28  ;;  %5029 = vmatprep.mubr.msk.f32.mxu1 %vm5691_vm0, %v5690_v1  ;;  %v5524_v20 = vpop.eup %5523 }
 0x454   :  { %5015 = vmatprep.mubr.msk.f32.mxu0 %vm5691_vm0, %v5690_v1  ;;  %v1031_v6 = vmul.f32 %v5524_v20, %v6312_v17  ;;  %5022 = vmatpush3.msra.mxu1 %v1597_v10 }
 0x455   :  { %5023 = vmatprep.subr.mxu1 %v5690_v1 }
 0x456   :  { %5024 = vmatpush3.msra.mxu1 %v1596_v3 }
 0x457   :  { %5016 = vmatmul.mubr.msk.f32.gmra.mxu0 %vm810_vm5, %v1029_v29  ;;  %5025 = vmatprep.subr.mxu1 %v5690_v1 }
 0x458   :  { %5018 = vmatprep.mubr.msk.f32.mxu0 %vm5691_vm0, %v5690_v1  ;;  %5026 = vmatpush3.msra.mxu1 %v1595_v37 }
 0x459   :  { %5027 = vmatprep.subr.mxu1 %v5690_v1 }
 0x45a   :  { %5028 = vmatpush3.msra.mxu1 %v1594_v11 }
 0x45b   :  { %5019 = vmatmul.mubr.msk.f32.gmra.mxu0 %vm810_vm5, %v1031_v6  ;;  %5067 = vmatprep.subr.mxu1 %v5690_v1 }
 0x45c   :  { %5052 = vmatprep.mubr.msk.f32.mxu0 %vm5691_vm0, %v5690_v1 }
 0x4e6   :  { %v6418_v14 = vpop.f32.mrf.mxu1 }
 0x4e8   :  { %v4933_v33 = vpop.f32.mrf.mxu1 }
 0x4ea   :  { %v1251_v57 = vpop.f32.mrf.mxu0 }
 0x4eb   :  { %1522 = vrot.lane.b32.xlu1 %v1251_v57, %s5703_s14 }
 0x4ec   :  { %v4958_v51 = vpop.f32.mrf.mxu0 }
 0x4ef   :  { %v6425_v17 = vpop.f32.mrf.mxu1  ;;  %v1256_v42 = vpop.f32.mrf.mxu0 }
 0x4f0   :  { %1524 = vrot.lane.b32.xlu0 %v1256_v42, %s5703_s14 }
 0x4f1   :  { %v4936_v8 = vpop.f32.mrf.mxu1  ;;  %v4961_v5 = vpop.f32.mrf.mxu0 }
 0x4f3   :  { %v6428_v44 = vpop.f32.mrf.mxu1  ;;  %v1261_v16 = vpop.f32.mrf.mxu0 }
 0x4f4   :  { %1526 = vrot.lane.b32.xlu1 %v1261_v16, %s5703_s14 }
 0x4f5   :  { %v4939_v47 = vpop.f32.mrf.mxu1  ;;  %v4964_v39 = vpop.f32.mrf.mxu0 }
 0x4f7   :  { %v6438_v62 = vpop.f32.mrf.mxu1  ;;  %v1266_v46 = vpop.f32.mrf.mxu0 }
 0x4f8   :  { %1528 = vrot.lane.b32.xlu0 %v1266_v46, %s5703_s14  ;;  %v4386_v46 = vld [vmem:[%s7587_s1 + $0xc8] ss:$0 sm:$0xff] }
 0x4f9   :  { %v4942_v38 = vpop.f32.mrf.mxu1  ;;  %v4967_v15 = vpop.f32.mrf.mxu0 }
 0x4fb   :  { %v6442_v61 = vpop.f32.mrf.mxu1  ;;  %v1271_v36 = vpop.f32.mrf.mxu0 }
 0x4fd   :  { %v4945_v25 = vpop.f32.mrf.mxu1  ;;  %v4970_v41 = vpop.f32.mrf.mxu0 }
 0x500   :  { %v1372_v12 = vpop.f32.mrf.mxu1 }
 0x501   :  { %1542 = vrot.lane.b32.xlu0 %v1372_v12, %s5704_s6 }
 0x502   :  { %v4983_v2 = vpop.f32.mrf.mxu1 }
 0x504   :  { %v1377_v52 = vpop.f32.mrf.mxu1 }
 0x506   :  { %v4986_v54 = vpop.f32.mrf.mxu1 }
 0x508   :  { %v1382_v56 = vpop.f32.mrf.mxu1 }
 0x50a   :  { %v4989_v53 = vpop.f32.mrf.mxu1 }
 0x50b   :  { %v1493_v23 = vpop.f32.mrf.mxu0 }
 0x50c   :  { %1562 = vrot.lane.b32.xlu1 %v1493_v23, %s5705_s7  ;;  %v1387_v48 = vpop.f32.mrf.mxu1 }
 0x50d   :  { %v5008_v43 = vpop.f32.mrf.mxu0 }
 0x50e   :  { %v4992_v0 = vpop.f32.mrf.mxu1 }
 0x50f   :  { %v1498_v60 = vpop.f32.mrf.mxu0 }
 0x510   :  { %1564 = vrot.lane.b32.xlu0 %v1498_v60, %s5705_s7  ;;  %1544 = vrot.lane.b32.xlu1 %v1377_v52, %s5704_s6 }
 0x511   :  { %v5011_v4 = vpop.f32.mrf.mxu0 }
 0x512   :  { %v1392_v55 = vpop.f32.mrf.mxu1 }
 0x513   :  { %v1503_v35 = vpop.f32.mrf.mxu0 }
 0x514   :  { %1566 = vrot.lane.b32.xlu1 %v1503_v35, %s5705_s7  ;;  %1546 = vrot.lane.b32.xlu0 %v1382_v56, %s5704_s6  ;;  %v4995_v63 = vpop.f32.mrf.mxu1 }
 0x515   :  { %v5014_v13 = vpop.f32.mrf.mxu0 }
 0x517   :  { %v1508_v40 = vpop.f32.mrf.mxu0 }
 0x518   :  { %1568 = vrot.lane.b32.xlu0 %v1508_v40, %s5705_s7  ;;  %1548 = vrot.lane.b32.xlu1 %v1387_v48, %s5704_s6 }
 0x519   :  { %v5017_v31 = vpop.f32.mrf.mxu0 }
 0x51b   :  { %v1513_v19 = vpop.f32.mrf.mxu0 }
 0x51c   :  { %1530 = vrot.lane.b32.xlu1 %v1271_v36, %s5703_s14  ;;  %1550 = vrot.lane.b32.xlu0 %v1392_v55, %s5704_s6 }
 0x51d   :  { %v5020_v7 = vpop.f32.mrf.mxu0 }
 0x520   :  { %1570 = vrot.lane.b32.xlu1 %v1513_v19, %s5705_s7 }
 0x55d   :  { %v1523_v45 = vpop.permute.xlu1 %1522 }
 0x55e   :  { %v1577_v49 = vsel %vm269_vm3, %v6418_v14, %v1523_v45 }
 0x562   :  { %v1525_v21 = vpop.permute.xlu0 %1524 }
 0x563   :  { %v1578_v28 = vsel %vm269_vm3, %v6425_v17, %v1525_v21 }
 0x566   :  { %v1527_v59 = vpop.permute.xlu1 %1526 }
 0x567   :  { %v1579_v14 = vsel %vm269_vm3, %v6428_v44, %v1527_v59 }
 0x56a   :  { %v1529_v24 = vpop.permute.xlu0 %1528 }
 0x56b   :  { %v1580_v17 = vsel %vm269_vm3, %v6438_v62, %v1529_v24 }
 0x573   :  { %v1543_v27 = vpop.permute.xlu0 %1542 }
 0x574   :  { %v1583_v50 = vsel %vm1582_vm7, %v1577_v49, %v1543_v27 }
 0x57e   :  { %v1563_v58 = vpop.permute.xlu1 %1562 }
 0x57f   :  { %v1589_v9 = vsel %vm1588_vm8, %v1583_v50, %v1563_v58 }
 0x580   :  { %5030 = vmatmul.mubr.msk.f32.vlgmr.msra.gmra.mxu1 %vm148_vm2, %v1589_v9 }
 0x581   :  { %5032 = vmatprep.mubr.msk.f32.mxu1 %vm5691_vm0, %v5690_v1 }
 0x582   :  { %v1565_v32 = vpop.permute.xlu0 %1564  ;;  %v1545_v29 = vpop.permute.xlu1 %1544 }
 0x583   :  { %v1584_v20 = vsel %vm1582_vm7, %v1578_v28, %v1545_v29 }
 0x584   :  { %v1590_v6 = vsel %vm1588_vm8, %v1584_v20, %v1565_v32 }
 0x585   :  { %5033 = vmatmul.mubr.msk.f32.gmra.mxu1 %vm148_vm2, %v1590_v6 }
 0x586   :  { %v1547_v33 = vpop.permute.xlu0 %1546  ;;  %v1567_v57 = vpop.permute.xlu1 %1566  ;;  %5035 = vmatprep.mubr.msk.f32.mxu1 %vm5691_vm0, %v5690_v1 }
 0x587   :  { %v1585_v10 = vsel %vm1582_vm7, %v1579_v14, %v1547_v33 }
 0x588   :  { %v1591_v51 = vsel %vm1588_vm8, %v1585_v10, %v1567_v57 }
 0x589   :  { %5036 = vmatmul.mubr.msk.f32.gmra.mxu1 %vm148_vm2, %v1591_v51  ;;  %v1803_v51 = vld [vmem:[%s7587_s1 + $0xf8] sm:$0xff] }
 0x58a   :  { %v1569_v42 = vpop.permute.xlu0 %1568  ;;  %v1549_v8 = vpop.permute.xlu1 %1548  ;;  %5038 = vmatprep.mubr.msk.f32.mxu1 %vm5691_vm0, %v5690_v1  ;;  %5045 = vmatpush3.msra.mxu0 %v1803_v51 }
 0x58b   :  { %v1586_v5 = vsel %vm1582_vm7, %v1580_v17, %v1549_v8  ;;  %5046 = vmatprep.subr.mxu0 %v5690_v1  ;;  %v1802_v17 = vld [vmem:[%s7587_s1 + $0xf0] sm:$0xff]  ;;  %v1800_v8 = vld [vmem:[%s7587_s1 + $0xe0] sm:$0xff] }
 0x58c   :  { %v1592_v44 = vsel %vm1588_vm8, %v1586_v5, %v1569_v42  ;;  %v1801_v42 = vld [vmem:[%s7587_s1 + $0xe8] sm:$0xff]  ;;  %5047 = vmatpush3.msra.mxu0 %v1802_v17 }
 0x58d   :  { %5039 = vmatmul.mubr.msk.f32.gmra.mxu1 %vm148_vm2, %v1592_v44  ;;  %5048 = vmatprep.subr.mxu0 %v5690_v1 }
 0x58e   :  { %v1531_v16 = vpop.permute.xlu1 %1530  ;;  %5041 = vmatprep.mubr.msk.f32.mxu1 %vm5691_vm0, %v5690_v1  ;;  %v1551_v3 = vpop.permute.xlu0 %1550  ;;  %5049 = vmatpush3.msra.mxu0 %v1801_v42 }
 0x58f   :  { %v1581_v37 = vsel %vm269_vm3, %v6442_v61, %v1531_v16  ;;  %5050 = vmatprep.subr.mxu0 %v5690_v1 }
 0x590   :  { %v1587_v47 = vsel %vm1582_vm7, %v1581_v37, %v1551_v3  ;;  %5051 = vmatpush3.msra.mxu0 %v1800_v8 }
 0x591   :  { %5098 = vmatprep.subr.mxu0 %v5690_v1 }
 0x592   :  { %v1571_v39 = vpop.permute.xlu1 %1570 }
 0x593   :  { %v1593_v62 = vsel %vm1588_vm8, %v1587_v47, %v1571_v39 }
 0x594   :  { %5042 = vmatmul.mubr.msk.f32.gmra.mxu1 %vm148_vm2, %v1593_v62 }
 0x595   :  { %5083 = vmatprep.mubr.msk.f32.mxu1 %vm5691_vm0, %v5690_v1 }
 0x640   :  { %v1684_v38 = vpop.f32.mrf.mxu1 }
 0x641   :  { %v1685_v15 = vadd.f32 %v4386_v46, %v1684_v38 }
 0x642   :  { %v5031_v36 = vpop.f32.mrf.mxu1 }
 0x643   :  { %v1708_v25 = vadd.f32 %v1685_v15, %v5801_v18 }
 0x645   :  { %v1689_v61 = vpop.f32.mrf.mxu1  ;;  %v1715_v41 = vsel %vm148_vm2, %v1708_v25, 0.0 }
 0x646   :  { %v1690_v11 = vadd.f32 %v4386_v46, %v1689_v61  ;;  %1716 = vadd.xlane.f32.xlu0 %v1715_v41  ;;  %v4392_v61 = vld [vmem:[%s7587_s1 + $0xd0] ss:$0 sm:$0xff] }
 0x647   :  { %v5034_v12 = vpop.f32.mrf.mxu1 }
 0x648   :  { %v1709_v2 = vadd.f32 %v1690_v11, %v5810_v22  ;;  %v4393_v12 = vld [vmem:[%s7587_s1 + $0xd8] ss:$0 sm:$0xff] }
 0x649   :  { %v1694_v52 = vpop.f32.mrf.mxu1 }
 0x64a   :  { %v1695_v54 = vadd.f32 %v4386_v46, %v1694_v52  ;;  %v1718_v56 = vsel %vm148_vm2, %v1709_v2, 0.0 }
 0x64b   :  { %1719 = vadd.xlane.f32.xlu1 %v1718_v56  ;;  %v5037_v53 = vpop.f32.mrf.mxu1 }
 0x64c   :  { %v1710_v23 = vadd.f32 %v1695_v54, %v5819_v26 }
 0x64d   :  { %v1699_v48 = vpop.f32.mrf.mxu1 }
 0x64e   :  { %v1700_v43 = vadd.f32 %v4386_v46, %v1699_v48  ;;  %v1721_v18 = vsel %vm148_vm2, %v1710_v23, 0.0 }
 0x64f   :  { %1722 = vadd.xlane.f32.xlu0 %v1721_v18  ;;  %v5040_v0 = vpop.f32.mrf.mxu1 }
 0x650   :  { %v1711_v60 = vadd.f32 %v1700_v43, %v5828_v30 }
 0x652   :  { %v1724_v4 = vsel %vm148_vm2, %v1711_v60, 0.0 }
 0x653   :  { %1725 = vadd.xlane.f32.xlu0 %v1724_v4 }
 0x654   :  { %v1704_v22 = vpop.f32.mrf.mxu1 }
 0x655   :  { %v1705_v55 = vadd.f32 %v4386_v46, %v1704_v22 }
 0x656   :  { %v5043_v35 = vpop.f32.mrf.mxu1 }
 0x657   :  { %v1712_v63 = vadd.f32 %v1705_v55, %v5837_v34 }
 0x659   :  { %v1728_v13 = vsel %vm1727_vm9, %v1712_v63, 0.0 }
 0x65a   :  { %1729 = vadd.xlane.f32.xlu1 %v1728_v13 }
 0x6cf   :  { %v1717_v26 = vpop.xlane.xlu0 %1716 }
 0x6d0   :  { %v1732_v40 = vmul.f32 0.03125, %v1717_v26 }
 0x6d2   :  { %v1737_v31 = vsub.f32 %v1708_v25, %v1732_v40 }
 0x6d4   :  { %v1720_v19 = vpop.xlane.xlu1 %1719  ;;  %v1742_v7 = vmul.f32 %v1737_v31, %v1737_v31 }
 0x6d5   :  { %v1733_v21 = vmul.f32 0.03125, %v1720_v19  ;;  %v1946_v19 = vld [vmem:[%s7587_s1 + $0x140] sm:$0xff] }
 0x6d6   :  { %v1747_v30 = vsel %vm148_vm2, %v1742_v7, 0.0  ;;  %5068 = vmatpush3.msra.mxu1 %v1946_v19  ;;  %v1945_v7 = vld [vmem:[%s7587_s1 + $0x138] sm:$0xff] }
 0x6d7   :  { %v1738_v45 = vsub.f32 %v1709_v2, %v1733_v21  ;;  %1748 = vadd.xlane.f32.xlu0 %v1747_v30  ;;  %5069 = vmatprep.subr.mxu1 %v5690_v1  ;;  %v1944_v21 = vld [vmem:[%s7587_s1 + $0x130] sm:$0xff]  ;;  %v1943_v30 = vld [vmem:[%s7587_s1 + $0x128] sm:$0xff] }
 0x6d8   :  { %v1723_v24 = vpop.xlane.xlu0 %1722  ;;  %5070 = vmatpush3.msra.mxu1 %v1945_v7 }
 0x6d9   :  { %v1734_v59 = vmul.f32 0.03125, %v1723_v24  ;;  %v1743_v27 = vmul.f32 %v1738_v45, %v1738_v45  ;;  %5071 = vmatprep.subr.mxu1 %v5690_v1  ;;  %v1941_v24 = vld [vmem:[%s7587_s1 + $0x118] sm:$0xff] }
 0x6da   :  { %5072 = vmatpush3.msra.mxu1 %v1944_v21 }
 0x6db   :  { %v6508_v49 = vsub.f32 %v1710_v23, %v1734_v59  ;;  %v1750_v34 = vsel %vm148_vm2, %v1743_v27, 0.0  ;;  %5073 = vmatprep.subr.mxu1 %v5690_v1  ;;  %v1940_v59 = vld [vmem:[%s7587_s1 + $0x110] sm:$0xff]  ;;  %v1939_v27 = vld [vmem:[%s7587_s1 + $0x108] sm:$0xff] }
 0x6dc   :  { %v1726_v50 = vpop.xlane.xlu0 %1725  ;;  %1751 = vadd.xlane.f32.xlu1 %v1750_v34  ;;  %5074 = vmatpush3.msra.mxu1 %v1943_v30 }
 0x6dd   :  { %v1735_v58 = vmul.f32 0.03125, %v1726_v50  ;;  %v1744_v9 = vmul.f32 %v6508_v49, %v6508_v49  ;;  %5075 = vmatprep.subr.mxu1 %v5690_v1 }
 0x6df   :  { %v6513_v28 = vsub.f32 %v1711_v60, %v1735_v58  ;;  %v1753_v32 = vsel %vm148_vm2, %v1744_v9, 0.0 }
 0x6e0   :  { %1754 = vadd.xlane.f32.xlu0 %v1753_v32 }
 0x6e1   :  { %v1745_v29 = vmul.f32 %v6513_v28, %v6513_v28 }
 0x6e3   :  { %v1730_v20 = vpop.xlane.xlu1 %1729  ;;  %v1756_v6 = vsel %vm148_vm2, %v1745_v29, 0.0 }
 0x6e4   :  { %v1736_v14 = vmul.f32 0.03125, %v1730_v20  ;;  %1757 = vadd.xlane.f32.xlu1 %v1756_v6 }
 0x6e6   :  { %v6519_v33 = vsub.f32 %v1712_v63, %v1736_v14 }
 0x6e8   :  { %v1746_v57 = vmul.f32 %v6519_v33, %v6519_v33 }
 0x6ea   :  { %v1759_v10 = vsel %vm1727_vm9, %v1746_v57, 0.0 }
 0x6eb   :  { %1760 = vadd.xlane.f32.xlu0 %v1759_v10 }
 0x760   :  { %v1749_v5 = vpop.xlane.xlu0 %1748 }
 0x761   :  { %v1762_v44 = vmul.f32 0.03125, %v1749_v5 }
 0x763   :  { %v1767_v16 = vadd.f32 1e-05, %v1762_v44 }
 0x765   :  { %5525 = vrsqrt.f32 %v1767_v16  ;;  %v1752_v3 = vpop.xlane.xlu1 %1751 }
 0x766   :  { %v1763_v37 = vmul.f32 0.03125, %v1752_v3 }
 0x768   :  { %v1768_v47 = vadd.f32 1e-05, %v1763_v37 }
 0x769   :  { %v1755_v39 = vpop.xlane.xlu0 %1754 }
 0x76a   :  { %5527 = vrsqrt.f32 %v1768_v47  ;;  %v1764_v62 = vmul.f32 0.03125, %v1755_v39 }
 0x76c   :  { %v1769_v46 = vadd.f32 1e-05, %v1764_v62 }
 0x76d   :  { %v1758_v38 = vpop.xlane.xlu1 %1757 }
 0x76e   :  { %5529 = vrsqrt.f32 %v1769_v46  ;;  %v1765_v15 = vmul.f32 0.03125, %v1758_v38 }
 0x770   :  { %v1770_v36 = vadd.f32 1e-05, %v1765_v15 }
 0x772   :  { %v5526_v25 = vpop.eup %5525  ;;  %5531 = vrsqrt.f32 %v1770_v36 }
 0x773   :  { %v1777_v41 = vmul.f32 %v5526_v25, %v1737_v31 }
 0x774   :  { %v1761_v11 = vpop.xlane.xlu0 %1760 }
 0x775   :  { %v1786_v2 = vmul.f32 %v4392_v61, %v1777_v41  ;;  %v1766_v52 = vmul.f32 0.03125, %v1761_v11 }
 0x777   :  { %v5528_v54 = vpop.eup %5527  ;;  %v1771_v56 = vadd.f32 1e-05, %v1766_v52  ;;  %v6546_v53 = vadd.f32 %v4393_v12, %v1786_v2 }
 0x778   :  { %v1778_v23 = vmul.f32 %v5528_v54, %v1738_v45  ;;  %v1942_v45 = vld [vmem:[%s7587_s1 + $0x120] sm:$0xff] }
 0x779   :  { %5533 = vrsqrt.f32 %v1771_v56  ;;  %5053 = vmatmul.mubr.msk.f32.vlgmr.msra.gmra.mxu0 %vm148_vm2, %v6546_v53  ;;  %5076 = vmatpush3.msra.mxu1 %v1942_v45 }
 0x77a   :  { %5055 = vmatprep.mubr.msk.f32.mxu0 %vm5691_vm0, %v5690_v1  ;;  %v1787_v48 = vmul.f32 %v4392_v61, %v1778_v23  ;;  %5077 = vmatprep.subr.mxu1 %v5690_v1 }
 0x77b   :  { %v5530_v43 = vpop.eup %5529  ;;  %5078 = vmatpush3.msra.mxu1 %v1941_v24 }
 0x77c   :  { %v6552_v18 = vadd.f32 %v4393_v12, %v1787_v48  ;;  %v1779_v0 = vmul.f32 %v5530_v43, %v6508_v49  ;;  %5079 = vmatprep.subr.mxu1 %v5690_v1  ;;  %v4394_v49 = vld [vmem:[%s7587_s1 + $0x100] ss:$0 sm:$0xff]  ;;  %v4400_v43 = vld [vmem:[%s7587_s1 + $0x148] ss:$0 sm:$0xff] }
 0x77d   :  { %5080 = vmatpush3.msra.mxu1 %v1940_v59 }
 0x77e   :  { %5056 = vmatmul.mubr.msk.f32.gmra.mxu0 %vm148_vm2, %v6552_v18  ;;  %v1788_v60 = vmul.f32 %v4392_v61, %v1779_v0  ;;  %5081 = vmatprep.subr.mxu1 %v5690_v1 }
 0x77f   :  { %v5532_v4 = vpop.eup %5531  ;;  %5058 = vmatprep.mubr.msk.f32.mxu0 %vm5691_vm0, %v5690_v1  ;;  %5082 = vmatpush3.msra.mxu1 %v1939_v27 }
 0x780   :  { %v6559_v22 = vadd.f32 %v4393_v12, %v1788_v60  ;;  %v1780_v55 = vmul.f32 %v5532_v4, %v6513_v28  ;;  %5121 = vmatprep.subr.mxu1 %v5690_v1 }
 0x782   :  { %5059 = vmatmul.mubr.msk.f32.gmra.mxu0 %vm148_vm2, %v6559_v22  ;;  %v1789_v35 = vmul.f32 %v4392_v61, %v1780_v55 }
 0x783   :  { %5061 = vmatprep.mubr.msk.f32.mxu0 %vm5691_vm0, %v5690_v1 }
 0x784   :  { %v6566_v63 = vadd.f32 %v4393_v12, %v1789_v35 }
 0x786   :  { %v5534_v13 = vpop.eup %5533  ;;  %5062 = vmatmul.mubr.msk.f32.gmra.mxu0 %vm148_vm2, %v6566_v63 }
 0x787   :  { %5064 = vmatprep.mubr.msk.f32.mxu0 %vm5691_vm0, %v5690_v1  ;;  %v1781_v26 = vmul.f32 %v5534_v13, %v6519_v33 }
 0x789   :  { %v1790_v40 = vmul.f32 %v4392_v61, %v1781_v26 }
 0x78b   :  { %v6573_v31 = vadd.f32 %v4393_v12, %v1790_v40 }
 0x78d   :  { %5065 = vmatmul.mubr.msk.f32.gmra.mxu0 %vm148_vm2, %v6573_v31 }
 0x78e   :  { %5106 = vmatprep.mubr.msk.f32.mxu0 %vm5691_vm0, %v5690_v1 }
 0x839   :  { %v1890_v34 = vpop.f32.mrf.mxu0 }
 0x83a   :  { %v1891_v50 = vadd.f32 %v4394_v49, %v1890_v34 }
 0x83b   :  { %v5054_v58 = vpop.f32.mrf.mxu0 }
 0x83c   :  { %v1919_v9 = vmul.f32 0.70710677, %v1891_v50  ;;  %v1914_v5 = vmul.f32 0.5, %v1891_v50 }
 0x83e   :  { %5535 = verf.f32 %v1919_v9  ;;  %v1895_v28 = vpop.f32.mrf.mxu0 }
 0x83f   :  { %v1896_v32 = vadd.f32 %v4394_v49, %v1895_v28 }
 0x840   :  { %v5057_v29 = vpop.f32.mrf.mxu0 }
 0x841   :  { %v1920_v20 = vmul.f32 0.70710677, %v1896_v32  ;;  %v1915_v46 = vmul.f32 0.5, %v1896_v32 }
 0x842   :  { %v1900_v6 = vpop.f32.mrf.mxu0 }
 0x843   :  { %5537 = verf.f32 %v1920_v20  ;;  %v1901_v14 = vadd.f32 %v4394_v49, %v1900_v6 }
 0x844   :  { %v5060_v33 = vpop.f32.mrf.mxu0 }
 0x845   :  { %v1921_v57 = vmul.f32 0.70710677, %v1901_v14  ;;  %v1916_v25 = vmul.f32 0.5, %v1901_v14 }
 0x846   :  { %v1905_v10 = vpop.f32.mrf.mxu0 }
 0x847   :  { %5539 = verf.f32 %v1921_v57  ;;  %v1906_v51 = vadd.f32 %v4394_v49, %v1905_v10 }
 0x848   :  { %v5063_v17 = vpop.f32.mrf.mxu0 }
 0x849   :  { %v1922_v42 = vmul.f32 0.70710677, %v1906_v51  ;;  %v1917_v12 = vmul.f32 0.5, %v1906_v51 }
 0x84b   :  { %v5536_v8 = vpop.eup %5535  ;;  %5541 = verf.f32 %v1922_v42 }
 0x84c   :  { %v1929_v44 = vadd.f32 1.0, %v5536_v8 }
 0x84d   :  { %v1910_v16 = vpop.f32.mrf.mxu0 }
 0x84e   :  { %v1934_v3 = vmul.f32 %v1929_v44, %v1914_v5  ;;  %v1911_v37 = vadd.f32 %v4394_v49, %v1910_v16 }
 0x84f   :  { %v5066_v47 = vpop.f32.mrf.mxu0 }
 0x850   :  { %v5538_v39 = vpop.eup %5537  ;;  %v1923_v62 = vmul.f32 0.70710677, %v1911_v37  ;;  %5084 = vmatmul.mubr.msk.f32.vlgmr.msra.gmra.mxu1 %vm1952_vm10, %v1934_v3  ;;  %v1918_v56 = vmul.f32 0.5, %v1911_v37 }
 0x851   :  { %v1930_v38 = vadd.f32 1.0, %v5538_v39  ;;  %5086 = vmatprep.mubr.msk.f32.mxu1 %vm5691_vm0, %v5690_v1 }
 0x852   :  { %5543 = verf.f32 %v1923_v62 }
 0x853   :  { %v1935_v15 = vmul.f32 %v1930_v38, %v1915_v46 }
 0x854   :  { %v5540_v36 = vpop.eup %5539 }
 0x855   :  { %v1931_v61 = vadd.f32 1.0, %v5540_v36  ;;  %5087 = vmatmul.mubr.msk.f32.gmra.mxu1 %vm1952_vm10, %v1935_v15  ;;  %v2151_v36 = vld [vmem:[%s7587_s1 + $0x178] sm:$0xff] }
 0x856   :  { %5089 = vmatprep.mubr.msk.f32.mxu1 %vm5691_vm0, %v5690_v1  ;;  %5099 = vmatpush3.msra.mxu0 %v2151_v36 }
 0x857   :  { %v1936_v41 = vmul.f32 %v1931_v61, %v1916_v25  ;;  %5100 = vmatprep.subr.mxu0 %v5690_v1  ;;  %v2150_v25 = vld [vmem:[%s7587_s1 + $0x170] sm:$0xff]  ;;  %v2149_v61 = vld [vmem:[%s7587_s1 + $0x168] sm:$0xff] }
 0x858   :  { %v5542_v11 = vpop.eup %5541  ;;  %5101 = vmatpush3.msra.mxu0 %v2150_v25 }
 0x859   :  { %v1932_v2 = vadd.f32 1.0, %v5542_v11  ;;  %5090 = vmatmul.mubr.msk.f32.gmra.mxu1 %vm1952_vm10, %v1936_v41  ;;  %5102 = vmatprep.subr.mxu0 %v5690_v1  ;;  %v2148_v41 = vld [vmem:[%s7587_s1 + $0x160] sm:$0xff] }
 0x85a   :  { %5092 = vmatprep.mubr.msk.f32.mxu1 %vm5691_vm0, %v5690_v1  ;;  %5103 = vmatpush3.msra.mxu0 %v2149_v61 }
 0x85b   :  { %v1937_v52 = vmul.f32 %v1932_v2, %v1917_v12  ;;  %5104 = vmatprep.subr.mxu0 %v5690_v1 }
 0x85c   :  { %5105 = vmatpush3.msra.mxu0 %v2148_v41 }
 0x85d   :  { %5093 = vmatmul.mubr.msk.f32.gmra.mxu1 %vm1952_vm10, %v1937_v52  ;;  %5146 = vmatprep.subr.mxu0 %v5690_v1 }
 0x85e   :  { %5095 = vmatprep.mubr.msk.f32.mxu1 %vm5691_vm0, %v5690_v1 }
 0x85f   :  { %v5544_v54 = vpop.eup %5543 }
 0x860   :  { %v1933_v23 = vadd.f32 1.0, %v5544_v54 }
 0x862   :  { %v1938_v48 = vmul.f32 %v1933_v23, %v1918_v56 }
 0x864   :  { %5096 = vmatmul.mubr.msk.f32.gmra.mxu1 %vm1952_vm10, %v1938_v48 }
 0x865   :  { %5131 = vmatprep.mubr.msk.f32.mxu1 %vm5691_vm0, %v5690_v1 }
 0x910   :  { %v2034_v0 = vpop.f32.mrf.mxu1 }
 0x911   :  { %v2035_v60 = vadd.f32 %v4400_v43, %v2034_v0 }
 0x912   :  { %v5085_v4 = vpop.f32.mrf.mxu1 }
 0x913   :  { %v2058_v55 = vadd.f32 %v2035_v60, %v6546_v53 }
 0x915   :  { %v2039_v35 = vpop.f32.mrf.mxu1  ;;  %v2065_v13 = vsel %vm148_vm2, %v2058_v55, 0.0 }
 0x916   :  { %v2040_v26 = vadd.f32 %v4400_v43, %v2039_v35  ;;  %2066 = vadd.xlane.f32.xlu1 %v2065_v13  ;;  %v4406_v35 = vld [vmem:[%s7587_s1 + $0x150] ss:$0 sm:$0xff] }
 0x917   :  { %v5088_v40 = vpop.f32.mrf.mxu1 }
 0x918   :  { %v2059_v19 = vadd.f32 %v2040_v26, %v6552_v18  ;;  %v4407_v40 = vld [vmem:[%s7587_s1 + $0x158] ss:$0 sm:$0xff] }
 0x919   :  { %v2044_v7 = vpop.f32.mrf.mxu1 }
 0x91a   :  { %v2045_v21 = vadd.f32 %v4400_v43, %v2044_v7  ;;  %v2068_v30 = vsel %vm148_vm2, %v2059_v19, 0.0 }
 0x91b   :  { %2069 = vadd.xlane.f32.xlu0 %v2068_v30  ;;  %v5091_v45 = vpop.f32.mrf.mxu1 }
 0x91c   :  { %v2060_v24 = vadd.f32 %v2045_v21, %v6559_v22 }
 0x91d   :  { %v2049_v59 = vpop.f32.mrf.mxu1 }
 0x91e   :  { %v2050_v27 = vadd.f32 %v4400_v43, %v2049_v59  ;;  %v2071_v53 = vsel %vm148_vm2, %v2060_v24, 0.0 }
 0x91f   :  { %2072 = vadd.xlane.f32.xlu1 %v2071_v53  ;;  %v5094_v49 = vpop.f32.mrf.mxu1 }
 0x920   :  { %v2061_v34 = vadd.f32 %v2050_v27, %v6566_v63 }
 0x922   :  { %v2074_v50 = vsel %vm148_vm2, %v2061_v34, 0.0 }
 0x923   :  { %2075 = vadd.xlane.f32.xlu0 %v2074_v50 }
 0x924   :  { %v2054_v18 = vpop.f32.mrf.mxu1 }
 0x925   :  { %v2055_v58 = vadd.f32 %v4400_v43, %v2054_v18 }
 0x926   :  { %v5097_v9 = vpop.f32.mrf.mxu1 }
 0x927   :  { %v2062_v28 = vadd.f32 %v2055_v58, %v6573_v31 }
 0x929   :  { %v2077_v32 = vsel %vm1727_vm9, %v2062_v28, 0.0 }
 0x92a   :  { %2078 = vadd.xlane.f32.xlu1 %v2077_v32 }
 0x99f   :  { %v2067_v22 = vpop.xlane.xlu1 %2066 }
 0x9a0   :  { %v2080_v29 = vmul.f32 0.03125, %v2067_v22 }
 0x9a2   :  { %v2085_v20 = vsub.f32 %v2058_v55, %v2080_v29 }
 0x9a4   :  { %v2070_v6 = vpop.xlane.xlu0 %2069  ;;  %v2090_v14 = vmul.f32 %v2085_v20, %v2085_v20 }
 0x9a5   :  { %v2081_v33 = vmul.f32 0.03125, %v2070_v6 }
 0x9a6   :  { %v2095_v57 = vsel %vm148_vm2, %v2090_v14, 0.0 }
 0x9a7   :  { %v2086_v63 = vsub.f32 %v2059_v19, %v2081_v33  ;;  %2096 = vadd.xlane.f32.xlu0 %v2095_v57  ;;  %v4408_v33 = vld [vmem:[%s7587_s1 + $0x180] ss:$0 sm:$0xff] }
 0x9a8   :  { %v2073_v10 = vpop.xlane.xlu1 %2072 }
 0x9a9   :  { %v2082_v51 = vmul.f32 0.03125, %v2073_v10  ;;  %v2091_v17 = vmul.f32 %v2086_v63, %v2086_v63 }
 0x9ab   :  { %v6643_v42 = vsub.f32 %v2060_v24, %v2082_v51  ;;  %v2098_v31 = vsel %vm148_vm2, %v2091_v17, 0.0 }
 0x9ac   :  { %v2076_v8 = vpop.xlane.xlu0 %2075  ;;  %2099 = vadd.xlane.f32.xlu1 %v2098_v31 }
 0x9ad   :  { %v2083_v5 = vmul.f32 0.03125, %v2076_v8  ;;  %v2092_v44 = vmul.f32 %v6643_v42, %v6643_v42 }
 0x9af   :  { %v6648_v16 = vsub.f32 %v2061_v34, %v2083_v5  ;;  %v2101_v3 = vsel %vm148_vm2, %v2092_v44, 0.0 }
 0x9b0   :  { %2102 = vadd.xlane.f32.xlu0 %v2101_v3 }
 0x9b1   :  { %v2093_v37 = vmul.f32 %v6648_v16, %v6648_v16 }
 0x9b3   :  { %v2079_v47 = vpop.xlane.xlu1 %2078  ;;  %v2104_v39 = vsel %vm148_vm2, %v2093_v37, 0.0 }
 0x9b4   :  { %v2084_v62 = vmul.f32 0.03125, %v2079_v47  ;;  %2105 = vadd.xlane.f32.xlu1 %v2104_v39 }
 0x9b6   :  { %v6654_v46 = vsub.f32 %v2062_v28, %v2084_v62 }
 0x9b8   :  { %v2094_v38 = vmul.f32 %v6654_v46, %v6654_v46 }
 0x9ba   :  { %v2107_v15 = vsel %vm1727_vm9, %v2094_v38, 0.0 }
 0x9bb   :  { %2108 = vadd.xlane.f32.xlu0 %v2107_v15 }
 0xa30   :  { %v2097_v11 = vpop.xlane.xlu0 %2096 }
 0xa31   :  { %v2110_v12 = vmul.f32 0.03125, %v2097_v11 }
 0xa33   :  { %v2115_v2 = vadd.f32 1e-05, %v2110_v12 }
 0xa35   :  { %5545 = vrsqrt.f32 %v2115_v2  ;;  %v2100_v52 = vpop.xlane.xlu1 %2099 }
 0xa36   :  { %v2111_v54 = vmul.f32 0.03125, %v2100_v52 }
 0xa38   :  { %v2116_v56 = vadd.f32 1e-05, %v2111_v54 }
 0xa39   :  { %v2103_v23 = vpop.xlane.xlu0 %2102 }
 0xa3a   :  { %5547 = vrsqrt.f32 %v2116_v56  ;;  %v2112_v48 = vmul.f32 0.03125, %v2103_v23 }
 0xa3c   :  { %v2117_v43 = vadd.f32 1e-05, %v2112_v48 }
 0xa3d   :  { %v2106_v0 = vpop.xlane.xlu1 %2105 }
 0xa3e   :  { %5549 = vrsqrt.f32 %v2117_v43  ;;  %v2113_v60 = vmul.f32 0.03125, %v2106_v0 }
 0xa40   :  { %v2118_v4 = vadd.f32 1e-05, %v2113_v60 }
 0xa42   :  { %v5546_v55 = vpop.eup %5545  ;;  %5551 = vrsqrt.f32 %v2118_v4 }
 0xa43   :  { %v2125_v13 = vmul.f32 %v5546_v55, %v2085_v20 }
 0xa44   :  { %v2109_v26 = vpop.xlane.xlu0 %2108 }
 0xa45   :  { %v2134_v19 = vmul.f32 %v4406_v35, %v2125_v13  ;;  %v2114_v7 = vmul.f32 0.03125, %v2109_v26 }
 0xa47   :  { %v5548_v21 = vpop.eup %5547  ;;  %v2119_v30 = vadd.f32 1e-05, %v2114_v7  ;;  %v6681_v45 = vadd.f32 %v4407_v40, %v2134_v19 }
 0xa48   :  { %v2126_v24 = vmul.f32 %v5548_v21, %v2086_v63 }
 0xa49   :  { %5553 = vrsqrt.f32 %v2119_v30  ;;  %5107 = vmatmul.mubr.msk.f32.vlgmr.msra.gmra.mxu0 %vm148_vm2, %v6681_v45 }
 0xa4a   :  { %5109 = vmatprep.mubr.msk.f32.mxu0 %vm5691_vm0, %v5690_v1  ;;  %v2135_v59 = vmul.f32 %v4406_v35, %v2126_v24 }
 0xa4b   :  { %v5550_v27 = vpop.eup %5549 }
 0xa4c   :  { %v6687_v53 = vadd.f32 %v4407_v40, %v2135_v59  ;;  %v2127_v49 = vmul.f32 %v5550_v27, %v6643_v42 }
 0xa4e   :  { %5110 = vmatmul.mubr.msk.f32.gmra.mxu0 %vm148_vm2, %v6687_v53  ;;  %v2136_v34 = vmul.f32 %v4406_v35, %v2127_v49 }
 0xa4f   :  { %v5552_v50 = vpop.eup %5551  ;;  %5112 = vmatprep.mubr.msk.f32.mxu0 %vm5691_vm0, %v5690_v1 }
 0xa50   :  { %v6694_v18 = vadd.f32 %v4407_v40, %v2136_v34  ;;  %v2128_v58 = vmul.f32 %v5552_v50, %v6648_v16 }
 0xa52   :  { %5113 = vmatmul.mubr.msk.f32.gmra.mxu0 %vm148_vm2, %v6694_v18  ;;  %v2137_v9 = vmul.f32 %v4406_v35, %v2128_v58 }
 0xa53   :  { %5115 = vmatprep.mubr.msk.f32.mxu0 %vm5691_vm0, %v5690_v1 }
 0xa54   :  { %v6701_v28 = vadd.f32 %v4407_v40, %v2137_v9 }
 0xa56   :  { %v5554_v32 = vpop.eup %5553  ;;  %5116 = vmatmul.mubr.msk.f32.gmra.mxu0 %vm148_vm2, %v6701_v28 }
 0xa57   :  { %5118 = vmatprep.mubr.msk.f32.mxu0 %vm5691_vm0, %v5690_v1  ;;  %v2129_v22 = vmul.f32 %v5554_v32, %v6654_v46 }
 0xa59   :  { %v2138_v29 = vmul.f32 %v4406_v35, %v2129_v22 }
 0xa5b   :  { %v6708_v20 = vadd.f32 %v4407_v40, %v2138_v29 }
 0xa5d   :  { %5119 = vmatmul.mubr.msk.f32.gmra.mxu0 %vm148_vm2, %v6708_v20 }
 0xa5e   :  { %5156 = vmatprep.mubr.msk.f32.mxu0 %vm5691_vm0, %v5690_v1 }
 0xb09   :  { %v2238_v6 = vpop.f32.mrf.mxu0 }
 0xb0a   :  { %v6739_v37 = vadd.f32 %v4408_v33, %v2238_v6 }
 0xb0b   :  { %v5108_v14 = vpop.f32.mrf.mxu0 }
 0xb0e   :  { %v2243_v57 = vpop.f32.mrf.mxu0 }
 0xb0f   :  { %v6717_v63 = vadd.f32 %v4408_v33, %v2243_v57 }
 0xb10   :  { %v5111_v10 = vpop.f32.mrf.mxu0 }
 0xb11   :  { %2269 = vrot.lane.b32.xlu0 %v6717_v63, %s5693_s23 }
 0xb12   :  { %v2248_v51 = vpop.f32.mrf.mxu0 }
 0xb13   :  { %v6721_v17 = vadd.f32 %v4408_v33, %v2248_v51 }
 0xb14   :  { %v5114_v42 = vpop.f32.mrf.mxu0 }
 0xb15   :  { %2411 = vrot.lane.b32.xlu1 %v6721_v17, %s5692_s22  ;;  %2271 = vrot.lane.b32.xlu0 %v6721_v17, %s5693_s23 }
 0xb16   :  { %v2253_v31 = vpop.f32.mrf.mxu0 }
 0xb17   :  { %v6727_v8 = vadd.f32 %v4408_v33, %v2253_v31 }
 0xb18   :  { %v5117_v5 = vpop.f32.mrf.mxu0 }
 0xb19   :  { %2273 = vrot.lane.b32.xlu1 %v6727_v8, %s5693_s23 }
 0xb1d   :  { %2413 = vrot.lane.b32.xlu1 %v6727_v8, %s5692_s22  ;;  %v2258_v44 = vpop.f32.mrf.mxu0 }
 0xb1e   :  { %v6733_v16 = vadd.f32 %v4408_v33, %v2258_v44  ;;  %v6949_v44 = vld [vmem:[%s7587_s1 + $0x58] sm:$0xff] }
 0xb1f   :  { %v5120_v3 = vpop.f32.mrf.mxu0 }
 0xb20   :  { %2415 = vrot.lane.b32.xlu0 %v6733_v16, %s5692_s22 }
 0xb21   :  { %2275 = vrot.lane.b32.xlu1 %v6733_v16, %s5693_s23 }
 0xb24   :  { %2267 = vrot.lane.b32.xlu0 %v6739_v37, %s5693_s23 }
 0xb25   :  { %2409 = vrot.lane.b32.xlu1 %v6717_v63, %s5692_s22 }
 0xb28   :  { %2397 = vrot.lane.b32.xlu0 %v6739_v37, %s5694_s24 }
 0xb29   :  { %2407 = vrot.lane.b32.xlu1 %v6739_v37, %s5692_s22 }
 0xb2c   :  { %2553 = vrot.lane.b32.xlu0 %v6727_v8, %s5696_s26 }
 0xb2d   :  { %2399 = vrot.lane.b32.xlu1 %v6717_v63, %s5694_s24 }
 0xb30   :  { %2401 = vrot.lane.b32.xlu0 %v6721_v17, %s5694_s24 }
 0xb31   :  { %2693 = vrot.lane.b32.xlu1 %v6727_v8, %s5695_s25 }
 0xb34   :  { %2695 = vrot.lane.b32.xlu0 %v6733_v16, %s5695_s25 }
 0xb35   :  { %2555 = vrot.lane.b32.xlu1 %v6733_v16, %s5696_s26 }
 0xb38   :  { %2691 = vrot.lane.b32.xlu0 %v6721_v17, %s5695_s25 }
 0xb39   :  { %2551 = vrot.lane.b32.xlu1 %v6721_v17, %s5696_s26 }
 0xb3c   :  { %2549 = vrot.lane.b32.xlu0 %v6717_v63, %s5696_s26 }
 0xb3d   :  { %2403 = vrot.lane.b32.xlu1 %v6727_v8, %s5694_s24 }
 0xb40   :  { %2687 = vrot.lane.b32.xlu0 %v6739_v37, %s5695_s25 }
 0xb41   :  { %2689 = vrot.lane.b32.xlu1 %v6717_v63, %s5695_s25  ;;  %s5706_s25 = smov [#allocation2]  }
 0xb44   :  { %2405 = vrot.lane.b32.xlu0 %v6733_v16, %s5694_s24 }
 0xb45   :  { %2547 = vrot.lane.b32.xlu1 %v6739_v37, %s5696_s26  ;;  %s4303_s26 = sshll.u32 %s5706_s25, 4  ;;  %s4304_s26 = int_to_ptr.vmem [resolvable:$true] %s4303_s26 }
 0xb46   :  { %p5673_p1 = scmp.lt.s32.totalorder %s4304_s26, %s4304_s26 }
 0xb48   :  { %2677 = vrot.lane.b32.xlu0 %v6739_v37, %s5698_s28 }
 0xb49   :  { %2537 = vrot.lane.b32.xlu1 %v6739_v37, %s5697_s27 }
 0xb4c   :  { %2679 = vrot.lane.b32.xlu0 %v6717_v63, %s5698_s28 }
 0xb4d   :  { %2539 = vrot.lane.b32.xlu1 %v6717_v63, %s5697_s27 }
 0xb50   :  { %2681 = vrot.lane.b32.xlu0 %v6721_v17, %s5698_s28 }
 0xb51   :  { %2541 = vrot.lane.b32.xlu1 %v6721_v17, %s5697_s27 }
 0xb54   :  { %2683 = vrot.lane.b32.xlu0 %v6727_v8, %s5698_s28 }
 0xb55   :  { %2543 = vrot.lane.b32.xlu1 %v6727_v8, %s5697_s27 }
 0xb58   :  { %3043 = vrot.lane.b32.xlu0 %v6727_v8, %s5699_s29 }
 0xb59   :  { %3162 = vrot.lane.b32.xlu1 %v6721_v17, %s5700_s30 }
 0xb5c   :  { %3164 = vrot.lane.b32.xlu0 %v6727_v8, %s5700_s30 }
 0xb5d   :  { %3158 = vrot.lane.b32.xlu1 %v6739_v37, %s5700_s30 }
 0xb60   :  { %3041 = vrot.lane.b32.xlu0 %v6721_v17, %s5699_s29 }
 0xb61   :  { %3166 = vrot.lane.b32.xlu1 %v6733_v16, %s5700_s30 }
 0xb64   :  { %3039 = vrot.lane.b32.xlu0 %v6717_v63, %s5699_s29 }
 0xb68   :  { %3160 = vrot.lane.b32.xlu0 %v6717_v63, %s5700_s30 }
 0xb6c   :  { %3037 = vrot.lane.b32.xlu0 %v6739_v37, %s5699_s29 }
 0xb70   :  { %3285 = vrot.lane.b32.xlu0 %v6727_v8, %s5701_s3 }
 0xb74   :  { %3406 = vrot.lane.b32.xlu0 %v6727_v8, %s5702_s4 }
 0xb78   :  { %2545 = vrot.lane.b32.xlu0 %v6733_v16, %s5697_s27  ;;  %s5668_s27 = scalar_lea.vmem %s4304_s26, 32 }
 0xb79   :  { %p5669_p0 = scmp.ne.s32.totalorder %s4304_s26, %s5668_s27  ;;  %p5674_p2 = scmp.lt.s32.totalorder %s5668_s27, %s5668_s27 }
 0xb7b   :  { %p5675_p3 = por %p5674_p2, %p5673_p1 }
 0xb7c   :  { %3045 = vrot.lane.b32.xlu0 %v6733_v16, %s5699_s29 }
 0xb7d   :  { %p5676_p4 = pnand %p5675_p3, %p5669_p0 }
 0xb80   :  { %2685 = vrot.lane.b32.xlu0 %v6733_v16, %s5698_s28 }
 0xb83   :  { %v2270_v39 = vpop.permute.xlu0 %2269 }
 0xb84   :  { %3287 = vrot.lane.b32.xlu0 %v6733_v16, %s5701_s3 }
 0xb87   :  { %v2412_v47 = vpop.permute.xlu1 %2411  ;;  %v2272_v46 = vpop.permute.xlu0 %2271 }
 0xb88   :  { %3408 = vrot.lane.b32.xlu0 %v6733_v16, %s5702_s4 }
 0xb8b   :  { %v2274_v62 = vpop.permute.xlu1 %2273 }
 0xb8f   :  { %v2414_v38 = vpop.permute.xlu1 %2413 }
 0xb92   :  { %v2416_v15 = vpop.permute.xlu0 %2415 }
 0xb93   :  { %5147 = vmatpush3.xpose.msk.msra.mxu0 %vm269_vm3, %v2416_v15  ;;  %v2276_v36 = vpop.permute.xlu1 %2275 }
 0xb94   :  { %5122 = vmatpush3.xpose.msk.msra.mxu1 %vm269_vm3, %v2276_v36  ;;  %5148 = vmatprep.subr.mxu0 %v5690_v1 }
 0xb95   :  { %5123 = vmatprep.subr.mxu1 %v5690_v1 }
 0xb96   :  { %v2268_v25 = vpop.permute.xlu0 %2267 }
 0xb97   :  { %5149 = vmatpush3.xpose.msk.msra.mxu0 %vm269_vm3, %v2414_v38  ;;  %v2410_v61 = vpop.permute.xlu1 %2409 }
 0xb98   :  { %5124 = vmatpush3.xpose.msk.msra.mxu1 %vm269_vm3, %v2274_v62  ;;  %5150 = vmatprep.subr.mxu0 %v5690_v1 }
 0xb99   :  { %5125 = vmatprep.subr.mxu1 %v5690_v1 }
 0xb9a   :  { %v2398_v41 = vpop.permute.xlu0 %2397 }
 0xb9b   :  { %5151 = vmatpush3.xpose.msk.msra.mxu0 %vm269_vm3, %v2412_v47  ;;  %v2408_v11 = vpop.permute.xlu1 %2407 }
 0xb9c   :  { %5126 = vmatpush3.xpose.msk.msra.mxu1 %vm269_vm3, %v2272_v46  ;;  %5152 = vmatprep.subr.mxu0 %v5690_v1 }
 0xb9d   :  { %5127 = vmatprep.subr.mxu1 %v5690_v1 }
 0xb9e   :  { %v2554_v12 = vpop.permute.xlu0 %2553 }
 0xb9f   :  { %5153 = vmatpush3.xpose.msk.msra.mxu0 %vm269_vm3, %v2410_v61  ;;  %v2400_v2 = vpop.permute.xlu1 %2399  ;;  %v6964_v61 = vld [vmem:[%s7587_s1 + $0x60] sm:$0xff] }
 0xba0   :  { %5128 = vmatpush3.xpose.msk.msra.mxu1 %vm269_vm3, %v2270_v39  ;;  %5154 = vmatprep.subr.mxu0 %v5690_v1 }
 0xba1   :  { %5129 = vmatprep.subr.mxu1 %v5690_v1 }
 0xba2   :  { %v2402_v52 = vpop.permute.xlu0 %2401 }
 0xba3   :  { %5155 = vmatpush3.xpose.msk.msra.mxu0 %vm269_vm3, %v2408_v11  ;;  %v2694_v54 = vpop.permute.xlu1 %2693 }
 0xba4   :  { %5130 = vmatpush3.xpose.msk.msra.mxu1 %vm269_vm3, %v2268_v25  ;;  %5196 = vmatprep.subr.mxu0 %v5690_v1 }
 0xba5   :  { %5171 = vmatprep.subr.mxu1 %v5690_v1 }
 0xba6   :  { %v2696_v56 = vpop.permute.xlu0 %2695  ;;  %5157 = vmatmul.mubr.msk.f32.vlgmr.msra.gmra.mxu0 %vm269_vm3, %v2398_v41 }
 0xba7   :  { %5132 = vmatmul.mubr.msk.f32.vlgmr.msra.gmra.mxu1 %vm269_vm3, %v6739_v37  ;;  %5197 = vmatpush3.xpose.msk.msra.mxu0 %vm269_vm3, %v2696_v56  ;;  %v2556_v23 = vpop.permute.xlu1 %2555 }
 0xba8   :  { %5172 = vmatpush3.xpose.msk.msra.mxu1 %vm269_vm3, %v2556_v23  ;;  %5159 = vmatprep.mubr.msk.f32.mxu0 %vm5691_vm0, %v5690_v1 }
 0xba9   :  { %5134 = vmatprep.mubr.msk.f32.mxu1 %vm5691_vm0, %v5690_v1  ;;  %5198 = vmatprep.subr.mxu0 %v5690_v1 }
 0xbaa   :  { %v2692_v48 = vpop.permute.xlu0 %2691  ;;  %5160 = vmatmul.mubr.msk.f32.gmra.mxu0 %vm269_vm3, %v2400_v2  ;;  %5173 = vmatprep.subr.mxu1 %v5690_v1 }
 0xbab   :  { %5135 = vmatmul.mubr.msk.f32.gmra.mxu1 %vm269_vm3, %v6717_v63  ;;  %5199 = vmatpush3.xpose.msk.msra.mxu0 %vm269_vm3, %v2694_v54  ;;  %v2552_v43 = vpop.permute.xlu1 %2551 }
 0xbac   :  { %5174 = vmatpush3.xpose.msk.msra.mxu1 %vm269_vm3, %v2554_v12  ;;  %5162 = vmatprep.mubr.msk.f32.mxu0 %vm5691_vm0, %v5690_v1 }
 0xbad   :  { %5137 = vmatprep.mubr.msk.f32.mxu1 %vm5691_vm0, %v5690_v1  ;;  %5200 = vmatprep.subr.mxu0 %v5690_v1 }
 0xbae   :  { %v2550_v0 = vpop.permute.xlu0 %2549  ;;  %5163 = vmatmul.mubr.msk.f32.gmra.mxu0 %vm269_vm3, %v2402_v52  ;;  %5175 = vmatprep.subr.mxu1 %v5690_v1 }
 0xbaf   :  { %5138 = vmatmul.mubr.msk.f32.gmra.mxu1 %vm269_vm3, %v6721_v17  ;;  %5201 = vmatpush3.xpose.msk.msra.mxu0 %vm269_vm3, %v2692_v48  ;;  %v2404_v60 = vpop.permute.xlu1 %2403 }
 0xbb0   :  { %5176 = vmatpush3.xpose.msk.msra.mxu1 %vm269_vm3, %v2552_v43  ;;  %5165 = vmatprep.mubr.msk.f32.mxu0 %vm5691_vm0, %v5690_v1 }
 0xbb1   :  { %5140 = vmatprep.mubr.msk.f32.mxu1 %vm5691_vm0, %v5690_v1  ;;  %5177 = vmatprep.subr.mxu1 %v5690_v1 }
 0xbb2   :  { %v2688_v4 = vpop.permute.xlu0 %2687  ;;  %5166 = vmatmul.mubr.msk.f32.gmra.mxu0 %vm269_vm3, %v2404_v60  ;;  %5202 = vmatprep.subr.mxu0 %v5690_v1  ;;  %v6979_v60 = vld [vmem:[%s7587_s1 + $0x68] sm:$0xff] }
 0xbb3   :  { %5141 = vmatmul.mubr.msk.f32.gmra.mxu1 %vm269_vm3, %v6727_v8  ;;  %v2690_v55 = vpop.permute.xlu1 %2689  ;;  %5168 = vmatprep.mubr.msk.f32.mxu0 %vm5691_vm0, %v5690_v1 }
 0xbb4   :  { %5178 = vmatpush3.xpose.msk.msra.mxu1 %vm269_vm3, %v2550_v0  ;;  %5203 = vmatpush3.xpose.msk.msra.mxu0 %vm269_vm3, %v2690_v55 }
 0xbb5   :  { %5143 = vmatprep.mubr.msk.f32.mxu1 %vm5691_vm0, %v5690_v1  ;;  %5179 = vmatprep.subr.mxu1 %v5690_v1 }
 0xbb6   :  { %v2406_v35 = vpop.permute.xlu0 %2405  ;;  %5204 = vmatprep.subr.mxu0 %v5690_v1 }
 0xbb7   :  { %5144 = vmatmul.mubr.msk.f32.gmra.mxu1 %vm269_vm3, %v6733_v16  ;;  %5169 = vmatmul.mubr.msk.f32.gmra.mxu0 %vm269_vm3, %v2406_v35  ;;  %v2548_v13 = vpop.permute.xlu1 %2547 }
 0xbb8   :  { %5180 = vmatpush3.xpose.msk.msra.mxu1 %vm269_vm3, %v2548_v13  ;;  %5205 = vmatpush3.xpose.msk.msra.mxu0 %vm269_vm3, %v2688_v4 }
 0xbb9   :  { %5206 = vmatprep.mubr.msk.f32.mxu0 %vm5691_vm0, %v5690_v1  ;;  %5181 = vmatprep.mubr.msk.f32.mxu1 %vm5691_vm0, %v5690_v1 }
 0xbba   :  { %v2678_v26 = vpop.permute.xlu0 %2677  ;;  %5246 = vmatprep.subr.mxu0 %v5690_v1  ;;  %5221 = vmatprep.subr.mxu1 %v5690_v1 }
 0xbbb   :  { %5207 = vmatmul.mubr.msk.f32.vlgmr.msra.gmra.mxu0 %vm269_vm3, %v2678_v26  ;;  %v2538_v40 = vpop.permute.xlu1 %2537 }
 0xbbc   :  { %5182 = vmatmul.mubr.msk.f32.vlgmr.msra.gmra.mxu1 %vm269_vm3, %v2538_v40  ;;  %5209 = vmatprep.mubr.msk.f32.mxu0 %vm5691_vm0, %v5690_v1 }
 0xbbd   :  { %5184 = vmatprep.mubr.msk.f32.mxu1 %vm5691_vm0, %v5690_v1 }
 0xbbe   :  { %v2680_v19 = vpop.permute.xlu0 %2679 }
 0xbbf   :  { %5210 = vmatmul.mubr.msk.f32.gmra.mxu0 %vm269_vm3, %v2680_v19  ;;  %v2540_v7 = vpop.permute.xlu1 %2539 }
 0xbc0   :  { %5185 = vmatmul.mubr.msk.f32.gmra.mxu1 %vm269_vm3, %v2540_v7  ;;  %5212 = vmatprep.mubr.msk.f32.mxu0 %vm5691_vm0, %v5690_v1 }
 0xbc1   :  { %5187 = vmatprep.mubr.msk.f32.mxu1 %vm5691_vm0, %v5690_v1 }
 0xbc2   :  { %v2682_v21 = vpop.permute.xlu0 %2681 }
 0xbc3   :  { %5213 = vmatmul.mubr.msk.f32.gmra.mxu0 %vm269_vm3, %v2682_v21  ;;  %v2542_v30 = vpop.permute.xlu1 %2541  ;;  %v6992_v21 = vld [vmem:[%s7587_s1 + $0x70] sm:$0xff] }
 0xbc4   :  { %5188 = vmatmul.mubr.msk.f32.gmra.mxu1 %vm269_vm3, %v2542_v30  ;;  %5215 = vmatprep.mubr.msk.f32.mxu0 %vm5691_vm0, %v5690_v1 }
 0xbc5   :  { %5190 = vmatprep.mubr.msk.f32.mxu1 %vm5691_vm0, %v5690_v1 }
 0xbc6   :  { %v2684_v24 = vpop.permute.xlu0 %2683 }
 0xbc7   :  { %5216 = vmatmul.mubr.msk.f32.gmra.mxu0 %vm269_vm3, %v2684_v24  ;;  %v2544_v59 = vpop.permute.xlu1 %2543 }
 0xbc8   :  { %5191 = vmatmul.mubr.msk.f32.gmra.mxu1 %vm269_vm3, %v2544_v59  ;;  %5218 = vmatprep.mubr.msk.f32.mxu0 %vm5691_vm0, %v5690_v1 }
 0xbc9   :  { %5193 = vmatprep.mubr.msk.f32.mxu1 %vm5691_vm0, %v5690_v1 }
 0xbca   :  { %v3044_v27 = vpop.permute.xlu0 %3043 }
 0xbcb   :  { %v3163_v49 = vpop.permute.xlu1 %3162 }
 0xbce   :  { %v3165_v34 = vpop.permute.xlu0 %3164 }
 0xbcf   :  { %v3159_v50 = vpop.permute.xlu1 %3158 }
 0xbd2   :  { %v3042_v58 = vpop.permute.xlu0 %3041 }
 0xbd3   :  { %v3167_v9 = vpop.permute.xlu1 %3166 }
 0xbd4   :  { %5247 = vmatpush3.msk.msra.mxu0 %vm1061_vm4, %v3167_v9 }
 0xbd5   :  { %5248 = vmatprep.subr.mxu0 %v5690_v1 }
 0xbd6   :  { %v3040_v32 = vpop.permute.xlu0 %3039  ;;  %5249 = vmatpush3.msra.mxu0 %v3165_v34 }
 0xbd7   :  { %5250 = vmatprep.subr.mxu0 %v5690_v1 }
 0xbd8   :  { %5251 = vmatpush3.msra.mxu0 %v3163_v49 }
 0xbd9   :  { %5252 = vmatprep.subr.mxu0 %v5690_v1 }
 0xbda   :  { %v3161_v22 = vpop.permute.xlu0 %3160 }
 0xbdb   :  { %5253 = vmatpush3.msra.mxu0 %v3161_v22 }
 0xbdc   :  { %5254 = vmatprep.subr.mxu0 %v5690_v1 }
 0xbdd   :  { %5255 = vmatpush3.msra.mxu0 %v3159_v50 }
 0xbde   :  { %v3038_v29 = vpop.permute.xlu0 %3037  ;;  %5296 = vmatprep.subr.mxu0 %v5690_v1 }
 0xbe2   :  { %v6930_v6 = vpop.permute.xlu0 %3285 }
 0xbe6   :  { %v6932_v14 = vpop.permute.xlu0 %3406 }
 0xbea   :  { %v2546_v33 = vpop.permute.xlu0 %2545 }
 0xbeb   :  { %5194 = vmatmul.mubr.msk.f32.gmra.mxu1 %vm269_vm3, %v2546_v33 }
 0xbec   :  { %5231 = vmatprep.mubr.msk.f32.mxu1 %vm5691_vm0, %v5690_v1 }
 0xbee   :  { %v3046_v57 = vpop.permute.xlu0 %3045 }
 0xbef   :  { %5222 = vmatpush3.msk.msra.mxu1 %vm1061_vm4, %v3046_v57 }
 0xbf0   :  { %5223 = vmatprep.subr.mxu1 %v5690_v1 }
 0xbf1   :  { %5224 = vmatpush3.msra.mxu1 %v3044_v27 }
 0xbf2   :  { %v2686_v10 = vpop.permute.xlu0 %2685  ;;  %5225 = vmatprep.subr.mxu1 %v5690_v1 }
 0xbf3   :  { %5219 = vmatmul.mubr.msk.f32.gmra.mxu0 %vm269_vm3, %v2686_v10  ;;  %5226 = vmatpush3.msra.mxu1 %v3042_v58 }
 0xbf4   :  { %5227 = vmatprep.subr.mxu1 %v5690_v1  ;;  %5256 = vmatprep.mubr.msk.f32.mxu0 %vm5691_vm0, %v5690_v1 }
 0xbf5   :  { %5228 = vmatpush3.msra.mxu1 %v3040_v32 }
 0xbf6   :  { %5229 = vmatprep.subr.mxu1 %v5690_v1 }
 0xbf7   :  { %5230 = vmatpush3.msra.mxu1 %v3038_v29  ;;  %v7007_v29 = vld [vmem:[%s7587_s1 + $0x78] sm:$0x3] }
 0xbf8   :  { %5271 = vmatprep.subr.mxu1 %v5690_v1 }
 0xc66   :  { %v2503_v51 = vpop.f32.mrf.mxu0 }
 0xc67   :  { %v2527_v42 = vmul.f32 0.35355338, %v2503_v51  ;;  %v2363_v31 = vpop.f32.mrf.mxu1 }
 0xc68   :  { %v2387_v8 = vmul.f32 0.35355338, %v2363_v31  ;;  %v5158_v5 = vpop.f32.mrf.mxu0 }
 0xc69   :  { %v6952_v16 = vadd.f32 %v6949_v44, %v2527_v42  ;;  %v5133_v3 = vpop.f32.mrf.mxu1 }
 0xc6a   :  { %v6955_v47 = vadd.f32 %v6949_v44, %v2387_v8  ;;  %v2508_v39 = vpop.f32.mrf.mxu0 }
 0xc6b   :  { %v2528_v62 = vmul.f32 0.35355338, %v2508_v39  ;;  %v2368_v46 = vpop.f32.mrf.mxu1  ;;  %v2872_v38 = vsel %vm810_vm5, %v6952_v16, -inf }
 0xc6c   :  { %v2388_v15 = vmul.f32 0.35355338, %v2368_v46  ;;  %2873 = vmax.xlane.f32.xlu0 %v2872_v38  ;;  %v5161_v36 = vpop.f32.mrf.mxu0  ;;  %v2817_v25 = vsel %vm810_vm5, %v6955_v47, -inf }
 0xc6d   :  { %v6967_v41 = vadd.f32 %v6964_v61, %v2528_v62  ;;  %2818 = vmax.xlane.f32.xlu1 %v2817_v25  ;;  %v5136_v11 = vpop.f32.mrf.mxu1 }
 0xc6e   :  { %v6970_v12 = vadd.f32 %v6964_v61, %v2388_v15  ;;  %v2513_v2 = vpop.f32.mrf.mxu0 }
 0xc6f   :  { %v2373_v52 = vpop.f32.mrf.mxu1  ;;  %v2875_v54 = vsel %vm810_vm5, %v6967_v41, -inf  ;;  %v2529_v56 = vmul.f32 0.35355338, %v2513_v2 }
 0xc70   :  { %v2389_v23 = vmul.f32 0.35355338, %v2373_v52  ;;  %v5164_v48 = vpop.f32.mrf.mxu0  ;;  %v2820_v43 = vsel %vm810_vm5, %v6970_v12, -inf }
 0xc71   :  { %v5139_v0 = vpop.f32.mrf.mxu1  ;;  %2821 = vmax.xlane.f32.xlu0 %v2820_v43  ;;  %2876 = vmax.xlane.f32.xlu1 %v2875_v54  ;;  %v6985_v26 = vadd.f32 %v6979_v60, %v2529_v56 }
 0xc72   :  { %v6982_v4 = vadd.f32 %v6979_v60, %v2389_v23  ;;  %v2518_v55 = vpop.f32.mrf.mxu0 }
 0xc73   :  { %v2530_v35 = vmul.f32 0.35355338, %v2518_v55  ;;  %v2378_v13 = vpop.f32.mrf.mxu1  ;;  %v2878_v9 = vsel %vm810_vm5, %v6985_v26, -inf }
 0xc74   :  { %v2390_v40 = vmul.f32 0.35355338, %v2378_v13  ;;  %v5167_v19 = vpop.f32.mrf.mxu0  ;;  %v2823_v7 = vsel %vm810_vm5, %v6982_v4, -inf }
 0xc75   :  { %v6995_v30 = vadd.f32 %v6992_v21, %v2530_v35  ;;  %v5142_v24 = vpop.f32.mrf.mxu1  ;;  %2824 = vmax.xlane.f32.xlu0 %v2823_v7 }
 0xc76   :  { %v7000_v34 = vadd.f32 %v6992_v21, %v2390_v40 }
 0xc77   :  { %v2383_v59 = vpop.f32.mrf.mxu1  ;;  %v2523_v27 = vpop.f32.mrf.mxu0  ;;  %v2881_v49 = vsel %vm810_vm5, %v6995_v30, -inf }
 0xc78   :  { %v2391_v50 = vmul.f32 0.35355338, %v2383_v59  ;;  %v2531_v58 = vmul.f32 0.35355338, %v2523_v27  ;;  %2882 = vmax.xlane.f32.xlu1 %v2881_v49  ;;  %v2826_v31 = vsel %vm810_vm5, %v7000_v34, -inf }
 0xc79   :  { %v5145_v32 = vpop.f32.mrf.mxu1  ;;  %2879 = vmax.xlane.f32.xlu0 %v2878_v9  ;;  %v5170_v22 = vpop.f32.mrf.mxu0 }
 0xc7a   :  { %v7010_v33 = vadd.f32 %v7007_v29, %v2531_v58  ;;  %v7013_v10 = vadd.f32 %v7007_v29, %v2391_v50 }
 0xc7b   :  { %v2783_v57 = vpop.f32.mrf.mxu0 }
 0xc7c   :  { %v2807_v51 = vmul.f32 0.35355338, %v2783_v57  ;;  %v2643_v42 = vpop.f32.mrf.mxu1  ;;  %v2884_v8 = vsel %vm823_vm6, %v7010_v33, -inf  ;;  %v2829_v36 = vsel %vm823_vm6, %v7013_v10, -inf  ;;  %v7067_v57 = vpop.permute.xlu0 %3287 }
 0xc7d   :  { %v2667_v5 = vmul.f32 0.35355338, %v2643_v42  ;;  %2827 = vmax.xlane.f32.xlu0 %v2826_v31  ;;  %2885 = vmax.xlane.f32.xlu1 %v2884_v8  ;;  %v5208_v3 = vpop.f32.mrf.mxu0 }
 0xc7e   :  { %v5183_v39 = vpop.f32.mrf.mxu1  ;;  %v7023_v38 = vadd.f32 %v6949_v44, %v2807_v51 }
 0xc7f   :  { %v7020_v62 = vadd.f32 %v6949_v44, %v2667_v5  ;;  %v2788_v46 = vpop.f32.mrf.mxu0 }
 0xc80   :  { %v2648_v15 = vpop.f32.mrf.mxu1  ;;  %v2808_v25 = vmul.f32 0.35355338, %v2788_v46  ;;  %v2982_v44 = vsel %vm810_vm5, %v7023_v38, -inf  ;;  %v7069_v51 = vpop.permute.xlu0 %3408 }
 0xc81   :  { %v2668_v11 = vmul.f32 0.35355338, %v2648_v15  ;;  %2830 = vmax.xlane.f32.xlu0 %v2829_v36  ;;  %v5211_v2 = vpop.f32.mrf.mxu0  ;;  %v2927_v52 = vsel %vm810_vm5, %v7020_v62, -inf }
 0xc82   :  { %2928 = vmax.xlane.f32.xlu1 %v2927_v52  ;;  %v5186_v54 = vpop.f32.mrf.mxu1  ;;  %v7035_v43 = vadd.f32 %v6964_v61, %v2808_v25 }
 0xc83   :  { %v7030_v56 = vadd.f32 %v6964_v61, %v2668_v11  ;;  %v2793_v23 = vpop.f32.mrf.mxu0 }
 0xc84   :  { %v2653_v48 = vpop.f32.mrf.mxu1  ;;  %v2809_v0 = vmul.f32 0.35355338, %v2793_v23  ;;  %v2985_v27 = vsel %vm810_vm5, %v7035_v43, -inf }
 0xc85   :  { %v2669_v55 = vmul.f32 0.35355338, %v2653_v48  ;;  %v5214_v35 = vpop.f32.mrf.mxu0  ;;  %v2930_v13 = vsel %vm810_vm5, %v7030_v56, -inf }
 0xc86   :  { %2983 = vmax.xlane.f32.xlu1 %v2982_v44  ;;  %2931 = vmax.xlane.f32.xlu0 %v2930_v13  ;;  %v5189_v40 = vpop.f32.mrf.mxu1  ;;  %v7047_v59 = vadd.f32 %v6979_v60, %v2809_v0 }
 0xc87   :  { %v7040_v19 = vadd.f32 %v6979_v60, %v2669_v55  ;;  %v7042_v7 = vpop.f32.mrf.mxu0 }
 0xc88   :  { %v7044_v24 = vpop.f32.mrf.mxu1  ;;  %v2988_v58 = vsel %vm810_vm5, %v7047_v59, -inf }
 0xc89   :  { %v5217_v61 = vpop.f32.mrf.mxu0  ;;  %v2933_v49 = vsel %vm810_vm5, %v7040_v19, -inf }
 0xc8a   :  { %2986 = vmax.xlane.f32.xlu1 %v2985_v27  ;;  %2934 = vmax.xlane.f32.xlu0 %v2933_v49  ;;  %v5192_v50 = vpop.f32.mrf.mxu1 }
 0xc8e   :  { %2989 = vmax.xlane.f32.xlu1 %v2988_v58 }
 0xc9f   :  { %3283 = vrot.lane.b32.xlu1 %v6721_v17, %s5701_s3 }
 0xca0   :  { %3404 = vrot.lane.b32.xlu0 %v6721_v17, %s5702_s4 }
 0xca4   :  { %3281 = vrot.lane.b32.xlu0 %v6717_v63, %s5701_s3 }
 0xca8   :  { %3402 = vrot.lane.b32.xlu0 %v6717_v63, %s5702_s4 }
 0xcab   :  { %v7063_v60 = vpop.f32.mrf.mxu1 }
 0xcad   :  { %v5195_v9 = vpop.f32.mrf.mxu1 }
 0xcb3   :  { %v7065_v32 = vpop.f32.mrf.mxu0 }
 0xcb5   :  { %v5220_v22 = vpop.f32.mrf.mxu0 }
 0xcf5   :  { %v2874_v42 = vpop.xlane.xlu0 %2873 }
 0xcf6   :  { %v2887_v31 = vsub.f32 %v6952_v16, %v2874_v42  ;;  %v2819_v17 = vpop.xlane.xlu1 %2818 }
 0xcf7   :  { %v2832_v8 = vsub.f32 %v6955_v47, %v2819_v17 }
 0xcf8   :  { %v2892_v5 = vmul.f32 1.442695, %v2887_v31 }
 0xcf9   :  { %v2837_v3 = vmul.f32 1.442695, %v2832_v8 }
 0xcfa   :  { %5555 = vpow2.f32 %v2892_v5  ;;  %v2822_v63 = vpop.xlane.xlu0 %2821  ;;  %v2877_v39 = vpop.xlane.xlu1 %2876 }
 0xcfb   :  { %5557 = vpow2.f32 %v2837_v3  ;;  %v2833_v46 = vsub.f32 %v6970_v12, %v2822_v63  ;;  %v2888_v15 = vsub.f32 %v6967_v41, %v2877_v39 }
 0xcfd   :  { %v2839_v36 = vmul.f32 1.442695, %v2833_v46  ;;  %v2894_v25 = vmul.f32 1.442695, %v2888_v15 }
 0xcfe   :  { %v2825_v11 = vpop.xlane.xlu0 %2824 }
 0xcff   :  { %5559 = vpow2.f32 %v2839_v36  ;;  %v2834_v2 = vsub.f32 %v6982_v4, %v2825_v11 }
 0xd00   :  { %5561 = vpow2.f32 %v2894_v25 }
 0xd01   :  { %v2841_v16 = vmul.f32 1.442695, %v2834_v2  ;;  %v2883_v52 = vpop.xlane.xlu1 %2882 }
 0xd02   :  { %v2890_v47 = vsub.f32 %v6995_v30, %v2883_v52  ;;  %v2880_v54 = vpop.xlane.xlu0 %2879 }
 0xd03   :  { %5563 = vpow2.f32 %v2841_v16  ;;  %v2889_v23 = vsub.f32 %v6985_v26, %v2880_v54 }
 0xd04   :  { %v2898_v48 = vmul.f32 1.442695, %v2890_v47 }
 0xd05   :  { %v2896_v44 = vmul.f32 1.442695, %v2889_v23 }
 0xd06   :  { %v2828_v12 = vpop.xlane.xlu0 %2827  ;;  %v2886_v0 = vpop.xlane.xlu1 %2885 }
 0xd07   :  { %v7078_v41 = vpop.eup %5555  ;;  %5565 = vpow2.f32 %v2896_v44  ;;  %v2835_v55 = vsub.f32 %v7000_v34, %v2828_v12  ;;  %v2891_v4 = vsub.f32 %v7010_v33, %v2886_v0 }
 0xd08   :  { %v7082_v35 = vpop.eup %5557  ;;  %v2902_v30 = vsel %vm810_vm5, %v7078_v41, 0.0  ;;  %5567 = vpow2.f32 %v2898_v48 }
 0xd09   :  { %v2843_v13 = vmul.f32 1.442695, %v2835_v55  ;;  %v2900_v40 = vmul.f32 1.442695, %v2891_v4  ;;  %2903 = vadd.xlane.f32.xlu1 %v2902_v30  ;;  %v2847_v26 = vsel %vm810_vm5, %v7082_v35, 0.0 }
 0xd0a   :  { %v2831_v61 = vpop.xlane.xlu0 %2830  ;;  %2848 = vadd.xlane.f32.xlu0 %v2847_v26 }
 0xd0b   :  { %5569 = vpow2.f32 %v2843_v13  ;;  %v2836_v27 = vsub.f32 %v7013_v10, %v2831_v61  ;;  %v2929_v34 = vpop.xlane.xlu1 %2928 }
 0xd0c   :  { %v7089_v49 = vpop.eup %5559  ;;  %v2942_v33 = vsub.f32 %v7020_v62, %v2929_v34  ;;  %5571 = vpow2.f32 %v2900_v40 }
 0xd0d   :  { %v7092_v50 = vpop.eup %5561  ;;  %v2845_v58 = vmul.f32 1.442695, %v2836_v27  ;;  %v2850_v9 = vsel %vm810_vm5, %v7089_v49, 0.0 }
 0xd0e   :  { %v2947_v22 = vmul.f32 1.442695, %v2942_v33  ;;  %2851 = vadd.xlane.f32.xlu0 %v2850_v9  ;;  %v2905_v42 = vsel %vm810_vm5, %v7092_v50, 0.0 }
 0xd0f   :  { %5573 = vpow2.f32 %v2845_v58  ;;  %2906 = vadd.xlane.f32.xlu1 %v2905_v42  ;;  %v2932_v10 = vpop.xlane.xlu0 %2931  ;;  %v2984_v31 = vpop.xlane.xlu1 %2983  ;;  %v2670_v58 = vmul.f32 0.35355338, %v7044_v24 }
 0xd10   :  { %v7098_v17 = vpop.eup %5563  ;;  %v2943_v62 = vsub.f32 %v7030_v56, %v2932_v10  ;;  %v2997_v8 = vsub.f32 %v7023_v38, %v2984_v31  ;;  %5575 = vpow2.f32 %v2947_v22  ;;  %v2671_v22 = vmul.f32 0.35355338, %v7063_v60 }
 0xd11   :  { %v2853_v5 = vsel %vm810_vm5, %v7098_v17, 0.0  ;;  %v7157_v9 = vadd.f32 %v6992_v21, %v2670_v58 }
 0xd12   :  { %v2949_v3 = vmul.f32 1.442695, %v2943_v62  ;;  %v3002_v63 = vmul.f32 1.442695, %v2997_v8  ;;  %2854 = vadd.xlane.f32.xlu0 %v2853_v5  ;;  %v7163_v10 = vadd.f32 %v7007_v29, %v2671_v22 }
 0xd13   :  { %v2935_v39 = vpop.xlane.xlu0 %2934  ;;  %v2987_v46 = vpop.xlane.xlu1 %2986  ;;  %v2936_v42 = vsel %vm810_vm5, %v7157_v9, -inf }
 0xd14   :  { %v7104_v15 = vpop.eup %5565  ;;  %5577 = vpow2.f32 %v2949_v3  ;;  %v2944_v36 = vsub.f32 %v7040_v19, %v2935_v39  ;;  %v2998_v25 = vsub.f32 %v7035_v43, %v2987_v46  ;;  %v2939_v31 = vsel %vm823_vm6, %v7163_v10, -inf }
 0xd15   :  { %5579 = vpow2.f32 %v3002_v63  ;;  %v2908_v38 = vsel %vm810_vm5, %v7104_v15, 0.0  ;;  %v7110_v56 = vpop.eup %5567 }
 0xd16   :  { %v2951_v11 = vmul.f32 1.442695, %v2944_v36  ;;  %v3004_v2 = vmul.f32 1.442695, %v2998_v25  ;;  %2909 = vadd.xlane.f32.xlu1 %v2908_v38  ;;  %v2911_v43 = vsel %vm810_vm5, %v7110_v56, 0.0 }
 0xd17   :  { %v2990_v16 = vpop.xlane.xlu1 %2989  ;;  %v3405_v62 = vpop.permute.xlu0 %3404 }
 0xd18   :  { %v7112_v52 = vpop.eup %5569  ;;  %5581 = vpow2.f32 %v2951_v11  ;;  %v2999_v47 = vsub.f32 %v7047_v59, %v2990_v16 }
 0xd19   :  { %5583 = vpow2.f32 %v3004_v2  ;;  %v2856_v19 = vsel %vm810_vm5, %v7112_v52, 0.0  ;;  %v7119_v54 = vpop.eup %5571 }
 0xd1a   :  { %v3006_v23 = vmul.f32 1.442695, %v2999_v47  ;;  %2857 = vadd.xlane.f32.xlu0 %v2856_v19  ;;  %2912 = vadd.xlane.f32.xlu1 %v2911_v43  ;;  %v2914_v59 = vsel %vm823_vm6, %v7119_v54, 0.0 }
 0xd1b   :  { %v3284_v8 = vpop.permute.xlu1 %3283 }
 0xd1c   :  { %v7121_v48 = vpop.eup %5573  ;;  %5585 = vpow2.f32 %v3006_v23 }
 0xd1d   :  { %v2859_v44 = vsel %vm823_vm6, %v7121_v48, 0.0  ;;  %v7127_v12 = vpop.eup %5575 }
 0xd1e   :  { %2860 = vadd.xlane.f32.xlu0 %v2859_v44  ;;  %2915 = vadd.xlane.f32.xlu1 %v2914_v59  ;;  %v2957_v55 = vsel %vm810_vm5, %v7127_v12, 0.0 }
 0xd21   :  { %v7129_v0 = vpop.eup %5577 }
 0xd22   :  { %v7133_v4 = vpop.eup %5579  ;;  %2958 = vadd.xlane.f32.xlu1 %v2957_v55  ;;  %v2960_v30 = vsel %vm810_vm5, %v7129_v0, 0.0 }
 0xd23   :  { %2961 = vadd.xlane.f32.xlu0 %v2960_v30  ;;  %v3012_v40 = vsel %vm810_vm5, %v7133_v4, 0.0 }
 0xd25   :  { %v7137_v13 = vpop.eup %5581 }
 0xd26   :  { %v7141_v26 = vpop.eup %5583  ;;  %3013 = vadd.xlane.f32.xlu1 %v3012_v40  ;;  %v2963_v61 = vsel %vm810_vm5, %v7137_v13, 0.0 }
 0xd27   :  { %2964 = vadd.xlane.f32.xlu0 %v2963_v61  ;;  %v3015_v27 = vsel %vm810_vm5, %v7141_v26, 0.0 }
 0xd29   :  { %v7147_v34 = vpop.eup %5585 }
 0xd2a   :  { %3016 = vadd.xlane.f32.xlu1 %v3015_v27  ;;  %v3018_v33 = vsel %vm810_vm5, %v7147_v34, 0.0 }
 0xd2e   :  { %3019 = vadd.xlane.f32.xlu1 %v3018_v33 }
 0xd3d   :  { %3279 = vrot.lane.b32.xlu0 %v6739_v37, %s5701_s3 }
 0xd3f   :  { %3400 = vrot.lane.b32.xlu1 %v6739_v37, %s5702_s4  ;;  %v3282_v37 = vpop.permute.xlu0 %3281 }
 0xd43   :  { %v3403_v24 = vpop.permute.xlu0 %3402 }
 0xd5c   :  { %2937 = vmax.xlane.f32.xlu0 %v2936_v42 }
 0xd63   :  { %2940 = vmax.xlane.f32.xlu1 %v2939_v31 }
 0xd92   :  { %v2904_v5 = vpop.xlane.xlu1 %2903 }
 0xd93   :  { %5587 = vrcp.f32 %v2904_v5  ;;  %v2849_v3 = vpop.xlane.xlu0 %2848 }
 0xd94   :  { %5589 = vrcp.f32 %v2849_v3 }
 0xd97   :  { %v2852_v60 = vpop.xlane.xlu0 %2851 }
 0xd98   :  { %5591 = vrcp.f32 %v2852_v60  ;;  %v2907_v63 = vpop.xlane.xlu1 %2906 }
 0xd99   :  { %5593 = vrcp.f32 %v2907_v63 }
 0xd9b   :  { %v2855_v39 = vpop.xlane.xlu0 %2854 }
 0xd9c   :  { %5595 = vrcp.f32 %v2855_v39 }
 0xd9f   :  { %v2910_v46 = vpop.xlane.xlu1 %2909 }
 0xda0   :  { %v5588_v36 = vpop.eup %5587  ;;  %5597 = vrcp.f32 %v2910_v46 }
 0xda1   :  { %v5590_v25 = vpop.eup %5589  ;;  %v2918_v38 = vmul.f32 %v5588_v36, %v7078_v41 }
 0xda2   :  { %v2863_v11 = vmul.f32 %v5590_v25, %v7082_v35 }
 0xda3   :  { %v2858_v2 = vpop.xlane.xlu0 %2857  ;;  %5257 = vmatmul.mubr.msk.f32.vlgmr.msra.gmra.mxu0 %vm810_vm5, %v2918_v38  ;;  %v2913_v16 = vpop.xlane.xlu1 %2912  ;;  %v3597_v38 = vld [vmem:[%s7587_s1 + $0x190] sm:$0xff] }
 0xda4   :  { %5599 = vrcp.f32 %v2858_v2  ;;  %5297 = vmatpush3.msk.msra.mxu0 %vm1061_vm4, %v7069_v51  ;;  %5232 = vmatmul.mubr.msk.f32.vlgmr.msra.gmra.mxu1 %vm810_vm5, %v2863_v11 }
 0xda5   :  { %v5592_v47 = vpop.eup %5591  ;;  %5601 = vrcp.f32 %v2913_v16  ;;  %5272 = vmatpush3.msk.msra.mxu1 %vm1061_vm4, %v7067_v57  ;;  %5298 = vmatprep.subr.mxu0 %v5690_v1 }
 0xda6   :  { %v5594_v41 = vpop.eup %5593  ;;  %5273 = vmatprep.subr.mxu1 %v5690_v1  ;;  %5299 = vmatpush3.msra.mxu0 %v6932_v14  ;;  %v2865_v35 = vmul.f32 %v5592_v47, %v7089_v49 }
 0xda7   :  { %5274 = vmatpush3.msra.mxu1 %v6930_v6  ;;  %5300 = vmatprep.subr.mxu0 %v5690_v1  ;;  %v2861_v51 = vpop.xlane.xlu0 %2860  ;;  %v2916_v19 = vpop.xlane.xlu1 %2915  ;;  %v2920_v43 = vmul.f32 %v5594_v41, %v7092_v50 }
 0xda8   :  { %5234 = vmatprep.mubr.msk.f32.mxu1 %vm5691_vm0, %v5690_v1  ;;  %5275 = vmatprep.subr.mxu1 %v5690_v1  ;;  %5603 = vrcp.f32 %v2861_v51 }
 0xda9   :  { %v5596_v57 = vpop.eup %5595  ;;  %5259 = vmatprep.mubr.msk.f32.mxu0 %vm5691_vm0, %v5690_v1  ;;  %5301 = vmatpush3.msra.mxu0 %v3405_v62  ;;  %5605 = vrcp.f32 %v2916_v19 }
 0xdaa   :  { %5235 = vmatmul.mubr.msk.f32.gmra.mxu1 %vm810_vm5, %v2865_v35  ;;  %5260 = vmatmul.mubr.msk.f32.gmra.mxu0 %vm810_vm5, %v2920_v43  ;;  %v2867_v6 = vmul.f32 %v5596_v57, %v7098_v17 }
 0xdab   :  { %5276 = vmatpush3.msra.mxu1 %v3284_v8  ;;  %5302 = vmatprep.subr.mxu0 %v5690_v1  ;;  %v2959_v14 = vpop.xlane.xlu1 %2958 }
 0xdac   :  { %5277 = vmatprep.subr.mxu1 %v5690_v1  ;;  %5303 = vmatpush3.msra.mxu0 %v3403_v24  ;;  %5607 = vrcp.f32 %v2959_v14  ;;  %v2962_v49 = vpop.xlane.xlu0 %2961 }
 0xdad   :  { %v5598_v50 = vpop.eup %5597  ;;  %5278 = vmatpush3.msra.mxu1 %v3282_v37  ;;  %5237 = vmatprep.mubr.msk.f32.mxu1 %vm5691_vm0, %v5690_v1  ;;  %5609 = vrcp.f32 %v2962_v49 }
 0xdae   :  { %5238 = vmatmul.mubr.msk.f32.gmra.mxu1 %vm810_vm5, %v2867_v6  ;;  %5262 = vmatprep.mubr.msk.f32.mxu0 %vm5691_vm0, %v5690_v1  ;;  %v2922_v17 = vmul.f32 %v5598_v50, %v7104_v15  ;;  %v3596_v50 = vld [vmem:[%s7587_s1 + $0x188] sm:$0xff] }
 0xdaf   :  { %v3014_v23 = vpop.xlane.xlu1 %3013  ;;  %5240 = vmatprep.mubr.msk.f32.mxu1 %vm5691_vm0, %v5690_v1  ;;  %5279 = vmatprep.subr.mxu1 %v5690_v1 }
 0xdb0   :  { %5611 = vrcp.f32 %v3014_v23  ;;  %v2965_v44 = vpop.xlane.xlu0 %2964  ;;  %5263 = vmatmul.mubr.msk.f32.gmra.mxu0 %vm810_vm5, %v2922_v17  ;;  %5304 = vmatprep.subr.mxu0 %v5690_v1 }
 0xdb1   :  { %v5600_v59 = vpop.eup %5599  ;;  %5265 = vmatprep.mubr.msk.f32.mxu0 %vm5691_vm0, %v5690_v1  ;;  %5613 = vrcp.f32 %v2965_v44 }
 0xdb2   :  { %v5602_v55 = vpop.eup %5601  ;;  %v2869_v15 = vmul.f32 %v5600_v59, %v7112_v52 }
 0xdb3   :  { %v3017_v30 = vpop.xlane.xlu1 %3016  ;;  %v2924_v40 = vmul.f32 %v5602_v55, %v7110_v56 }
 0xdb4   :  { %5615 = vrcp.f32 %v3017_v30  ;;  %5241 = vmatmul.mubr.msk.f32.gmra.mxu1 %vm810_vm5, %v2869_v15  ;;  %v3280_v61 = vpop.permute.xlu0 %3279 }
 0xdb5   :  { %v5604_v27 = vpop.eup %5603  ;;  %5266 = vmatmul.mubr.msk.f32.gmra.mxu0 %vm810_vm5, %v2924_v40  ;;  %5280 = vmatpush3.msra.mxu1 %v3280_v61 }
 0xdb6   :  { %v5606_v33 = vpop.eup %5605  ;;  %5243 = vmatprep.mubr.msk.f32.mxu1 %vm5691_vm0, %v5690_v1  ;;  %5268 = vmatprep.mubr.msk.f32.mxu0 %vm5691_vm0, %v5690_v1  ;;  %v2871_v52 = vmul.f32 %v5604_v27, %v7121_v48 }
 0xdb7   :  { %v3020_v58 = vpop.xlane.xlu1 %3019  ;;  %v2926_v56 = vmul.f32 %v5606_v33, %v7119_v54  ;;  %5321 = vmatprep.subr.mxu1 %v5690_v1 }
 0xdb8   :  { %5617 = vrcp.f32 %v3020_v58  ;;  %5244 = vmatmul.mubr.msk.f32.gmra.mxu1 %vm810_vm5, %v2871_v52 }
 0xdb9   :  { %v5608_v22 = vpop.eup %5607  ;;  %5269 = vmatmul.mubr.msk.f32.gmra.mxu0 %vm810_vm5, %v2926_v56  ;;  %5281 = vmatprep.mubr.msk.f32.mxu1 %vm5691_vm0, %v5690_v1 }
 0xdba   :  { %v2973_v42 = vmul.f32 %v5608_v22, %v7127_v12  ;;  %5306 = vmatprep.mubr.msk.f32.mxu0 %vm5691_vm0, %v5690_v1  ;;  %v5610_v48 = vpop.eup %5609 }
 0xdbb   :  { %v3401_v31 = vpop.permute.xlu1 %3400  ;;  %v2975_v37 = vmul.f32 %v5610_v48, %v7129_v0 }
 0xdbc   :  { %5282 = vmatmul.mubr.msk.f32.vlgmr.msra.gmra.mxu1 %vm810_vm5, %v2973_v42  ;;  %5305 = vmatpush3.msra.mxu0 %v3401_v31 }
 0xdbd   :  { %v5612_v54 = vpop.eup %5611  ;;  %5284 = vmatprep.mubr.msk.f32.mxu1 %vm5691_vm0, %v5690_v1  ;;  %5344 = vmatprep.subr.mxu0 %v5690_v1 }
 0xdbe   :  { %v3028_v62 = vmul.f32 %v5612_v54, %v7133_v4  ;;  %v5614_v8 = vpop.eup %5613 }
 0xdbf   :  { %v2977_v24 = vmul.f32 %v5614_v8, %v7137_v13 }
 0xdc0   :  { %5285 = vmatmul.mubr.msk.f32.gmra.mxu1 %vm810_vm5, %v2975_v37  ;;  %5307 = vmatmul.mubr.msk.f32.vlgmr.msra.gmra.mxu0 %vm810_vm5, %v3028_v62 }
 0xdc1   :  { %v5616_v12 = vpop.eup %5615  ;;  %5287 = vmatprep.mubr.msk.f32.mxu1 %vm5691_vm0, %v5690_v1  ;;  %5309 = vmatprep.mubr.msk.f32.mxu0 %vm5691_vm0, %v5690_v1 }
 0xdc2   :  { %v3030_v5 = vmul.f32 %v5616_v12, %v7141_v26 }
 0xdc4   :  { %5288 = vmatmul.mubr.msk.f32.gmra.mxu1 %vm810_vm5, %v2977_v24  ;;  %5310 = vmatmul.mubr.msk.f32.gmra.mxu0 %vm810_vm5, %v3030_v5 }
 0xdc5   :  { %v5618_v0 = vpop.eup %5617  ;;  %5312 = vmatprep.mubr.msk.f32.mxu0 %vm5691_vm0, %v5690_v1  ;;  %5290 = vmatprep.mubr.msk.f32.mxu1 %vm5691_vm0, %v5690_v1 }
 0xdc6   :  { %v3032_v4 = vmul.f32 %v5618_v0, %v7147_v34  ;;  %v2811_v0 = vmul.f32 0.35355338, %v7065_v32 }
 0xdc8   :  { %5313 = vmatmul.mubr.msk.f32.gmra.mxu0 %vm810_vm5, %v3032_v4  ;;  %v2816_v4 = vadd.f32 %v7007_v29, %v2811_v0 }
 0xdc9   :  { %5315 = vmatprep.mubr.msk.f32.mxu0 %vm5691_vm0, %v5690_v1 }
 0xde5   :  { %v2938_v13 = vpop.xlane.xlu0 %2937 }
 0xde6   :  { %v2945_v26 = vsub.f32 %v7157_v9, %v2938_v13  ;;  %v3599_v9 = vld [vmem:[%s7587_s1 + $0x1a0] sm:$0xff]  ;;  %v2810_v13 = vmul.f32 0.35355338, %v7042_v7 }
 0xde7   :  { %5322 = vmatpush3.msra.mxu1 %v3599_v9 }
 0xde8   :  { %v2953_v3 = vmul.f32 1.442695, %v2945_v26  ;;  %5323 = vmatprep.subr.mxu1 %v5690_v1  ;;  %v2994_v26 = vsel %vm823_vm6, %v2816_v4, -inf }
 0xdea   :  { %5619 = vpow2.f32 %v2953_v3  ;;  %v2815_v3 = vadd.f32 %v6992_v21, %v2810_v13 }
 0xdec   :  { %v2941_v60 = vpop.xlane.xlu1 %2940 }
 0xded   :  { %v2946_v63 = vsub.f32 %v7163_v10, %v2941_v60  ;;  %v3598_v10 = vld [vmem:[%s7587_s1 + $0x198] sm:$0xff]  ;;  %v2991_v60 = vsel %vm810_vm5, %v2815_v3, -inf }
 0xdee   :  { %5324 = vmatpush3.msra.mxu1 %v3598_v10 }
 0xdef   :  { %v2955_v39 = vmul.f32 1.442695, %v2946_v63  ;;  %5325 = vmatprep.subr.mxu1 %v5690_v1 }
 0xdf0   :  { %5326 = vmatpush3.msra.mxu1 %v3597_v38 }
 0xdf1   :  { %5621 = vpow2.f32 %v2955_v39  ;;  %5327 = vmatprep.subr.mxu1 %v5690_v1 }
 0xdf2   :  { %5328 = vmatpush3.msra.mxu1 %v3596_v50 }
 0xdf3   :  { %5367 = vmatprep.subr.mxu1 %v5690_v1 }
 0xdf7   :  { %v7249_v46 = vpop.eup %5619 }
 0xdf8   :  { %v2966_v34 = vsel %vm810_vm5, %v7249_v46, 0.0 }
 0xdf9   :  { %2967 = vadd.xlane.f32.xlu0 %v2966_v34 }
 0xdfe   :  { %v7253_v36 = vpop.eup %5621 }
 0xdff   :  { %v2969_v25 = vsel %vm823_vm6, %v7253_v36, 0.0 }
 0xe00   :  { %2970 = vadd.xlane.f32.xlu0 %v2969_v25 }
 0xe63   :  { %v3255_v11 = vpop.f32.mrf.mxu0 }
 0xe64   :  { %v7268_v2 = vpop.f32.mrf.mxu1  ;;  %3526 = vrot.lane.b32.xlu1 %v3255_v11, %s5703_s14 }
 0xe65   :  { %v5258_v16 = vpop.f32.mrf.mxu0 }
 0xe66   :  { %v5233_v47 = vpop.f32.mrf.mxu1 }
 0xe6a   :  { %v7272_v41 = vpop.f32.mrf.mxu1  ;;  %v3260_v35 = vpop.f32.mrf.mxu0 }
 0xe6b   :  { %3528 = vrot.lane.b32.xlu1 %v3260_v35, %s5703_s14 }
 0xe6c   :  { %v5236_v51 = vpop.f32.mrf.mxu1  ;;  %v5261_v19 = vpop.f32.mrf.mxu0 }
 0xe6e   :  { %v7275_v43 = vpop.f32.mrf.mxu1 }
 0xe70   :  { %v5239_v57 = vpop.f32.mrf.mxu1  ;;  %v3265_v6 = vpop.f32.mrf.mxu0 }
 0xe72   :  { %v5264_v14 = vpop.f32.mrf.mxu0 }
 0xe74   :  { %v7277_v49 = vpop.f32.mrf.mxu1 }
 0xe75   :  { %v7282_v17 = vpop.f32.mrf.mxu0 }
 0xe76   :  { %v5242_v23 = vpop.f32.mrf.mxu1 }
 0xe77   :  { %v5267_v44 = vpop.f32.mrf.mxu0 }
 0xe78   :  { %v7285_v59 = vpop.f32.mrf.mxu1  ;;  %v7338_v44 = vld [vmem:[%s7587_s1 + $0x1a8] ss:$0 sm:$0xff] }
 0xe79   :  { %v7287_v55 = vpop.f32.mrf.mxu0 }
 0xe7a   :  { %v5245_v15 = vpop.f32.mrf.mxu1 }
 0xe7b   :  { %v5270_v30 = vpop.f32.mrf.mxu0 }
 0xe7c   :  { %v3376_v40 = vpop.f32.mrf.mxu1 }
 0xe7d   :  { %3546 = vrot.lane.b32.xlu0 %v3376_v40, %s5704_s6 }
 0xe7e   :  { %v5283_v61 = vpop.f32.mrf.mxu1 }
 0xe80   :  { %v3381_v27 = vpop.f32.mrf.mxu1  ;;  %v3497_v33 = vpop.f32.mrf.mxu0 }
 0xe81   :  { %3566 = vrot.lane.b32.xlu1 %v3497_v33, %s5705_s7  ;;  %3548 = vrot.lane.b32.xlu0 %v3381_v27, %s5704_s6 }
 0xe82   :  { %v2968_v52 = vpop.xlane.xlu0 %2967  ;;  %v5286_v58 = vpop.f32.mrf.mxu1 }
 0xe83   :  { %5623 = vrcp.f32 %v2968_v52  ;;  %v5308_v56 = vpop.f32.mrf.mxu0 }
 0xe84   :  { %v3386_v22 = vpop.f32.mrf.mxu1 }
 0xe85   :  { %v3502_v42 = vpop.f32.mrf.mxu0  ;;  %3530 = vrot.lane.b32.xlu0 %v3265_v6, %s5703_s14 }
 0xe86   :  { %3568 = vrot.lane.b32.xlu1 %v3502_v42, %s5705_s7  ;;  %v5289_v48 = vpop.f32.mrf.mxu1 }
 0xe87   :  { %v5311_v31 = vpop.f32.mrf.mxu0 }
 0xe89   :  { %v3507_v54 = vpop.f32.mrf.mxu0  ;;  %v2971_v62 = vpop.xlane.xlu0 %2970 }
 0xe8a   :  { %3550 = vrot.lane.b32.xlu1 %v3386_v22, %s5704_s6  ;;  %3570 = vrot.lane.b32.xlu0 %v3507_v54, %s5705_s7  ;;  %5625 = vrcp.f32 %v2971_v62 }
 0xe8b   :  { %v5314_v37 = vpop.f32.mrf.mxu0 }
 0xe90   :  { %v5624_v8 = vpop.eup %5623 }
 0xe91   :  { %v2979_v12 = vmul.f32 %v5624_v8, %v7249_v46 }
 0xe93   :  { %5291 = vmatmul.mubr.msk.f32.gmra.mxu1 %vm810_vm5, %v2979_v12 }
 0xe94   :  { %5293 = vmatprep.mubr.msk.f32.mxu1 %vm5691_vm0, %v5690_v1 }
 0xe97   :  { %v5626_v24 = vpop.eup %5625 }
 0xe98   :  { %v2981_v5 = vmul.f32 %v5626_v24, %v7253_v36 }
 0xe9a   :  { %5294 = vmatmul.mubr.msk.f32.gmra.mxu1 %vm810_vm5, %v2981_v5 }
 0xe9b   :  { %5329 = vmatprep.mubr.msk.f32.mxu1 %vm5691_vm0, %v5690_v1 }
 0xea9   :  { %2995 = vmax.xlane.f32.xlu0 %v2994_v26 }
 0xeae   :  { %2992 = vmax.xlane.f32.xlu1 %v2991_v60 }
 0xed6   :  { %v3527_v63 = vpop.permute.xlu1 %3526 }
 0xed7   :  { %v3581_v34 = vsel %vm269_vm3, %v7268_v2, %v3527_v63 }
 0xedd   :  { %v3529_v39 = vpop.permute.xlu1 %3528 }
 0xede   :  { %v3582_v21 = vsel %vm269_vm3, %v7272_v41, %v3529_v39 }
 0xeef   :  { %v3547_v46 = vpop.permute.xlu0 %3546 }
 0xef0   :  { %v3586_v32 = vsel %vm1582_vm7, %v3581_v34, %v3547_v46 }
 0xef3   :  { %v3549_v36 = vpop.permute.xlu0 %3548  ;;  %v3567_v29 = vpop.permute.xlu1 %3566 }
 0xef4   :  { %v3591_v7 = vsel %vm1588_vm8, %v3586_v32, %v3567_v29  ;;  %v3587_v9 = vsel %vm1582_vm7, %v3582_v21, %v3549_v36 }
 0xef5   :  { %5330 = vmatmul.mubr.msk.f32.vlgmr.msra.gmra.mxu1 %vm148_vm2, %v3591_v7 }
 0xef6   :  { %5332 = vmatprep.mubr.msk.f32.mxu1 %vm5691_vm0, %v5690_v1 }
 0xef7   :  { %v3531_v25 = vpop.permute.xlu0 %3530 }
 0xef8   :  { %v3569_v10 = vpop.permute.xlu1 %3568  ;;  %v3583_v11 = vsel %vm269_vm3, %v7275_v43, %v3531_v25 }
 0xef9   :  { %v3592_v38 = vsel %vm1588_vm8, %v3587_v9, %v3569_v10 }
 0xefa   :  { %5333 = vmatmul.mubr.msk.f32.gmra.mxu1 %vm148_vm2, %v3592_v38  ;;  %v3803_v38 = vld [vmem:[%s7587_s1 + $0x1d8] sm:$0xff] }
 0xefb   :  { %5335 = vmatprep.mubr.msk.f32.mxu1 %vm5691_vm0, %v5690_v1  ;;  %5345 = vmatpush3.msra.mxu0 %v3803_v38 }
 0xefc   :  { %v3571_v2 = vpop.permute.xlu0 %3570  ;;  %v3551_v16 = vpop.permute.xlu1 %3550  ;;  %5346 = vmatprep.subr.mxu0 %v5690_v1 }
 0xefd   :  { %v3588_v47 = vsel %vm1582_vm7, %v3583_v11, %v3551_v16  ;;  %v3802_v11 = vld [vmem:[%s7587_s1 + $0x1d0] sm:$0xff] }
 0xefe   :  { %v3593_v41 = vsel %vm1588_vm8, %v3588_v47, %v3571_v2  ;;  %5347 = vmatpush3.msra.mxu0 %v3802_v11 }
 0xeff   :  { %5336 = vmatmul.mubr.msk.f32.gmra.mxu1 %vm148_vm2, %v3593_v41  ;;  %5348 = vmatprep.subr.mxu0 %v5690_v1 }
 0xf00   :  { %5338 = vmatprep.mubr.msk.f32.mxu1 %vm5691_vm0, %v5690_v1 }
 0xf32   :  { %v2996_v43 = vpop.xlane.xlu0 %2995 }
 0xf33   :  { %v3001_v23 = vsub.f32 %v2816_v4, %v2996_v43 }
 0xf35   :  { %v3010_v15 = vmul.f32 1.442695, %v3001_v23 }
 0xf37   :  { %v2993_v6 = vpop.xlane.xlu1 %2992 }
 0xf38   :  { %v3000_v14 = vsub.f32 %v2815_v3, %v2993_v6 }
 0xf3a   :  { %v3008_v50 = vmul.f32 1.442695, %v3000_v14 }
 0xf3c   :  { %5627 = vpow2.f32 %v3008_v50  ;;  %v7385_v50 = vld [vmem:[%s7587_s1 + $0x1b0] ss:$0 sm:$0xff] }
 0xf3d   :  { %5629 = vpow2.f32 %v3010_v15  ;;  %v7390_v15 = vld [vmem:[%s7587_s1 + $0x1b8] ss:$0 sm:$0xff] }
 0xf49   :  { %v5628_v31 = vpop.eup %5627 }
 0xf4a   :  { %v5630_v12 = vpop.eup %5629 }
 0xf4b   :  { %v3024_v24 = vsel %vm823_vm6, %v5630_v12, 0.0 }
 0xf53   :  { %v7331_v35 = vpop.f32.mrf.mxu1 }
 0xf55   :  { %v5292_v51 = vpop.f32.mrf.mxu1 }
 0xf5a   :  { %v7333_v19 = vpop.f32.mrf.mxu1 }
 0xf5c   :  { %v5295_v57 = vpop.f32.mrf.mxu1 }
 0xfb5   :  { %v3686_v30 = vpop.f32.mrf.mxu1 }
 0xfb6   :  { %v3687_v40 = vadd.f32 %v7338_v44, %v3686_v30 }
 0xfb7   :  { %v5331_v61 = vpop.f32.mrf.mxu1 }
 0xfb8   :  { %v3710_v27 = vadd.f32 %v3687_v40, %v6681_v45  ;;  %v3021_v45 = vsel %vm810_vm5, %v5628_v31, 0.0 }
 0xfba   :  { %v3691_v33 = vpop.f32.mrf.mxu1  ;;  %v3717_v52 = vsel %vm148_vm2, %v3710_v27, 0.0 }
 0xfbb   :  { %v3692_v58 = vadd.f32 %v7338_v44, %v3691_v33  ;;  %3718 = vadd.xlane.f32.xlu0 %v3717_v52 }
 0xfbc   :  { %v5334_v56 = vpop.f32.mrf.mxu1 }
 0xfbd   :  { %v3711_v22 = vadd.f32 %v3692_v58, %v6687_v53 }
 0xfbf   :  { %v3696_v42 = vpop.f32.mrf.mxu1  ;;  %v3720_v48 = vsel %vm148_vm2, %v3711_v22, 0.0 }
 0xfc0   :  { %v3697_v54 = vadd.f32 %v7338_v44, %v3696_v42  ;;  %3721 = vadd.xlane.f32.xlu1 %v3720_v48 }
 0xfc1   :  { %v5337_v62 = vpop.f32.mrf.mxu1 }
 0xfc2   :  { %v3712_v37 = vadd.f32 %v3697_v54, %v6694_v18 }
 0xfc4   :  { %3022 = vadd.xlane.f32.xlu1 %v3021_v45  ;;  %v3723_v8 = vsel %vm148_vm2, %v3712_v37, 0.0  ;;  %v3945_v45 = vld [vmem:[%s7587_s1 + $0x218] sm:$0xff] }
 0xfc5   :  { %3724 = vadd.xlane.f32.xlu0 %v3723_v8  ;;  %v3943_v8 = vld [vmem:[%s7587_s1 + $0x208] sm:$0xff] }
 0xfc9   :  { %3025 = vadd.xlane.f32.xlu0 %v3024_v24  ;;  %v3941_v24 = vld [vmem:[%s7587_s1 + $0x1f8] sm:$0xff] }
0x1044   :  { %v3719_v53 = vpop.xlane.xlu0 %3718 }
0x1045   :  { %v3732_v5 = vmul.f32 0.03125, %v3719_v53  ;;  %v3940_v53 = vld [vmem:[%s7587_s1 + $0x1f0] sm:$0xff] }
0x1047   :  { %v3737_v0 = vsub.f32 %v3710_v27, %v3732_v5  ;;  %v3939_v5 = vld [vmem:[%s7587_s1 + $0x1e8] sm:$0xff] }
0x1049   :  { %v3722_v4 = vpop.xlane.xlu1 %3721  ;;  %v3742_v13 = vmul.f32 %v3737_v0, %v3737_v0 }
0x104a   :  { %v3733_v26 = vmul.f32 0.03125, %v3722_v4 }
0x104b   :  { %v3747_v3 = vsel %vm148_vm2, %v3742_v13, 0.0 }
0x104c   :  { %v3738_v60 = vsub.f32 %v3711_v22, %v3733_v26  ;;  %3748 = vadd.xlane.f32.xlu1 %v3747_v3 }
0x104d   :  { %v3023_v18 = vpop.xlane.xlu1 %3022 }
0x104e   :  { %5631 = vrcp.f32 %v3023_v18  ;;  %v3725_v63 = vpop.xlane.xlu0 %3724  ;;  %v3743_v39 = vmul.f32 %v3738_v60, %v3738_v60 }
0x104f   :  { %v3734_v46 = vmul.f32 0.03125, %v3725_v63 }
0x1050   :  { %v3750_v34 = vsel %vm148_vm2, %v3743_v39, 0.0 }
0x1051   :  { %v3739_v32 = vsub.f32 %v3712_v37, %v3734_v46  ;;  %3751 = vadd.xlane.f32.xlu0 %v3750_v34  ;;  %v3946_v37 = vld [vmem:[%s7587_s1 + $0x220] sm:$0xff] }
0x1052   :  { %v3026_v36 = vpop.xlane.xlu0 %3025  ;;  %5368 = vmatpush3.msra.mxu1 %v3946_v37 }
0x1053   :  { %5633 = vrcp.f32 %v3026_v36  ;;  %v3744_v29 = vmul.f32 %v3739_v32, %v3739_v32  ;;  %5369 = vmatprep.subr.mxu1 %v5690_v1 }
0x1054   :  { %5370 = vmatpush3.msra.mxu1 %v3945_v45 }
0x1055   :  { %v3753_v7 = vsel %vm148_vm2, %v3744_v29, 0.0  ;;  %5371 = vmatprep.subr.mxu1 %v5690_v1 }
0x1056   :  { %3754 = vadd.xlane.f32.xlu1 %v3753_v7 }
0x105b   :  { %v5632_v21 = vpop.eup %5631 }
0x105c   :  { %v3034_v25 = vmul.f32 %v5632_v21, %v5628_v31 }
0x105e   :  { %5316 = vmatmul.mubr.msk.f32.gmra.mxu0 %vm810_vm5, %v3034_v25 }
0x105f   :  { %5318 = vmatprep.mubr.msk.f32.mxu0 %vm5691_vm0, %v5690_v1 }
0x1060   :  { %v5634_v9 = vpop.eup %5633 }
0x1061   :  { %v3036_v10 = vmul.f32 %v5634_v9, %v5630_v12  ;;  %v3942_v12 = vld [vmem:[%s7587_s1 + $0x200] sm:$0xff] }
0x1063   :  { %5319 = vmatmul.mubr.msk.f32.gmra.mxu0 %vm810_vm5, %v3036_v10 }
0x1064   :  { %5352 = vmatprep.mubr.msk.f32.mxu0 %vm5691_vm0, %v5690_v1 }
0x1067   :  { %3552 = vrot.lane.b32.xlu1 %v7331_v35, %s5704_s6  ;;  %3532 = vrot.lane.b32.xlu0 %v7282_v17, %s5703_s14  ;;  %v3801_v17 = vld [vmem:[%s7587_s1 + $0x1c8] sm:$0xff] }
0x1068   :  { %5349 = vmatpush3.msra.mxu0 %v3801_v17 }
0x1069   :  { %5350 = vmatprep.subr.mxu0 %v5690_v1 }
0x106b   :  { %3534 = vrot.lane.b32.xlu0 %v7287_v55, %s5703_s14  ;;  %v3800_v55 = vld [vmem:[%s7587_s1 + $0x1c0] sm:$0xff] }
0x106c   :  { %5351 = vmatpush3.msra.mxu0 %v3800_v55 }
0x106d   :  { %5398 = vmatprep.subr.mxu0 %v5690_v1 }
0x10d5   :  { %v3749_v2 = vpop.xlane.xlu1 %3748 }
0x10d6   :  { %v3762_v16 = vmul.f32 0.03125, %v3749_v2 }
0x10d8   :  { %v3767_v47 = vadd.f32 1e-05, %v3762_v16 }
0x10da   :  { %5635 = vrsqrt.f32 %v3767_v47  ;;  %v3752_v41 = vpop.xlane.xlu0 %3751 }
0x10db   :  { %v3763_v35 = vmul.f32 0.03125, %v3752_v41 }
0x10dd   :  { %v3768_v51 = vadd.f32 1e-05, %v3763_v35 }
0x10df   :  { %5637 = vrsqrt.f32 %v3768_v51  ;;  %v3755_v57 = vpop.xlane.xlu1 %3754 }
0x10e0   :  { %v3764_v6 = vmul.f32 0.03125, %v3755_v57 }
0x10e2   :  { %v3769_v14 = vadd.f32 1e-05, %v3764_v6 }
0x10e3   :  { %v3553_v4 = vpop.permute.xlu1 %3552 }
0x10e4   :  { %5639 = vrsqrt.f32 %v3769_v14 }
0x10e7   :  { %v5636_v43 = vpop.eup %5635 }
0x10e8   :  { %v3777_v23 = vmul.f32 %v5636_v43, %v3737_v0  ;;  %v3533_v0 = vpop.permute.xlu0 %3532 }
0x10e9   :  { %v3584_v13 = vsel %vm269_vm3, %v7277_v49, %v3533_v0 }
0x10ea   :  { %v3786_v30 = vmul.f32 %v7385_v50, %v3777_v23  ;;  %v3589_v26 = vsel %vm1582_vm7, %v3584_v13, %v3553_v4 }
0x10ec   :  { %v5638_v40 = vpop.eup %5637  ;;  %v7394_v61 = vadd.f32 %v7390_v15, %v3786_v30 }
0x10ed   :  { %v3778_v27 = vmul.f32 %v5638_v40, %v3738_v60  ;;  %v3535_v60 = vpop.permute.xlu0 %3534 }
0x10ee   :  { %5353 = vmatmul.mubr.msk.f32.vlgmr.msra.gmra.mxu0 %vm148_vm2, %v7394_v61  ;;  %v3585_v63 = vsel %vm269_vm3, %v7285_v59, %v3535_v60 }
0x10ef   :  { %5355 = vmatprep.mubr.msk.f32.mxu0 %vm5691_vm0, %v5690_v1  ;;  %v3787_v33 = vmul.f32 %v7385_v50, %v3778_v27 }
0x10f1   :  { %v5640_v52 = vpop.eup %5639  ;;  %v3796_v58 = vadd.f32 %v7390_v15, %v3787_v33 }
0x10f2   :  { %v3779_v56 = vmul.f32 %v5640_v52, %v3739_v32  ;;  %v7465_v32 = vld [vmem:[%s7587_s1 + $0x1e0] ss:$0 sm:$0xff] }
0x10f3   :  { %5356 = vmatmul.mubr.msk.f32.gmra.mxu0 %vm148_vm2, %v3796_v58  ;;  %v4492_v58 = vld [vmem:[%s7587_s1 + $0x228] ss:$0 sm:$0xff] }
0x10f4   :  { %5358 = vmatprep.mubr.msk.f32.mxu0 %vm5691_vm0, %v5690_v1  ;;  %v3788_v22 = vmul.f32 %v7385_v50, %v3779_v56 }
0x10f6   :  { %v7407_v42 = vadd.f32 %v7390_v15, %v3788_v22 }
0x10f8   :  { %5359 = vmatmul.mubr.msk.f32.gmra.mxu0 %vm148_vm2, %v7407_v42 }
0x10f9   :  { %5361 = vmatprep.mubr.msk.f32.mxu0 %vm5691_vm0, %v5690_v1 }
0x111e   :  { %v3512_v48 = vpop.f32.mrf.mxu0 }
0x111f   :  { %3572 = vrot.lane.b32.xlu1 %v3512_v48, %s5705_s7 }
0x1120   :  { %v5317_v31 = vpop.f32.mrf.mxu0 }
0x1123   :  { %3554 = vrot.lane.b32.xlu1 %v7333_v19, %s5704_s6  ;;  %v3517_v54 = vpop.f32.mrf.mxu0  ;;  %v3944_v19 = vld [vmem:[%s7587_s1 + $0x210] sm:$0xff] }
0x1124   :  { %3574 = vrot.lane.b32.xlu0 %v3517_v54, %s5705_s7  ;;  %5372 = vmatpush3.msra.mxu1 %v3944_v19 }
0x1125   :  { %v5320_v62 = vpop.f32.mrf.mxu0  ;;  %5373 = vmatprep.subr.mxu1 %v5690_v1 }
0x1126   :  { %5374 = vmatpush3.msra.mxu1 %v3943_v8 }
0x1127   :  { %5375 = vmatprep.subr.mxu1 %v5690_v1 }
0x1128   :  { %5376 = vmatpush3.msra.mxu1 %v3942_v12 }
0x1129   :  { %5377 = vmatprep.subr.mxu1 %v5690_v1 }
0x112a   :  { %5378 = vmatpush3.msra.mxu1 %v3941_v24 }
0x112b   :  { %5379 = vmatprep.subr.mxu1 %v5690_v1 }
0x112c   :  { %5380 = vmatpush3.msra.mxu1 %v3940_v53 }
0x112d   :  { %5381 = vmatprep.subr.mxu1 %v5690_v1 }
0x112e   :  { %5382 = vmatpush3.msra.mxu1 %v3939_v5 }
0x1191   :  { %v3573_v3 = vpop.permute.xlu1 %3572 }
0x1192   :  { %v3594_v18 = vsel %vm1588_vm8, %v3589_v26, %v3573_v3 }
0x1193   :  { %5339 = vmatmul.mubr.msk.f32.gmra.mxu1 %vm148_vm2, %v3594_v18 }
0x1194   :  { %5341 = vmatprep.mubr.msk.f32.mxu1 %vm5691_vm0, %v5690_v1 }
0x1195   :  { %v3555_v39 = vpop.permute.xlu1 %3554 }
0x1196   :  { %v3590_v46 = vsel %vm1582_vm7, %v3585_v63, %v3555_v39  ;;  %v3575_v34 = vpop.permute.xlu0 %3574 }
0x1197   :  { %v3595_v49 = vsel %vm1588_vm8, %v3590_v46, %v3575_v34 }
0x1198   :  { %5342 = vmatmul.mubr.msk.f32.gmra.mxu1 %vm148_vm2, %v3595_v49 }
0x1199   :  { %5383 = vmatprep.mubr.msk.f32.mxu1 %vm5691_vm0, %v5690_v1 }
0x11ae   :  { %v3890_v36 = vpop.f32.mrf.mxu0 }
0x11af   :  { %v3891_v29 = vadd.f32 %v7465_v32, %v3890_v36 }
0x11b0   :  { %v5354_v59 = vpop.f32.mrf.mxu0 }
0x11b1   :  { %v3919_v7 = vmul.f32 0.70710677, %v3891_v29  ;;  %v3914_v16 = vmul.f32 0.5, %v3891_v29 }
0x11b3   :  { %5641 = verf.f32 %v3919_v7  ;;  %v3895_v21 = vpop.f32.mrf.mxu0 }
0x11b4   :  { %v3896_v25 = vadd.f32 %v7465_v32, %v3895_v21 }
0x11b5   :  { %v5357_v9 = vpop.f32.mrf.mxu0 }
0x11b6   :  { %v3920_v10 = vmul.f32 0.70710677, %v3896_v25  ;;  %v3915_v51 = vmul.f32 0.5, %v3896_v25 }
0x11b8   :  { %5643 = verf.f32 %v3920_v10  ;;  %v3900_v38 = vpop.f32.mrf.mxu0 }
0x11b9   :  { %v3901_v11 = vadd.f32 %v7465_v32, %v3900_v38 }
0x11ba   :  { %v5360_v17 = vpop.f32.mrf.mxu0 }
0x11bb   :  { %v3921_v55 = vmul.f32 0.70710677, %v3901_v11  ;;  %v3916_v43 = vmul.f32 0.5, %v3901_v11 }
0x11bd   :  { %5645 = verf.f32 %v3921_v55  ;;  %v4498_v55 = vld [vmem:[%s7587_s1 + $0x230] ss:$0 sm:$0xff] }
0x11c0   :  { %v5642_v2 = vpop.eup %5641 }
0x11c1   :  { %v3929_v47 = vadd.f32 1.0, %v5642_v2 }
0x11c3   :  { %v3934_v41 = vmul.f32 %v3929_v47, %v3914_v16 }
0x11c5   :  { %v5644_v35 = vpop.eup %5643  ;;  %5384 = vmatmul.mubr.msk.f32.vlgmr.msra.gmra.mxu1 %vm1952_vm10, %v3934_v41 }
0x11c6   :  { %v3930_v57 = vadd.f32 1.0, %v5644_v35  ;;  %5386 = vmatprep.mubr.msk.f32.mxu1 %vm5691_vm0, %v5690_v1  ;;  %v4499_v35 = vld [vmem:[%s7587_s1 + $0x238] ss:$0 sm:$0xff] }
0x11c8   :  { %v3935_v6 = vmul.f32 %v3930_v57, %v3915_v51 }
0x11ca   :  { %v5646_v14 = vpop.eup %5645  ;;  %5387 = vmatmul.mubr.msk.f32.gmra.mxu1 %vm1952_vm10, %v3935_v6 }
0x11cb   :  { %v3931_v23 = vadd.f32 1.0, %v5646_v14  ;;  %5389 = vmatprep.mubr.msk.f32.mxu1 %vm5691_vm0, %v5690_v1 }
0x11cd   :  { %v3936_v30 = vmul.f32 %v3931_v23, %v3916_v43 }
0x11cf   :  { %5390 = vmatmul.mubr.msk.f32.gmra.mxu1 %vm1952_vm10, %v3936_v30 }
0x11d0   :  { %5392 = vmatprep.mubr.msk.f32.mxu1 %vm5691_vm0, %v5690_v1 }
0x1253   :  { %v3701_v40 = vpop.f32.mrf.mxu1 }
0x1254   :  { %v3702_v0 = vadd.f32 %v7338_v44, %v3701_v40 }
0x1255   :  { %v5340_v27 = vpop.f32.mrf.mxu1 }
0x1258   :  { %v3706_v33 = vpop.f32.mrf.mxu1 }
0x125a   :  { %v5343_v52 = vpop.f32.mrf.mxu1 }
0x1285   :  { %v4033_v56 = vpop.f32.mrf.mxu1 }
0x1286   :  { %v4034_v22 = vadd.f32 %v4492_v58, %v4033_v56 }
0x1287   :  { %v5385_v48 = vpop.f32.mrf.mxu1 }
0x1288   :  { %v4054_v31 = vadd.f32 %v4034_v22, %v7394_v61  ;;  %v3713_v61 = vadd.f32 %v3702_v0, %v6701_v28 }
0x128a   :  { %v4038_v54 = vpop.f32.mrf.mxu1  ;;  %v4058_v62 = vsel %vm148_vm2, %v4054_v31, 0.0  ;;  %v3726_v18 = vsel %vm148_vm2, %v3713_v61, 0.0 }
0x128b   :  { %4059 = vadd.xlane.f32.xlu1 %v4058_v62 }
0x128c   :  { %v5388_v37 = vpop.f32.mrf.mxu1 }
0x128f   :  { %v4042_v45 = vpop.f32.mrf.mxu1 }
0x1290   :  { %v4043_v19 = vadd.f32 %v4492_v58, %v4042_v45 }
0x1291   :  { %v5391_v8 = vpop.f32.mrf.mxu1 }
0x1292   :  { %v4055_v12 = vadd.f32 %v4043_v19, %v7407_v42  ;;  %v3707_v42 = vadd.f32 %v7338_v44, %v3706_v33 }
0x1294   :  { %v4061_v24 = vsel %vm148_vm2, %v4055_v12, 0.0  ;;  %v3714_v46 = vadd.f32 %v3707_v42, %v6708_v20 }
0x1295   :  { %4062 = vadd.xlane.f32.xlu0 %v4061_v24 }
0x1296   :  { %v3729_v49 = vsel %vm1727_vm9, %v3714_v46, 0.0 }
0x1314   :  { %v4060_v53 = vpop.xlane.xlu1 %4059 }
0x1315   :  { %v4064_v5 = vmul.f32 0.03125, %v4060_v53 }
0x1317   :  { %v4066_v4 = vsub.f32 %v4054_v31, %v4064_v5 }
0x1319   :  { %v4068_v13 = vmul.f32 %v4066_v4, %v4066_v4 }
0x131b   :  { %v4070_v26 = vsel %vm148_vm2, %v4068_v13, 0.0  ;;  %v4125_v13 = vld [vmem:[%s7587_s1 + $0x260] sm:$0xff] }
0x131c   :  { %4071 = vadd.xlane.f32.xlu0 %v4070_v26 }
0x131e   :  { %v4063_v3 = vpop.xlane.xlu0 %4062 }
0x131f   :  { %v4065_v60 = vmul.f32 0.03125, %v4063_v3 }
0x1320   :  { %3727 = vadd.xlane.f32.xlu0 %v3726_v18  ;;  %v4500_v18 = vld [vmem:[%s7587_s1 + $0x240] ss:$0 sm:$0xff] }
0x1321   :  { %v4067_v63 = vsub.f32 %v4055_v12, %v4065_v60 }
0x1323   :  { %v4069_v39 = vmul.f32 %v4067_v63, %v4067_v63 }
0x1325   :  { %v4073_v34 = vsel %vm148_vm2, %v4069_v39, 0.0 }
0x1326   :  { %4074 = vadd.xlane.f32.xlu1 %v4073_v34 }
0x132a   :  { %3730 = vadd.xlane.f32.xlu1 %v3729_v49 }
0x13a5   :  { %v4072_v28 = vpop.xlane.xlu0 %4071 }
0x13a6   :  { %v4076_v36 = vmul.f32 0.03125, %v4072_v28 }
0x13a8   :  { %v4078_v59 = vadd.f32 1e-05, %v4076_v36 }
0x13a9   :  { %v3728_v29 = vpop.xlane.xlu0 %3727 }
0x13aa   :  { %v3735_v7 = vmul.f32 0.03125, %v3728_v29  ;;  %5647 = vrsqrt.f32 %v4078_v59 }
0x13ac   :  { %v3740_v21 = vsub.f32 %v3713_v61, %v3735_v7 }
0x13ae   :  { %v3745_v25 = vmul.f32 %v3740_v21, %v3740_v21 }
0x13af   :  { %v4075_v9 = vpop.xlane.xlu1 %4074 }
0x13b0   :  { %v4077_v44 = vmul.f32 0.03125, %v4075_v9  ;;  %v3756_v10 = vsel %vm148_vm2, %v3745_v25, 0.0 }
0x13b1   :  { %3757 = vadd.xlane.f32.xlu1 %v3756_v10 }
0x13b2   :  { %v4079_v20 = vadd.f32 1e-05, %v4077_v44 }
0x13b3   :  { %v3731_v11 = vpop.xlane.xlu1 %3730 }
0x13b4   :  { %5649 = vrsqrt.f32 %v4079_v20  ;;  %v3736_v16 = vmul.f32 0.03125, %v3731_v11 }
0x13b6   :  { %v3741_v57 = vsub.f32 %v3714_v46, %v3736_v16  ;;  %v4214_v16 = vld [vmem:[%s7587_s1 + $0x298] sm:$0xff] }
0x13b7   :  { %v5648_v38 = vpop.eup %5647 }
0x13b8   :  { %v4082_v17 = vmul.f32 %v5648_v38, %v4066_v4  ;;  %v3746_v30 = vmul.f32 %v3741_v57, %v3741_v57  ;;  %v4126_v4 = vld [vmem:[%s7587_s1 + $0x268] sm:$0xff] }
0x13b9   :  { %5399 = vmatpush3.msra.mxu0 %v4126_v4 }
0x13ba   :  { %v4088_v41 = vmul.f32 %v4498_v55, %v4082_v17  ;;  %v3759_v40 = vsel %vm1727_vm9, %v3746_v30, 0.0  ;;  %5400 = vmatprep.subr.mxu0 %v5690_v1 }
0x13bb   :  { %5401 = vmatpush3.msra.mxu0 %v4125_v13 }
0x13bc   :  { %v4094_v6 = vadd.f32 %v4499_v35, %v4088_v41  ;;  %5402 = vmatprep.subr.mxu0 %v5690_v1  ;;  %v4212_v41 = vld [vmem:[%s7587_s1 + $0x288] sm:$0xff] }
0x13c1   :  { %v5650_v2 = vpop.eup %5649 }
0x13c2   :  { %v4083_v47 = vmul.f32 %v5650_v2, %v4067_v63  ;;  %v4501_v63 = vld [vmem:[%s7587_s1 + $0x248] ss:$0 sm:$0xff]  ;;  %v4215_v2 = vld [vmem:[%s7587_s1 + $0x2a0] sm:$0xff] }
0x13c4   :  { %v4089_v51 = vmul.f32 %v4498_v55, %v4083_v47  ;;  %v4217_v55 = vld [vmem:[%s7587_s1 + $0x2b0] sm:$0xff] }
0x13c5   :  { %v4213_v47 = vld [vmem:[%s7587_s1 + $0x290] sm:$0xff] }
0x13c6   :  { %v4095_v14 = vadd.f32 %v4499_v35, %v4089_v51  ;;  %v4211_v35 = vld [vmem:[%s7587_s1 + $0x280] sm:$0xff]  ;;  %v4210_v51 = vld [vmem:[%s7587_s1 + $0x278] sm:$0xff] }
0x13c8   :  { %v4097_v43 = vsel %vm4096_vm11, %v4094_v6, %v4095_v14 }
0x13c9   :  { %v4100_v23 = vsel %vm1727_vm9, %v4097_v43, 0.0 }
0x13ca   :  { %4101 = vadd.xlane.f32.xlu0 %v4100_v23 }
0x13ce   :  { %3760 = vadd.xlane.f32.xlu0 %v3759_v40 }
0x143a   :  { %v3758_v27 = vpop.xlane.xlu1 %3757 }
0x143b   :  { %v3765_v33 = vmul.f32 0.03125, %v3758_v27 }
0x143d   :  { %v3770_v52 = vadd.f32 1e-05, %v3765_v33 }
0x143f   :  { %5651 = vrsqrt.f32 %v3770_v52 }
0x144c   :  { %v5652_v58 = vpop.eup %5651 }
0x144d   :  { %v3780_v56 = vmul.f32 %v5652_v58, %v3740_v21 }
0x144f   :  { %v3789_v22 = vmul.f32 %v7385_v50, %v3780_v56 }
0x1451   :  { %v3798_v48 = vadd.f32 %v7390_v15, %v3789_v22  ;;  %v4504_v22 = vld [vmem:[%s7587_s1 + $0x2b8] ss:$0 sm:$0xff] }
0x1453   :  { %v4102_v31 = vpop.xlane.xlu0 %4101  ;;  %5362 = vmatmul.mubr.msk.f32.gmra.mxu0 %vm148_vm2, %v3798_v48 }
0x1454   :  { %v4103_v54 = vmul.f32 0.03125, %v4102_v31  ;;  %5364 = vmatprep.mubr.msk.f32.mxu0 %vm5691_vm0, %v5690_v1 }
0x1456   :  { %v4104_v62 = vsub.f32 %v4097_v43, %v4103_v54 }
0x1457   :  { %v3761_v37 = vpop.xlane.xlu0 %3760 }
0x1458   :  { %v3766_v45 = vmul.f32 0.03125, %v3761_v37  ;;  %v4105_v19 = vmul.f32 %v4104_v62, %v4104_v62 }
0x145a   :  { %v3771_v8 = vadd.f32 1e-05, %v3766_v45  ;;  %v4106_v12 = vsel %vm1727_vm9, %v4105_v19, 0.0 }
0x145b   :  { %4107 = vadd.xlane.f32.xlu1 %v4106_v12 }
0x145c   :  { %5653 = vrsqrt.f32 %v3771_v8 }
0x1469   :  { %v5654_v24 = vpop.eup %5653 }
0x146a   :  { %v3781_v53 = vmul.f32 %v5654_v24, %v3741_v57  ;;  %v4502_v57 = vld [vmem:[%s7587_s1 + $0x270] ss:$0 sm:$0xff] }
0x146c   :  { %v3790_v5 = vmul.f32 %v7385_v50, %v3781_v53  ;;  %v4124_v50 = vld [vmem:[%s7587_s1 + $0x258] sm:$0xff] }
0x146d   :  { %5403 = vmatpush3.msra.mxu0 %v4124_v50 }
0x146e   :  { %v3799_v0 = vadd.f32 %v7390_v15, %v3790_v5  ;;  %v4123_v15 = vld [vmem:[%s7587_s1 + $0x250] sm:$0xff]  ;;  %5404 = vmatprep.subr.mxu0 %v5690_v1 }
0x146f   :  { %5405 = vmatpush3.msra.mxu0 %v4123_v15 }
0x1470   :  { %5365 = vmatmul.mubr.msk.f32.gmra.mxu0 %vm148_vm2, %v3799_v0  ;;  %5409 = vmatprep.subr.mxu0 %v5690_v1 }
0x1471   :  { %5406 = vmatprep.mubr.msk.f32.mxu0 %vm5691_vm0, %v5690_v1 }
0x14e4   :  { %v4108_v61 = vpop.xlane.xlu1 %4107 }
0x14e5   :  { %v4109_v26 = vmul.f32 0.03125, %v4108_v61 }
0x14e7   :  { %v4110_v3 = vadd.f32 1e-05, %v4109_v26 }
0x14e9   :  { %5655 = vrsqrt.f32 %v4110_v3 }
0x14f6   :  { %v5656_v60 = vpop.eup %5655 }
0x14f7   :  { %v4112_v42 = vmul.f32 %v5656_v60, %v4104_v62 }
0x14f9   :  { %v4117_v39 = vmul.f32 %v4500_v18, %v4112_v42 }
0x14fb   :  { %v4122_v46 = vadd.f32 %v4501_v63, %v4117_v39 }
0x14fd   :  { %5407 = vmatmul.mubr.msk.f32.vlgmr.msra.gmra.mxu0 %vm148_vm2, %v4122_v46 }
0x14fe   :  { %5425 = vmatprep.mubr.msk.f32.mxu0 %vm5691_vm0, %v5690_v1  ;;  %5410 = vmatpush3.msra.mxu0 %v4217_v55 }
0x14ff   :  { %5411 = vmatprep.subr.mxu0 %v5690_v1 }
0x1513   :  { %v3905_v34 = vpop.f32.mrf.mxu0 }
0x1514   :  { %v3906_v49 = vadd.f32 %v7465_v32, %v3905_v34 }
0x1515   :  { %v5363_v28 = vpop.f32.mrf.mxu0 }
0x1516   :  { %v3922_v36 = vmul.f32 0.70710677, %v3906_v49  ;;  %v3917_v59 = vmul.f32 0.5, %v3906_v49 }
0x1518   :  { %5657 = verf.f32 %v3922_v36 }
0x1525   :  { %v5658_v29 = vpop.eup %5657 }
0x1526   :  { %v3932_v7 = vadd.f32 1.0, %v5658_v29 }
0x1528   :  { %v3937_v21 = vmul.f32 %v3932_v7, %v3917_v59 }
0x152a   :  { %5393 = vmatmul.mubr.msk.f32.gmra.mxu1 %vm1952_vm10, %v3937_v21 }
0x152b   :  { %5395 = vmatprep.mubr.msk.f32.mxu1 %vm5691_vm0, %v5690_v1 }
0x1530   :  { %v3910_v25 = vpop.f32.mrf.mxu0 }
0x1531   :  { %v3911_v9 = vadd.f32 %v7465_v32, %v3910_v25  ;;  %v4216_v32 = vld [vmem:[%s7587_s1 + $0x2a8] sm:$0xff] }
0x1532   :  { %v5366_v44 = vpop.f32.mrf.mxu0  ;;  %5412 = vmatpush3.msra.mxu0 %v4216_v32 }
0x1533   :  { %v3923_v10 = vmul.f32 0.70710677, %v3911_v9  ;;  %v3918_v38 = vmul.f32 0.5, %v3911_v9  ;;  %5413 = vmatprep.subr.mxu0 %v5690_v1 }
0x1534   :  { %5414 = vmatpush3.msra.mxu0 %v4215_v2 }
0x1535   :  { %5659 = verf.f32 %v3923_v10  ;;  %5415 = vmatprep.subr.mxu0 %v5690_v1 }
0x1536   :  { %5416 = vmatpush3.msra.mxu0 %v4214_v16 }
0x1537   :  { %5417 = vmatprep.subr.mxu0 %v5690_v1 }
0x1538   :  { %5418 = vmatpush3.msra.mxu0 %v4213_v47 }
0x1539   :  { %5419 = vmatprep.subr.mxu0 %v5690_v1 }
0x153a   :  { %5420 = vmatpush3.msra.mxu0 %v4212_v41 }
0x153b   :  { %5421 = vmatprep.subr.mxu0 %v5690_v1 }
0x153c   :  { %5422 = vmatpush3.msra.mxu0 %v4211_v35 }
0x153d   :  { %5423 = vmatprep.subr.mxu0 %v5690_v1 }
0x153e   :  { %5424 = vmatpush3.msra.mxu0 %v4210_v51 }
0x1542   :  { %v5660_v20 = vpop.eup %5659 }
0x1543   :  { %v3933_v11 = vadd.f32 1.0, %v5660_v20 }
0x1545   :  { %v3938_v17 = vmul.f32 %v3933_v11, %v3918_v38 }
0x1547   :  { %5396 = vmatmul.mubr.msk.f32.gmra.mxu1 %vm1952_vm10, %v3938_v17 }
0x15bd   :  { %v4201_v6 = vpop.f32.mrf.mxu0 }
0x15be   :  { %v4202_v14 = vadd.f32 %v4502_v57, %v4201_v6 }
0x15bf   :  { %v5408_v43 = vpop.f32.mrf.mxu0 }
0x15c0   :  { %v4206_v23 = vmul.f32 0.70710677, %v4202_v14  ;;  %v4205_v40 = vmul.f32 0.5, %v4202_v14 }
0x15c2   :  { %5661 = verf.f32 %v4206_v23 }
0x15cf   :  { %v5662_v30 = vpop.eup %5661 }
0x15d0   :  { %v4208_v27 = vadd.f32 1.0, %v5662_v30 }
0x15d2   :  { %v4209_v33 = vmul.f32 %v4208_v27, %v4205_v40 }
0x15d4   :  { %5426 = vmatmul.mubr.msk.f32.vlgmr.msra.gmra.mxu0 %vm1952_vm10, %v4209_v33 }
0x15ea   :  { %v4047_v52 = vpop.f32.mrf.mxu1 }
0x15ec   :  { %v5394_v58 = vpop.f32.mrf.mxu1 }
0x1607   :  { %v4051_v56 = vpop.f32.mrf.mxu1 }
0x1609   :  { %v5397_v1 = vpop.f32.mrf.mxu1 }
0x1694   :  { %v4292_v48 = vpop.f32.mrf.mxu0 }
0x1695   :  { %v4293_v31 = vadd.f32 %v4504_v22, %v4292_v48 }
0x1696   :  { %v5427_v54 = vpop.f32.mrf.mxu0 }
0x1697   :  { %4296 = vst [vmem:[#allocation2] sm:$0x3] %v4293_v31 }
0x1698   :  { %5679 = shalt.err (!%p5676_p4)
}
0x1699   :  { %4306 = dma.vmem_to_hbm [thread:$0]  %s4304_s26, 32, %s7588_s2, [#allocation3]  }
0x169a   :  { %5688 = dma.done.wait [#allocation3], 32  }
0x169b   :  { %5689 = vsyncadd [#allocation3], 4294967264 }
0x169c   :  { %4310 = vsyncpa [#allocation3], 1 }

</bundles_post_ra>
